<compile_context>
chip_gen: v6e
topology: v6e:2x2x1
jax: 0.10.0
libtpu: 0.0.40
codegen_flags: <defaults>
</compile_context>

<pallas_src>
import functools

import jax
import jax.numpy as jnp
from jax.experimental import pallas as pl
from jax.experimental.pallas import tpu as pltpu


_VMEM = pl.BlockSpec(memory_space=pltpu.MemorySpace.VMEM)


# ------------------------------ fused kernel --------------------------------

def _convnet_kernel(patches_ref, wc_ref, bc_ref, w1_hbm_ref, b1_ref, w2_ref,
                    b2_ref, o_ref, w1_vmem, w1_sem, *, n_pos, n_samples):
    """Whole ConvNet forward, resident in VMEM.

    patches_ref: (4*P, K) im2col patches; rows ordered (corner, pos, sample)
                 with P = n_pos * n_samples, features ordered (c, kh, kw)
    wc_ref:      (K, Cout)  conv weight as matmul weight
    bc_ref:      (1, Cout)  conv bias
    w1_hbm_ref:  (n_pos, Cout, hidden) first Linear weight, left in HBM and
                 DMA'd manually so the copy overlaps the conv/pool compute
    b1_ref:      (1, hidden);  w2_ref: (hidden, n_out);  b2_ref: (1, n_out)
    o_ref:       (n_samples, n_out) logits
    """
    # Kick off the w1 copy (dominant HBM traffic) immediately; it overlaps the
    # conv + pool compute below and is only waited on right before first use.
    w1_copy = pltpu.make_async_copy(w1_hbm_ref, w1_vmem, w1_sem)
    w1_copy.start()

    P = n_pos * n_samples

    # Conv for all 4 pooling-window corners as ONE MXU matmul
    # (one weight push/drain instead of 4 for the same RHS).
    acc = jnp.dot(patches_ref[...], wc_ref[...],
                  preferred_element_type=jnp.float32)            # (4P, Cout)

    # 2x2 maxpool BEFORE bias+tanh: tanh is monotone, identical result,
    # 4x fewer transcendentals / bias adds.
    m = jnp.maximum(jnp.maximum(acc[0 * P:1 * P], acc[1 * P:2 * P]),
                    jnp.maximum(acc[2 * P:3 * P], acc[3 * P:4 * P]))
    pooled = jnp.tanh(m + bc_ref[...])        # (P, Cout), rows = (pos, sample)

    # First Linear as a sum of per-position matmuls:
    #   h[n, :] = sum_p pooled[p*N + n, :] @ W1[p]
    # This consumes the pooled slab in place — no (P, Cout) -> (N, pos*Cout)
    # relayout, no second kernel dispatch.  Total MXU weight rows streamed is
    # identical to the single (N, 2560) @ (2560, 64) matmul.
    w1_copy.wait()
    hidden = b1_ref.shape[1]
    h = jnp.zeros((n_samples, hidden), jnp.float32)
    for p in range(n_pos):                     # static unroll (n_pos = 64)
        h = h + jnp.dot(pooled[p * n_samples:(p + 1) * n_samples, :],
                        w1_vmem[p], preferred_element_type=jnp.float32)
    h = jnp.tanh(h + b1_ref[...])

    # Second Linear.  (n_out = 10 lanes -> masked store; negligible here.)
    o_ref[...] = jnp.dot(h, w2_ref[...],
                         preferred_element_type=jnp.float32) + b2_ref[...]


# --------------------- parameter preparation (run once) ---------------------

def prepare_params(params, H, W):
    """One-time re-layout of the PyTorch-style params (outside the jitted fwd)."""
    w_conv, b_conv, w1, b1, w2, b2 = params
    Cout, C, kh, kw = w_conv.shape
    H1, W1 = H // kh, W // kw          # conv output (stride == kernel)
    H2, W2 = H1 // 2, W1 // 2          # pool output
    hidden = w1.shape[1]

    # conv weight as an im2col matmul weight, feature order (c, kh, kw)
    w_mm = w_conv.reshape(Cout, C * kh * kw).T                    # (12, Cout)

    # first Linear weight regrouped per pooled position: w1_3d[p, co, :] is
    # the weight row of PyTorch NCHW-flatten feature index co*H2*W2 + p.
    w1_3d = w1.reshape(Cout, H2 * W2, hidden).transpose(1, 0, 2)  # (HW,Cout,hid)

    return (w_mm, b_conv.reshape(1, Cout), w1_3d, b1.reshape(1, -1),
            w2, b2.reshape(1, -1))


# ------------------------------- forward ------------------------------------

def convnet_forward(x, prepared):
    """x: (N, 3, H, W) float32 NCHW. Returns (N, 10) logits."""
    w_mm, b_conv, w1_3d, b1, w2, b2 = prepared
    N, C, H, W = x.shape
    K, Cout = w_mm.shape
    kh = kw = 2
    H1, W1 = H // kh, W // kw
    H2, W2 = H1 // 2, W1 // 2
    HW = H2 * W2
    P = HW * N                                  # pooled rows
    hidden = w1_3d.shape[2]
    n_out = w2.shape[1]

    # im2col with rows grouped by pooling-window corner and, within a corner,
    # ordered (i2, j2, n) (position-major, sample-minor) so the fused kernel's
    # first Linear consumes contiguous per-position row blocks with no
    # relayout.  Feature order is (c, kh, kw).
    patches = (x.reshape(N, C, H2, 2, kh, W2, 2, kw)
                 .transpose(3, 6, 2, 5, 0, 1, 4, 7)   # (pi,pj,i2,j2,n,c,ki,kj)
                 .reshape(4 * P, C * kh * kw))

    kernel = functools.partial(_convnet_kernel, n_pos=HW, n_samples=N)

    # Single grid-less pallas_call: conv + tanh + maxpool + 2-layer MLP all in
    # one kernel invocation; every intermediate stays in VMEM (<2 MiB total).
    return pl.pallas_call(
        kernel,
        out_shape=jax.ShapeDtypeStruct((N, n_out), jnp.float32),
        in_specs=[
            _VMEM,                                   # patches
            _VMEM,                                   # conv weight (K, Cout)
            _VMEM,                                   # conv bias
            pl.BlockSpec(memory_space=pl.ANY),       # w1 stays in HBM
            _VMEM,                                   # b1
            _VMEM,                                   # w2
            _VMEM,                                   # b2
        ],
        out_specs=_VMEM,
        scratch_shapes=[
            pltpu.VMEM((HW, Cout, hidden), jnp.float32),   # w1 landing buffer
            pltpu.SemaphoreType.DMA(()),                   # w1 copy semaphore
        ],
    )(patches, w_mm, b_conv, w1_3d, b1, w2, b2)


# --------------------------- reference (plain JAX) ---------------------------

def convnet_reference(x, params):
    w_conv, b_conv, w1, b1, w2, b2 = params
    conv = jax.lax.conv_general_dilated(
        x, w_conv, window_strides=(2, 2), padding='VALID',
        dimension_numbers=('NCHW', 'OIHW', 'NCHW'))
    conv = jnp.tanh(conv + b_conv.reshape(1, -1, 1, 1))
    pooled = jax.lax.reduce_window(conv, -jnp.inf, jax.lax.max,
                                   (1, 1, 2, 2), (1, 1, 2, 2), 'VALID')
    flat = pooled.reshape(x.shape[0], -1)
    return jnp.tanh(flat @ w1 + b1) @ w2 + b2


# ----------------------------------- main ------------------------------------

if __name__ == "__main__":
    key = jax.random.PRNGKey(0)
    k = jax.random.split(key, 7)

    N, C, H, W = 2, 3, 32, 32           # conv -> 16x16x40 -> pool -> 8x8x40 = 2560
    Cout, KH, KW = 40, 2, 2
    lin_in, hidden, n_out = Cout * 8 * 8, 64, 10   # 2560, module default

    x = jax.random.normal(k[0], (N, C, H, W), jnp.float32)

    # deterministic PyTorch-style uniform(-1/sqrt(fan_in), 1/sqrt(fan_in)) init
    def u(key, shape, fan_in):
        bound = 1.0 / jnp.sqrt(fan_in)
        return jax.random.uniform(key, shape, jnp.float32, -bound, bound)

    w_conv = u(k[1], (Cout, C, KH, KW), C * KH * KW)
    b_conv = u(k[2], (Cout,), C * KH * KW)
    w1 = u(k[3], (lin_in, hidden), lin_in)
    b1 = u(k[4], (hidden,), lin_in)
    w2 = u(k[5], (hidden, n_out), hidden)
    b2 = u(k[6], (n_out,), hidden)
    params = (w_conv, b_conv, w1, b1, w2, b2)

    # one-time parameter re-layout (off the hot path)
    prepared = prepare_params(params, H, W)

    fwd = jax.jit(convnet_forward)
    out = jax.block_until_ready(fwd(x, prepared))
    ref = jax.block_until_ready(convnet_reference(x, params))

    assert out.shape == (N, n_out), out.shape
    assert jnp.allclose(out, ref, atol=1e-4, rtol=1e-4), "mismatch vs reference"
    print("KERNEL_OK")
</pallas_src>

<mosaic_0001>
module attributes {stable_mosaic.version = 11 : i64} {
  func.func @_convnet_kernel(%arg0: memref<512x12xf32, #tpu.memory_space<vmem>>, %arg1: memref<12x40xf32, #tpu.memory_space<vmem>>, %arg2: memref<1x40xf32, #tpu.memory_space<vmem>>, %arg3: memref<64x40x64xf32, #tpu.memory_space<any>>, %arg4: memref<1x64xf32, #tpu.memory_space<vmem>>, %arg5: memref<64x10xf32, #tpu.memory_space<vmem>>, %arg6: memref<1x10xf32, #tpu.memory_space<vmem>>, %arg7: memref<2x10xf32, #tpu.memory_space<vmem>>, %arg8: memref<64x40x64xf32, #tpu.memory_space<vmem>>, %arg9: memref<!tpu.dma_semaphore, #tpu.memory_space<semaphore_mem>>) attributes {dimension_semantics = [], scalar_prefetch = 0 : i64, scratch_operands = 2 : i64, tpu.core_type = #tpu.core_type<tc>} {
    tpu.enqueue_dma source(%arg3 : memref<64x40x64xf32, #tpu.memory_space<any>>) target(%arg8 : memref<64x40x64xf32, #tpu.memory_space<vmem>>) target_semaphore(%arg9 : memref<!tpu.dma_semaphore, #tpu.memory_space<semaphore_mem>>)
    %c0 = arith.constant 0 : index
    %c0_0 = arith.constant 0 : index
    %0 = vector.load %arg0[%c0, %c0_0] : memref<512x12xf32, #tpu.memory_space<vmem>>, vector<512x12xf32>
    %c0_1 = arith.constant 0 : index
    %c0_2 = arith.constant 0 : index
    %1 = vector.load %arg1[%c0_1, %c0_2] : memref<12x40xf32, #tpu.memory_space<vmem>>, vector<12x40xf32>
    %cst = arith.constant dense<0.000000e+00> : vector<512x40xf32>
    %2 = tpu.matmul %0, %1, %cst {dimension_numbers = #tpu.dot_dimension_numbers<[1], [0], [0], [1], [0, 0, 1, 1], [], []>} : vector<512x12xf32>, vector<12x40xf32>, vector<512x40xf32> -> vector<512x40xf32>
    %3 = vector.extract_strided_slice %2 {offsets = [0, 0], sizes = [128, 40], strides = [1, 1]} : vector<512x40xf32> to vector<128x40xf32>
    %4 = vector.extract_strided_slice %2 {offsets = [128, 0], sizes = [128, 40], strides = [1, 1]} : vector<512x40xf32> to vector<128x40xf32>
    %5 = arith.maximumf %3, %4 : vector<128x40xf32>
    %6 = vector.extract_strided_slice %2 {offsets = [256, 0], sizes = [128, 40], strides = [1, 1]} : vector<512x40xf32> to vector<128x40xf32>
    %7 = vector.extract_strided_slice %2 {offsets = [384, 0], sizes = [128, 40], strides = [1, 1]} : vector<512x40xf32> to vector<128x40xf32>
    %8 = arith.maximumf %6, %7 : vector<128x40xf32>
    %9 = arith.maximumf %5, %8 : vector<128x40xf32>
    %c0_3 = arith.constant 0 : index
    %c0_4 = arith.constant 0 : index
    %10 = vector.load %arg2[%c0_3, %c0_4] : memref<1x40xf32, #tpu.memory_space<vmem>>, vector<1x40xf32>
    %11 = vector.broadcast %10 : vector<1x40xf32> to vector<128x40xf32>
    %12 = arith.addf %9, %11 : vector<128x40xf32>
    %13 = math.tanh %12 : vector<128x40xf32>
    tpu.wait_dma2 semaphore(%arg9 : memref<!tpu.dma_semaphore, #tpu.memory_space<semaphore_mem>>) src(%arg3 : memref<64x40x64xf32, #tpu.memory_space<any>>) dst(%arg8 : memref<64x40x64xf32, #tpu.memory_space<vmem>>)
    %cst_5 = arith.constant 0.000000e+00 : f32
    %14 = vector.broadcast %cst_5 : f32 to vector<2x64xf32>
    %15 = vector.extract_strided_slice %13 {offsets = [0, 0], sizes = [2, 40], strides = [1, 1]} : vector<128x40xf32> to vector<2x40xf32>
    %c0_6 = arith.constant 0 : index
    %c0_7 = arith.constant 0 : index
    %c0_8 = arith.constant 0 : index
    %16 = vector.load %arg8[%c0_6, %c0_7, %c0_8] : memref<64x40x64xf32, #tpu.memory_space<vmem>>, vector<1x40x64xf32>
    %17 = vector.shape_cast %16 : vector<1x40x64xf32> to vector<40x64xf32>
    %cst_9 = arith.constant dense<0.000000e+00> : vector<2x64xf32>
    %18 = tpu.matmul %15, %17, %cst_9 {dimension_numbers = #tpu.dot_dimension_numbers<[1], [0], [0], [1], [0, 0, 1, 1], [], []>} : vector<2x40xf32>, vector<40x64xf32>, vector<2x64xf32> -> vector<2x64xf32>
    %19 = arith.addf %14, %18 : vector<2x64xf32>
    %20 = vector.extract_strided_slice %13 {offsets = [2, 0], sizes = [2, 40], strides = [1, 1]} : vector<128x40xf32> to vector<2x40xf32>
    %c1 = arith.constant 1 : index
    %c0_10 = arith.constant 0 : index
    %c0_11 = arith.constant 0 : index
    %21 = vector.load %arg8[%c1, %c0_10, %c0_11] : memref<64x40x64xf32, #tpu.memory_space<vmem>>, vector<1x40x64xf32>
    %22 = vector.shape_cast %21 : vector<1x40x64xf32> to vector<40x64xf32>
    %cst_12 = arith.constant dense<0.000000e+00> : vector<2x64xf32>
    %23 = tpu.matmul %20, %22, %cst_12 {dimension_numbers = #tpu.dot_dimension_numbers<[1], [0], [0], [1], [0, 0, 1, 1], [], []>} : vector<2x40xf32>, vector<40x64xf32>, vector<2x64xf32> -> vector<2x64xf32>
    %24 = arith.addf %19, %23 : vector<2x64xf32>
    %25 = vector.extract_strided_slice %13 {offsets = [4, 0], sizes = [2, 40], strides = [1, 1]} : vector<128x40xf32> to vector<2x40xf32>
    %c2 = arith.constant 2 : index
    %c0_13 = arith.constant 0 : index
    %c0_14 = arith.constant 0 : index
    %26 = vector.load %arg8[%c2, %c0_13, %c0_14] : memref<64x40x64xf32, #tpu.memory_space<vmem>>, vector<1x40x64xf32>
    %27 = vector.shape_cast %26 : vector<1x40x64xf32> to vector<40x64xf32>
    %cst_15 = arith.constant dense<0.000000e+00> : vector<2x64xf32>
    %28 = tpu.matmul %25, %27, %cst_15 {dimension_numbers = #tpu.dot_dimension_numbers<[1], [0], [0], [1], [0, 0, 1, 1], [], []>} : vector<2x40xf32>, vector<40x64xf32>, vector<2x64xf32> -> vector<2x64xf32>
    %29 = arith.addf %24, %28 : vector<2x64xf32>
    %30 = vector.extract_strided_slice %13 {offsets = [6, 0], sizes = [2, 40], strides = [1, 1]} : vector<128x40xf32> to vector<2x40xf32>
    %c3 = arith.constant 3 : index
    %c0_16 = arith.constant 0 : index
    %c0_17 = arith.constant 0 : index
    %31 = vector.load %arg8[%c3, %c0_16, %c0_17] : memref<64x40x64xf32, #tpu.memory_space<vmem>>, vector<1x40x64xf32>
    %32 = vector.shape_cast %31 : vector<1x40x64xf32> to vector<40x64xf32>
    %cst_18 = arith.constant dense<0.000000e+00> : vector<2x64xf32>
    %33 = tpu.matmul %30, %32, %cst_18 {dimension_numbers = #tpu.dot_dimension_numbers<[1], [0], [0], [1], [0, 0, 1, 1], [], []>} : vector<2x40xf32>, vector<40x64xf32>, vector<2x64xf32> -> vector<2x64xf32>
    %34 = arith.addf %29, %33 : vector<2x64xf32>
    %35 = vector.extract_strided_slice %13 {offsets = [8, 0], sizes = [2, 40], strides = [1, 1]} : vector<128x40xf32> to vector<2x40xf32>
    %c4 = arith.constant 4 : index
    %c0_19 = arith.constant 0 : index
    %c0_20 = arith.constant 0 : index
    %36 = vector.load %arg8[%c4, %c0_19, %c0_20] : memref<64x40x64xf32, #tpu.memory_space<vmem>>, vector<1x40x64xf32>
    %37 = vector.shape_cast %36 : vector<1x40x64xf32> to vector<40x64xf32>
    %cst_21 = arith.constant dense<0.000000e+00> : vector<2x64xf32>
    %38 = tpu.matmul %35, %37, %cst_21 {dimension_numbers = #tpu.dot_dimension_numbers<[1], [0], [0], [1], [0, 0, 1, 1], [], []>} : vector<2x40xf32>, vector<40x64xf32>, vector<2x64xf32> -> vector<2x64xf32>
    %39 = arith.addf %34, %38 : vector<2x64xf32>
    %40 = vector.extract_strided_slice %13 {offsets = [10, 0], sizes = [2, 40], strides = [1, 1]} : vector<128x40xf32> to vector<2x40xf32>
    %c5 = arith.constant 5 : index
    %c0_22 = arith.constant 0 : index
    %c0_23 = arith.constant 0 : index
    %41 = vector.load %arg8[%c5, %c0_22, %c0_23] : memref<64x40x64xf32, #tpu.memory_space<vmem>>, vector<1x40x64xf32>
    %42 = vector.shape_cast %41 : vector<1x40x64xf32> to vector<40x64xf32>
    %cst_24 = arith.constant dense<0.000000e+00> : vector<2x64xf32>
    %43 = tpu.matmul %40, %42, %cst_24 {dimension_numbers = #tpu.dot_dimension_numbers<[1], [0], [0], [1], [0, 0, 1, 1], [], []>} : vector<2x40xf32>, vector<40x64xf32>, vector<2x64xf32> -> vector<2x64xf32>
    %44 = arith.addf %39, %43 : vector<2x64xf32>
    %45 = vector.extract_strided_slice %13 {offsets = [12, 0], sizes = [2, 40], strides = [1, 1]} : vector<128x40xf32> to vector<2x40xf32>
    %c6 = arith.constant 6 : index
    %c0_25 = arith.constant 0 : index
    %c0_26 = arith.constant 0 : index
    %46 = vector.load %arg8[%c6, %c0_25, %c0_26] : memref<64x40x64xf32, #tpu.memory_space<vmem>>, vector<1x40x64xf32>
    %47 = vector.shape_cast %46 : vector<1x40x64xf32> to vector<40x64xf32>
    %cst_27 = arith.constant dense<0.000000e+00> : vector<2x64xf32>
    %48 = tpu.matmul %45, %47, %cst_27 {dimension_numbers = #tpu.dot_dimension_numbers<[1], [0], [0], [1], [0, 0, 1, 1], [], []>} : vector<2x40xf32>, vector<40x64xf32>, vector<2x64xf32> -> vector<2x64xf32>
    %49 = arith.addf %44, %48 : vector<2x64xf32>
    %50 = vector.extract_strided_slice %13 {offsets = [14, 0], sizes = [2, 40], strides = [1, 1]} : vector<128x40xf32> to vector<2x40xf32>
    %c7 = arith.constant 7 : index
    %c0_28 = arith.constant 0 : index
    %c0_29 = arith.constant 0 : index
    %51 = vector.load %arg8[%c7, %c0_28, %c0_29] : memref<64x40x64xf32, #tpu.memory_space<vmem>>, vector<1x40x64xf32>
    %52 = vector.shape_cast %51 : vector<1x40x64xf32> to vector<40x64xf32>
    %cst_30 = arith.constant dense<0.000000e+00> : vector<2x64xf32>
    %53 = tpu.matmul %50, %52, %cst_30 {dimension_numbers = #tpu.dot_dimension_numbers<[1], [0], [0], [1], [0, 0, 1, 1], [], []>} : vector<2x40xf32>, vector<40x64xf32>, vector<2x64xf32> -> vector<2x64xf32>
    %54 = arith.addf %49, %53 : vector<2x64xf32>
    %55 = vector.extract_strided_slice %13 {offsets = [16, 0], sizes = [2, 40], strides = [1, 1]} : vector<128x40xf32> to vector<2x40xf32>
    %c8 = arith.constant 8 : index
    %c0_31 = arith.constant 0 : index
    %c0_32 = arith.constant 0 : index
    %56 = vector.load %arg8[%c8, %c0_31, %c0_32] : memref<64x40x64xf32, #tpu.memory_space<vmem>>, vector<1x40x64xf32>
    %57 = vector.shape_cast %56 : vector<1x40x64xf32> to vector<40x64xf32>
    %cst_33 = arith.constant dense<0.000000e+00> : vector<2x64xf32>
    %58 = tpu.matmul %55, %57, %cst_33 {dimension_numbers = #tpu.dot_dimension_numbers<[1], [0], [0], [1], [0, 0, 1, 1], [], []>} : vector<2x40xf32>, vector<40x64xf32>, vector<2x64xf32> -> vector<2x64xf32>
    %59 = arith.addf %54, %58 : vector<2x64xf32>
    %60 = vector.extract_strided_slice %13 {offsets = [18, 0], sizes = [2, 40], strides = [1, 1]} : vector<128x40xf32> to vector<2x40xf32>
    %c9 = arith.constant 9 : index
    %c0_34 = arith.constant 0 : index
    %c0_35 = arith.constant 0 : index
    %61 = vector.load %arg8[%c9, %c0_34, %c0_35] : memref<64x40x64xf32, #tpu.memory_space<vmem>>, vector<1x40x64xf32>
    %62 = vector.shape_cast %61 : vector<1x40x64xf32> to vector<40x64xf32>
    %cst_36 = arith.constant dense<0.000000e+00> : vector<2x64xf32>
    %63 = tpu.matmul %60, %62, %cst_36 {dimension_numbers = #tpu.dot_dimension_numbers<[1], [0], [0], [1], [0, 0, 1, 1], [], []>} : vector<2x40xf32>, vector<40x64xf32>, vector<2x64xf32> -> vector<2x64xf32>
    %64 = arith.addf %59, %63 : vector<2x64xf32>
    %65 = vector.extract_strided_slice %13 {offsets = [20, 0], sizes = [2, 40], strides = [1, 1]} : vector<128x40xf32> to vector<2x40xf32>
    %c10 = arith.constant 10 : index
    %c0_37 = arith.constant 0 : index
    %c0_38 = arith.constant 0 : index
    %66 = vector.load %arg8[%c10, %c0_37, %c0_38] : memref<64x40x64xf32, #tpu.memory_space<vmem>>, vector<1x40x64xf32>
    %67 = vector.shape_cast %66 : vector<1x40x64xf32> to vector<40x64xf32>
    %cst_39 = arith.constant dense<0.000000e+00> : vector<2x64xf32>
    %68 = tpu.matmul %65, %67, %cst_39 {dimension_numbers = #tpu.dot_dimension_numbers<[1], [0], [0], [1], [0, 0, 1, 1], [], []>} : vector<2x40xf32>, vector<40x64xf32>, vector<2x64xf32> -> vector<2x64xf32>
    %69 = arith.addf %64, %68 : vector<2x64xf32>
    %70 = vector.extract_strided_slice %13 {offsets = [22, 0], sizes = [2, 40], strides = [1, 1]} : vector<128x40xf32> to vector<2x40xf32>
    %c11 = arith.constant 11 : index
    %c0_40 = arith.constant 0 : index
    %c0_41 = arith.constant 0 : index
    %71 = vector.load %arg8[%c11, %c0_40, %c0_41] : memref<64x40x64xf32, #tpu.memory_space<vmem>>, vector<1x40x64xf32>
    %72 = vector.shape_cast %71 : vector<1x40x64xf32> to vector<40x64xf32>
    %cst_42 = arith.constant dense<0.000000e+00> : vector<2x64xf32>
    %73 = tpu.matmul %70, %72, %cst_42 {dimension_numbers = #tpu.dot_dimension_numbers<[1], [0], [0], [1], [0, 0, 1, 1], [], []>} : vector<2x40xf32>, vector<40x64xf32>, vector<2x64xf32> -> vector<2x64xf32>
    %74 = arith.addf %69, %73 : vector<2x64xf32>
    %75 = vector.extract_strided_slice %13 {offsets = [24, 0], sizes = [2, 40], strides = [1, 1]} : vector<128x40xf32> to vector<2x40xf32>
    %c12 = arith.constant 12 : index
    %c0_43 = arith.constant 0 : index
    %c0_44 = arith.constant 0 : index
    %76 = vector.load %arg8[%c12, %c0_43, %c0_44] : memref<64x40x64xf32, #tpu.memory_space<vmem>>, vector<1x40x64xf32>
    %77 = vector.shape_cast %76 : vector<1x40x64xf32> to vector<40x64xf32>
    %cst_45 = arith.constant dense<0.000000e+00> : vector<2x64xf32>
    %78 = tpu.matmul %75, %77, %cst_45 {dimension_numbers = #tpu.dot_dimension_numbers<[1], [0], [0], [1], [0, 0, 1, 1], [], []>} : vector<2x40xf32>, vector<40x64xf32>, vector<2x64xf32> -> vector<2x64xf32>
    %79 = arith.addf %74, %78 : vector<2x64xf32>
    %80 = vector.extract_strided_slice %13 {offsets = [26, 0], sizes = [2, 40], strides = [1, 1]} : vector<128x40xf32> to vector<2x40xf32>
    %c13 = arith.constant 13 : index
    %c0_46 = arith.constant 0 : index
    %c0_47 = arith.constant 0 : index
    %81 = vector.load %arg8[%c13, %c0_46, %c0_47] : memref<64x40x64xf32, #tpu.memory_space<vmem>>, vector<1x40x64xf32>
    %82 = vector.shape_cast %81 : vector<1x40x64xf32> to vector<40x64xf32>
    %cst_48 = arith.constant dense<0.000000e+00> : vector<2x64xf32>
    %83 = tpu.matmul %80, %82, %cst_48 {dimension_numbers = #tpu.dot_dimension_numbers<[1], [0], [0], [1], [0, 0, 1, 1], [], []>} : vector<2x40xf32>, vector<40x64xf32>, vector<2x64xf32> -> vector<2x64xf32>
    %84 = arith.addf %79, %83 : vector<2x64xf32>
    %85 = vector.extract_strided_slice %13 {offsets = [28, 0], sizes = [2, 40], strides = [1, 1]} : vector<128x40xf32> to vector<2x40xf32>
    %c14 = arith.constant 14 : index
    %c0_49 = arith.constant 0 : index
    %c0_50 = arith.constant 0 : index
    %86 = vector.load %arg8[%c14, %c0_49, %c0_50] : memref<64x40x64xf32, #tpu.memory_space<vmem>>, vector<1x40x64xf32>
    %87 = vector.shape_cast %86 : vector<1x40x64xf32> to vector<40x64xf32>
    %cst_51 = arith.constant dense<0.000000e+00> : vector<2x64xf32>
    %88 = tpu.matmul %85, %87, %cst_51 {dimension_numbers = #tpu.dot_dimension_numbers<[1], [0], [0], [1], [0, 0, 1, 1], [], []>} : vector<2x40xf32>, vector<40x64xf32>, vector<2x64xf32> -> vector<2x64xf32>
    %89 = arith.addf %84, %88 : vector<2x64xf32>
    %90 = vector.extract_strided_slice %13 {offsets = [30, 0], sizes = [2, 40], strides = [1, 1]} : vector<128x40xf32> to vector<2x40xf32>
    %c15 = arith.constant 15 : index
    %c0_52 = arith.constant 0 : index
    %c0_53 = arith.constant 0 : index
    %91 = vector.load %arg8[%c15, %c0_52, %c0_53] : memref<64x40x64xf32, #tpu.memory_space<vmem>>, vector<1x40x64xf32>
    %92 = vector.shape_cast %91 : vector<1x40x64xf32> to vector<40x64xf32>
    %cst_54 = arith.constant dense<0.000000e+00> : vector<2x64xf32>
    %93 = tpu.matmul %90, %92, %cst_54 {dimension_numbers = #tpu.dot_dimension_numbers<[1], [0], [0], [1], [0, 0, 1, 1], [], []>} : vector<2x40xf32>, vector<40x64xf32>, vector<2x64xf32> -> vector<2x64xf32>
    %94 = arith.addf %89, %93 : vector<2x64xf32>
    %95 = vector.extract_strided_slice %13 {offsets = [32, 0], sizes = [2, 40], strides = [1, 1]} : vector<128x40xf32> to vector<2x40xf32>
    %c16 = arith.constant 16 : index
    %c0_55 = arith.constant 0 : index
    %c0_56 = arith.constant 0 : index
    %96 = vector.load %arg8[%c16, %c0_55, %c0_56] : memref<64x40x64xf32, #tpu.memory_space<vmem>>, vector<1x40x64xf32>
    %97 = vector.shape_cast %96 : vector<1x40x64xf32> to vector<40x64xf32>
    %cst_57 = arith.constant dense<0.000000e+00> : vector<2x64xf32>
    %98 = tpu.matmul %95, %97, %cst_57 {dimension_numbers = #tpu.dot_dimension_numbers<[1], [0], [0], [1], [0, 0, 1, 1], [], []>} : vector<2x40xf32>, vector<40x64xf32>, vector<2x64xf32> -> vector<2x64xf32>
    %99 = arith.addf %94, %98 : vector<2x64xf32>
    %100 = vector.extract_strided_slice %13 {offsets = [34, 0], sizes = [2, 40], strides = [1, 1]} : vector<128x40xf32> to vector<2x40xf32>
    %c17 = arith.constant 17 : index
    %c0_58 = arith.constant 0 : index
    %c0_59 = arith.constant 0 : index
    %101 = vector.load %arg8[%c17, %c0_58, %c0_59] : memref<64x40x64xf32, #tpu.memory_space<vmem>>, vector<1x40x64xf32>
    %102 = vector.shape_cast %101 : vector<1x40x64xf32> to vector<40x64xf32>
    %cst_60 = arith.constant dense<0.000000e+00> : vector<2x64xf32>
    %103 = tpu.matmul %100, %102, %cst_60 {dimension_numbers = #tpu.dot_dimension_numbers<[1], [0], [0], [1], [0, 0, 1, 1], [], []>} : vector<2x40xf32>, vector<40x64xf32>, vector<2x64xf32> -> vector<2x64xf32>
    %104 = arith.addf %99, %103 : vector<2x64xf32>
    %105 = vector.extract_strided_slice %13 {offsets = [36, 0], sizes = [2, 40], strides = [1, 1]} : vector<128x40xf32> to vector<2x40xf32>
    %c18 = arith.constant 18 : index
    %c0_61 = arith.constant 0 : index
    %c0_62 = arith.constant 0 : index
    %106 = vector.load %arg8[%c18, %c0_61, %c0_62] : memref<64x40x64xf32, #tpu.memory_space<vmem>>, vector<1x40x64xf32>
    %107 = vector.shape_cast %106 : vector<1x40x64xf32> to vector<40x64xf32>
    %cst_63 = arith.constant dense<0.000000e+00> : vector<2x64xf32>
    %108 = tpu.matmul %105, %107, %cst_63 {dimension_numbers = #tpu.dot_dimension_numbers<[1], [0], [0], [1], [0, 0, 1, 1], [], []>} : vector<2x40xf32>, vector<40x64xf32>, vector<2x64xf32> -> vector<2x64xf32>
    %109 = arith.addf %104, %108 : vector<2x64xf32>
    %110 = vector.extract_strided_slice %13 {offsets = [38, 0], sizes = [2, 40], strides = [1, 1]} : vector<128x40xf32> to vector<2x40xf32>
    %c19 = arith.constant 19 : index
    %c0_64 = arith.constant 0 : index
    %c0_65 = arith.constant 0 : index
    %111 = vector.load %arg8[%c19, %c0_64, %c0_65] : memref<64x40x64xf32, #tpu.memory_space<vmem>>, vector<1x40x64xf32>
    %112 = vector.shape_cast %111 : vector<1x40x64xf32> to vector<40x64xf32>
    %cst_66 = arith.constant dense<0.000000e+00> : vector<2x64xf32>
    %113 = tpu.matmul %110, %112, %cst_66 {dimension_numbers = #tpu.dot_dimension_numbers<[1], [0], [0], [1], [0, 0, 1, 1], [], []>} : vector<2x40xf32>, vector<40x64xf32>, vector<2x64xf32> -> vector<2x64xf32>
    %114 = arith.addf %109, %113 : vector<2x64xf32>
    %115 = vector.extract_strided_slice %13 {offsets = [40, 0], sizes = [2, 40], strides = [1, 1]} : vector<128x40xf32> to vector<2x40xf32>
    %c20 = arith.constant 20 : index
    %c0_67 = arith.constant 0 : index
    %c0_68 = arith.constant 0 : index
    %116 = vector.load %arg8[%c20, %c0_67, %c0_68] : memref<64x40x64xf32, #tpu.memory_space<vmem>>, vector<1x40x64xf32>
    %117 = vector.shape_cast %116 : vector<1x40x64xf32> to vector<40x64xf32>
    %cst_69 = arith.constant dense<0.000000e+00> : vector<2x64xf32>
    %118 = tpu.matmul %115, %117, %cst_69 {dimension_numbers = #tpu.dot_dimension_numbers<[1], [0], [0], [1], [0, 0, 1, 1], [], []>} : vector<2x40xf32>, vector<40x64xf32>, vector<2x64xf32> -> vector<2x64xf32>
    %119 = arith.addf %114, %118 : vector<2x64xf32>
    %120 = vector.extract_strided_slice %13 {offsets = [42, 0], sizes = [2, 40], strides = [1, 1]} : vector<128x40xf32> to vector<2x40xf32>
    %c21 = arith.constant 21 : index
    %c0_70 = arith.constant 0 : index
    %c0_71 = arith.constant 0 : index
    %121 = vector.load %arg8[%c21, %c0_70, %c0_71] : memref<64x40x64xf32, #tpu.memory_space<vmem>>, vector<1x40x64xf32>
    %122 = vector.shape_cast %121 : vector<1x40x64xf32> to vector<40x64xf32>
    %cst_72 = arith.constant dense<0.000000e+00> : vector<2x64xf32>
    %123 = tpu.matmul %120, %122, %cst_72 {dimension_numbers = #tpu.dot_dimension_numbers<[1], [0], [0], [1], [0, 0, 1, 1], [], []>} : vector<2x40xf32>, vector<40x64xf32>, vector<2x64xf32> -> vector<2x64xf32>
    %124 = arith.addf %119, %123 : vector<2x64xf32>
    %125 = vector.extract_strided_slice %13 {offsets = [44, 0], sizes = [2, 40], strides = [1, 1]} : vector<128x40xf32> to vector<2x40xf32>
    %c22 = arith.constant 22 : index
    %c0_73 = arith.constant 0 : index
    %c0_74 = arith.constant 0 : index
    %126 = vector.load %arg8[%c22, %c0_73, %c0_74] : memref<64x40x64xf32, #tpu.memory_space<vmem>>, vector<1x40x64xf32>
    %127 = vector.shape_cast %126 : vector<1x40x64xf32> to vector<40x64xf32>
    %cst_75 = arith.constant dense<0.000000e+00> : vector<2x64xf32>
    %128 = tpu.matmul %125, %127, %cst_75 {dimension_numbers = #tpu.dot_dimension_numbers<[1], [0], [0], [1], [0, 0, 1, 1], [], []>} : vector<2x40xf32>, vector<40x64xf32>, vector<2x64xf32> -> vector<2x64xf32>
    %129 = arith.addf %124, %128 : vector<2x64xf32>
    %130 = vector.extract_strided_slice %13 {offsets = [46, 0], sizes = [2, 40], strides = [1, 1]} : vector<128x40xf32> to vector<2x40xf32>
    %c23 = arith.constant 23 : index
    %c0_76 = arith.constant 0 : index
    %c0_77 = arith.constant 0 : index
    %131 = vector.load %arg8[%c23, %c0_76, %c0_77] : memref<64x40x64xf32, #tpu.memory_space<vmem>>, vector<1x40x64xf32>
    %132 = vector.shape_cast %131 : vector<1x40x64xf32> to vector<40x64xf32>
    %cst_78 = arith.constant dense<0.000000e+00> : vector<2x64xf32>
    %133 = tpu.matmul %130, %132, %cst_78 {dimension_numbers = #tpu.dot_dimension_numbers<[1], [0], [0], [1], [0, 0, 1, 1], [], []>} : vector<2x40xf32>, vector<40x64xf32>, vector<2x64xf32> -> vector<2x64xf32>
    %134 = arith.addf %129, %133 : vector<2x64xf32>
    %135 = vector.extract_strided_slice %13 {offsets = [48, 0], sizes = [2, 40], strides = [1, 1]} : vector<128x40xf32> to vector<2x40xf32>
    %c24 = arith.constant 24 : index
    %c0_79 = arith.constant 0 : index
    %c0_80 = arith.constant 0 : index
    %136 = vector.load %arg8[%c24, %c0_79, %c0_80] : memref<64x40x64xf32, #tpu.memory_space<vmem>>, vector<1x40x64xf32>
    %137 = vector.shape_cast %136 : vector<1x40x64xf32> to vector<40x64xf32>
    %cst_81 = arith.constant dense<0.000000e+00> : vector<2x64xf32>
    %138 = tpu.matmul %135, %137, %cst_81 {dimension_numbers = #tpu.dot_dimension_numbers<[1], [0], [0], [1], [0, 0, 1, 1], [], []>} : vector<2x40xf32>, vector<40x64xf32>, vector<2x64xf32> -> vector<2x64xf32>
    %139 = arith.addf %134, %138 : vector<2x64xf32>
    %140 = vector.extract_strided_slice %13 {offsets = [50, 0], sizes = [2, 40], strides = [1, 1]} : vector<128x40xf32> to vector<2x40xf32>
    %c25 = arith.constant 25 : index
    %c0_82 = arith.constant 0 : index
    %c0_83 = arith.constant 0 : index
    %141 = vector.load %arg8[%c25, %c0_82, %c0_83] : memref<64x40x64xf32, #tpu.memory_space<vmem>>, vector<1x40x64xf32>
    %142 = vector.shape_cast %141 : vector<1x40x64xf32> to vector<40x64xf32>
    %cst_84 = arith.constant dense<0.000000e+00> : vector<2x64xf32>
    %143 = tpu.matmul %140, %142, %cst_84 {dimension_numbers = #tpu.dot_dimension_numbers<[1], [0], [0], [1], [0, 0, 1, 1], [], []>} : vector<2x40xf32>, vector<40x64xf32>, vector<2x64xf32> -> vector<2x64xf32>
    %144 = arith.addf %139, %143 : vector<2x64xf32>
    %145 = vector.extract_strided_slice %13 {offsets = [52, 0], sizes = [2, 40], strides = [1, 1]} : vector<128x40xf32> to vector<2x40xf32>
    %c26 = arith.constant 26 : index
    %c0_85 = arith.constant 0 : index
    %c0_86 = arith.constant 0 : index
    %146 = vector.load %arg8[%c26, %c0_85, %c0_86] : memref<64x40x64xf32, #tpu.memory_space<vmem>>, vector<1x40x64xf32>
    %147 = vector.shape_cast %146 : vector<1x40x64xf32> to vector<40x64xf32>
    %cst_87 = arith.constant dense<0.000000e+00> : vector<2x64xf32>
    %148 = tpu.matmul %145, %147, %cst_87 {dimension_numbers = #tpu.dot_dimension_numbers<[1], [0], [0], [1], [0, 0, 1, 1], [], []>} : vector<2x40xf32>, vector<40x64xf32>, vector<2x64xf32> -> vector<2x64xf32>
    %149 = arith.addf %144, %148 : vector<2x64xf32>
    %150 = vector.extract_strided_slice %13 {offsets = [54, 0], sizes = [2, 40], strides = [1, 1]} : vector<128x40xf32> to vector<2x40xf32>
    %c27 = arith.constant 27 : index
    %c0_88 = arith.constant 0 : index
    %c0_89 = arith.constant 0 : index
    %151 = vector.load %arg8[%c27, %c0_88, %c0_89] : memref<64x40x64xf32, #tpu.memory_space<vmem>>, vector<1x40x64xf32>
    %152 = vector.shape_cast %151 : vector<1x40x64xf32> to vector<40x64xf32>
    %cst_90 = arith.constant dense<0.000000e+00> : vector<2x64xf32>
    %153 = tpu.matmul %150, %152, %cst_90 {dimension_numbers = #tpu.dot_dimension_numbers<[1], [0], [0], [1], [0, 0, 1, 1], [], []>} : vector<2x40xf32>, vector<40x64xf32>, vector<2x64xf32> -> vector<2x64xf32>
    %154 = arith.addf %149, %153 : vector<2x64xf32>
    %155 = vector.extract_strided_slice %13 {offsets = [56, 0], sizes = [2, 40], strides = [1, 1]} : vector<128x40xf32> to vector<2x40xf32>
    %c28 = arith.constant 28 : index
    %c0_91 = arith.constant 0 : index
    %c0_92 = arith.constant 0 : index
    %156 = vector.load %arg8[%c28, %c0_91, %c0_92] : memref<64x40x64xf32, #tpu.memory_space<vmem>>, vector<1x40x64xf32>
    %157 = vector.shape_cast %156 : vector<1x40x64xf32> to vector<40x64xf32>
    %cst_93 = arith.constant dense<0.000000e+00> : vector<2x64xf32>
    %158 = tpu.matmul %155, %157, %cst_93 {dimension_numbers = #tpu.dot_dimension_numbers<[1], [0], [0], [1], [0, 0, 1, 1], [], []>} : vector<2x40xf32>, vector<40x64xf32>, vector<2x64xf32> -> vector<2x64xf32>
    %159 = arith.addf %154, %158 : vector<2x64xf32>
    %160 = vector.extract_strided_slice %13 {offsets = [58, 0], sizes = [2, 40], strides = [1, 1]} : vector<128x40xf32> to vector<2x40xf32>
    %c29 = arith.constant 29 : index
    %c0_94 = arith.constant 0 : index
    %c0_95 = arith.constant 0 : index
    %161 = vector.load %arg8[%c29, %c0_94, %c0_95] : memref<64x40x64xf32, #tpu.memory_space<vmem>>, vector<1x40x64xf32>
    %162 = vector.shape_cast %161 : vector<1x40x64xf32> to vector<40x64xf32>
    %cst_96 = arith.constant dense<0.000000e+00> : vector<2x64xf32>
    %163 = tpu.matmul %160, %162, %cst_96 {dimension_numbers = #tpu.dot_dimension_numbers<[1], [0], [0], [1], [0, 0, 1, 1], [], []>} : vector<2x40xf32>, vector<40x64xf32>, vector<2x64xf32> -> vector<2x64xf32>
    %164 = arith.addf %159, %163 : vector<2x64xf32>
    %165 = vector.extract_strided_slice %13 {offsets = [60, 0], sizes = [2, 40], strides = [1, 1]} : vector<128x40xf32> to vector<2x40xf32>
    %c30 = arith.constant 30 : index
    %c0_97 = arith.constant 0 : index
    %c0_98 = arith.constant 0 : index
    %166 = vector.load %arg8[%c30, %c0_97, %c0_98] : memref<64x40x64xf32, #tpu.memory_space<vmem>>, vector<1x40x64xf32>
    %167 = vector.shape_cast %166 : vector<1x40x64xf32> to vector<40x64xf32>
    %cst_99 = arith.constant dense<0.000000e+00> : vector<2x64xf32>
    %168 = tpu.matmul %165, %167, %cst_99 {dimension_numbers = #tpu.dot_dimension_numbers<[1], [0], [0], [1], [0, 0, 1, 1], [], []>} : vector<2x40xf32>, vector<40x64xf32>, vector<2x64xf32> -> vector<2x64xf32>
    %169 = arith.addf %164, %168 : vector<2x64xf32>
    %170 = vector.extract_strided_slice %13 {offsets = [62, 0], sizes = [2, 40], strides = [1, 1]} : vector<128x40xf32> to vector<2x40xf32>
    %c31 = arith.constant 31 : index
    %c0_100 = arith.constant 0 : index
    %c0_101 = arith.constant 0 : index
    %171 = vector.load %arg8[%c31, %c0_100, %c0_101] : memref<64x40x64xf32, #tpu.memory_space<vmem>>, vector<1x40x64xf32>
    %172 = vector.shape_cast %171 : vector<1x40x64xf32> to vector<40x64xf32>
    %cst_102 = arith.constant dense<0.000000e+00> : vector<2x64xf32>
    %173 = tpu.matmul %170, %172, %cst_102 {dimension_numbers = #tpu.dot_dimension_numbers<[1], [0], [0], [1], [0, 0, 1, 1], [], []>} : vector<2x40xf32>, vector<40x64xf32>, vector<2x64xf32> -> vector<2x64xf32>
    %174 = arith.addf %169, %173 : vector<2x64xf32>
    %175 = vector.extract_strided_slice %13 {offsets = [64, 0], sizes = [2, 40], strides = [1, 1]} : vector<128x40xf32> to vector<2x40xf32>
    %c32 = arith.constant 32 : index
    %c0_103 = arith.constant 0 : index
    %c0_104 = arith.constant 0 : index
    %176 = vector.load %arg8[%c32, %c0_103, %c0_104] : memref<64x40x64xf32, #tpu.memory_space<vmem>>, vector<1x40x64xf32>
    %177 = vector.shape_cast %176 : vector<1x40x64xf32> to vector<40x64xf32>
    %cst_105 = arith.constant dense<0.000000e+00> : vector<2x64xf32>
    %178 = tpu.matmul %175, %177, %cst_105 {dimension_numbers = #tpu.dot_dimension_numbers<[1], [0], [0], [1], [0, 0, 1, 1], [], []>} : vector<2x40xf32>, vector<40x64xf32>, vector<2x64xf32> -> vector<2x64xf32>
    %179 = arith.addf %174, %178 : vector<2x64xf32>
    %180 = vector.extract_strided_slice %13 {offsets = [66, 0], sizes = [2, 40], strides = [1, 1]} : vector<128x40xf32> to vector<2x40xf32>
    %c33 = arith.constant 33 : index
    %c0_106 = arith.constant 0 : index
    %c0_107 = arith.constant 0 : index
    %181 = vector.load %arg8[%c33, %c0_106, %c0_107] : memref<64x40x64xf32, #tpu.memory_space<vmem>>, vector<1x40x64xf32>
    %182 = vector.shape_cast %181 : vector<1x40x64xf32> to vector<40x64xf32>
    %cst_108 = arith.constant dense<0.000000e+00> : vector<2x64xf32>
    %183 = tpu.matmul %180, %182, %cst_108 {dimension_numbers = #tpu.dot_dimension_numbers<[1], [0], [0], [1], [0, 0, 1, 1], [], []>} : vector<2x40xf32>, vector<40x64xf32>, vector<2x64xf32> -> vector<2x64xf32>
    %184 = arith.addf %179, %183 : vector<2x64xf32>
    %185 = vector.extract_strided_slice %13 {offsets = [68, 0], sizes = [2, 40], strides = [1, 1]} : vector<128x40xf32> to vector<2x40xf32>
    %c34 = arith.constant 34 : index
    %c0_109 = arith.constant 0 : index
    %c0_110 = arith.constant 0 : index
    %186 = vector.load %arg8[%c34, %c0_109, %c0_110] : memref<64x40x64xf32, #tpu.memory_space<vmem>>, vector<1x40x64xf32>
    %187 = vector.shape_cast %186 : vector<1x40x64xf32> to vector<40x64xf32>
    %cst_111 = arith.constant dense<0.000000e+00> : vector<2x64xf32>
    %188 = tpu.matmul %185, %187, %cst_111 {dimension_numbers = #tpu.dot_dimension_numbers<[1], [0], [0], [1], [0, 0, 1, 1], [], []>} : vector<2x40xf32>, vector<40x64xf32>, vector<2x64xf32> -> vector<2x64xf32>
    %189 = arith.addf %184, %188 : vector<2x64xf32>
    %190 = vector.extract_strided_slice %13 {offsets = [70, 0], sizes = [2, 40], strides = [1, 1]} : vector<128x40xf32> to vector<2x40xf32>
    %c35 = arith.constant 35 : index
    %c0_112 = arith.constant 0 : index
    %c0_113 = arith.constant 0 : index
    %191 = vector.load %arg8[%c35, %c0_112, %c0_113] : memref<64x40x64xf32, #tpu.memory_space<vmem>>, vector<1x40x64xf32>
    %192 = vector.shape_cast %191 : vector<1x40x64xf32> to vector<40x64xf32>
    %cst_114 = arith.constant dense<0.000000e+00> : vector<2x64xf32>
    %193 = tpu.matmul %190, %192, %cst_114 {dimension_numbers = #tpu.dot_dimension_numbers<[1], [0], [0], [1], [0, 0, 1, 1], [], []>} : vector<2x40xf32>, vector<40x64xf32>, vector<2x64xf32> -> vector<2x64xf32>
    %194 = arith.addf %189, %193 : vector<2x64xf32>
    %195 = vector.extract_strided_slice %13 {offsets = [72, 0], sizes = [2, 40], strides = [1, 1]} : vector<128x40xf32> to vector<2x40xf32>
    %c36 = arith.constant 36 : index
    %c0_115 = arith.constant 0 : index
    %c0_116 = arith.constant 0 : index
    %196 = vector.load %arg8[%c36, %c0_115, %c0_116] : memref<64x40x64xf32, #tpu.memory_space<vmem>>, vector<1x40x64xf32>
    %197 = vector.shape_cast %196 : vector<1x40x64xf32> to vector<40x64xf32>
    %cst_117 = arith.constant dense<0.000000e+00> : vector<2x64xf32>
    %198 = tpu.matmul %195, %197, %cst_117 {dimension_numbers = #tpu.dot_dimension_numbers<[1], [0], [0], [1], [0, 0, 1, 1], [], []>} : vector<2x40xf32>, vector<40x64xf32>, vector<2x64xf32> -> vector<2x64xf32>
    %199 = arith.addf %194, %198 : vector<2x64xf32>
    %200 = vector.extract_strided_slice %13 {offsets = [74, 0], sizes = [2, 40], strides = [1, 1]} : vector<128x40xf32> to vector<2x40xf32>
    %c37 = arith.constant 37 : index
    %c0_118 = arith.constant 0 : index
    %c0_119 = arith.constant 0 : index
    %201 = vector.load %arg8[%c37, %c0_118, %c0_119] : memref<64x40x64xf32, #tpu.memory_space<vmem>>, vector<1x40x64xf32>
    %202 = vector.shape_cast %201 : vector<1x40x64xf32> to vector<40x64xf32>
    %cst_120 = arith.constant dense<0.000000e+00> : vector<2x64xf32>
    %203 = tpu.matmul %200, %202, %cst_120 {dimension_numbers = #tpu.dot_dimension_numbers<[1], [0], [0], [1], [0, 0, 1, 1], [], []>} : vector<2x40xf32>, vector<40x64xf32>, vector<2x64xf32> -> vector<2x64xf32>
    %204 = arith.addf %199, %203 : vector<2x64xf32>
    %205 = vector.extract_strided_slice %13 {offsets = [76, 0], sizes = [2, 40], strides = [1, 1]} : vector<128x40xf32> to vector<2x40xf32>
    %c38 = arith.constant 38 : index
    %c0_121 = arith.constant 0 : index
    %c0_122 = arith.constant 0 : index
    %206 = vector.load %arg8[%c38, %c0_121, %c0_122] : memref<64x40x64xf32, #tpu.memory_space<vmem>>, vector<1x40x64xf32>
    %207 = vector.shape_cast %206 : vector<1x40x64xf32> to vector<40x64xf32>
    %cst_123 = arith.constant dense<0.000000e+00> : vector<2x64xf32>
    %208 = tpu.matmul %205, %207, %cst_123 {dimension_numbers = #tpu.dot_dimension_numbers<[1], [0], [0], [1], [0, 0, 1, 1], [], []>} : vector<2x40xf32>, vector<40x64xf32>, vector<2x64xf32> -> vector<2x64xf32>
    %209 = arith.addf %204, %208 : vector<2x64xf32>
    %210 = vector.extract_strided_slice %13 {offsets = [78, 0], sizes = [2, 40], strides = [1, 1]} : vector<128x40xf32> to vector<2x40xf32>
    %c39 = arith.constant 39 : index
    %c0_124 = arith.constant 0 : index
    %c0_125 = arith.constant 0 : index
    %211 = vector.load %arg8[%c39, %c0_124, %c0_125] : memref<64x40x64xf32, #tpu.memory_space<vmem>>, vector<1x40x64xf32>
    %212 = vector.shape_cast %211 : vector<1x40x64xf32> to vector<40x64xf32>
    %cst_126 = arith.constant dense<0.000000e+00> : vector<2x64xf32>
    %213 = tpu.matmul %210, %212, %cst_126 {dimension_numbers = #tpu.dot_dimension_numbers<[1], [0], [0], [1], [0, 0, 1, 1], [], []>} : vector<2x40xf32>, vector<40x64xf32>, vector<2x64xf32> -> vector<2x64xf32>
    %214 = arith.addf %209, %213 : vector<2x64xf32>
    %215 = vector.extract_strided_slice %13 {offsets = [80, 0], sizes = [2, 40], strides = [1, 1]} : vector<128x40xf32> to vector<2x40xf32>
    %c40 = arith.constant 40 : index
    %c0_127 = arith.constant 0 : index
    %c0_128 = arith.constant 0 : index
    %216 = vector.load %arg8[%c40, %c0_127, %c0_128] : memref<64x40x64xf32, #tpu.memory_space<vmem>>, vector<1x40x64xf32>
    %217 = vector.shape_cast %216 : vector<1x40x64xf32> to vector<40x64xf32>
    %cst_129 = arith.constant dense<0.000000e+00> : vector<2x64xf32>
    %218 = tpu.matmul %215, %217, %cst_129 {dimension_numbers = #tpu.dot_dimension_numbers<[1], [0], [0], [1], [0, 0, 1, 1], [], []>} : vector<2x40xf32>, vector<40x64xf32>, vector<2x64xf32> -> vector<2x64xf32>
    %219 = arith.addf %214, %218 : vector<2x64xf32>
    %220 = vector.extract_strided_slice %13 {offsets = [82, 0], sizes = [2, 40], strides = [1, 1]} : vector<128x40xf32> to vector<2x40xf32>
    %c41 = arith.constant 41 : index
    %c0_130 = arith.constant 0 : index
    %c0_131 = arith.constant 0 : index
    %221 = vector.load %arg8[%c41, %c0_130, %c0_131] : memref<64x40x64xf32, #tpu.memory_space<vmem>>, vector<1x40x64xf32>
    %222 = vector.shape_cast %221 : vector<1x40x64xf32> to vector<40x64xf32>
    %cst_132 = arith.constant dense<0.000000e+00> : vector<2x64xf32>
    %223 = tpu.matmul %220, %222, %cst_132 {dimension_numbers = #tpu.dot_dimension_numbers<[1], [0], [0], [1], [0, 0, 1, 1], [], []>} : vector<2x40xf32>, vector<40x64xf32>, vector<2x64xf32> -> vector<2x64xf32>
    %224 = arith.addf %219, %223 : vector<2x64xf32>
    %225 = vector.extract_strided_slice %13 {offsets = [84, 0], sizes = [2, 40], strides = [1, 1]} : vector<128x40xf32> to vector<2x40xf32>
    %c42 = arith.constant 42 : index
    %c0_133 = arith.constant 0 : index
    %c0_134 = arith.constant 0 : index
    %226 = vector.load %arg8[%c42, %c0_133, %c0_134] : memref<64x40x64xf32, #tpu.memory_space<vmem>>, vector<1x40x64xf32>
    %227 = vector.shape_cast %226 : vector<1x40x64xf32> to vector<40x64xf32>
    %cst_135 = arith.constant dense<0.000000e+00> : vector<2x64xf32>
    %228 = tpu.matmul %225, %227, %cst_135 {dimension_numbers = #tpu.dot_dimension_numbers<[1], [0], [0], [1], [0, 0, 1, 1], [], []>} : vector<2x40xf32>, vector<40x64xf32>, vector<2x64xf32> -> vector<2x64xf32>
    %229 = arith.addf %224, %228 : vector<2x64xf32>
    %230 = vector.extract_strided_slice %13 {offsets = [86, 0], sizes = [2, 40], strides = [1, 1]} : vector<128x40xf32> to vector<2x40xf32>
    %c43 = arith.constant 43 : index
    %c0_136 = arith.constant 0 : index
    %c0_137 = arith.constant 0 : index
    %231 = vector.load %arg8[%c43, %c0_136, %c0_137] : memref<64x40x64xf32, #tpu.memory_space<vmem>>, vector<1x40x64xf32>
    %232 = vector.shape_cast %231 : vector<1x40x64xf32> to vector<40x64xf32>
    %cst_138 = arith.constant dense<0.000000e+00> : vector<2x64xf32>
    %233 = tpu.matmul %230, %232, %cst_138 {dimension_numbers = #tpu.dot_dimension_numbers<[1], [0], [0], [1], [0, 0, 1, 1], [], []>} : vector<2x40xf32>, vector<40x64xf32>, vector<2x64xf32> -> vector<2x64xf32>
    %234 = arith.addf %229, %233 : vector<2x64xf32>
    %235 = vector.extract_strided_slice %13 {offsets = [88, 0], sizes = [2, 40], strides = [1, 1]} : vector<128x40xf32> to vector<2x40xf32>
    %c44 = arith.constant 44 : index
    %c0_139 = arith.constant 0 : index
    %c0_140 = arith.constant 0 : index
    %236 = vector.load %arg8[%c44, %c0_139, %c0_140] : memref<64x40x64xf32, #tpu.memory_space<vmem>>, vector<1x40x64xf32>
    %237 = vector.shape_cast %236 : vector<1x40x64xf32> to vector<40x64xf32>
    %cst_141 = arith.constant dense<0.000000e+00> : vector<2x64xf32>
    %238 = tpu.matmul %235, %237, %cst_141 {dimension_numbers = #tpu.dot_dimension_numbers<[1], [0], [0], [1], [0, 0, 1, 1], [], []>} : vector<2x40xf32>, vector<40x64xf32>, vector<2x64xf32> -> vector<2x64xf32>
    %239 = arith.addf %234, %238 : vector<2x64xf32>
    %240 = vector.extract_strided_slice %13 {offsets = [90, 0], sizes = [2, 40], strides = [1, 1]} : vector<128x40xf32> to vector<2x40xf32>
    %c45 = arith.constant 45 : index
    %c0_142 = arith.constant 0 : index
    %c0_143 = arith.constant 0 : index
    %241 = vector.load %arg8[%c45, %c0_142, %c0_143] : memref<64x40x64xf32, #tpu.memory_space<vmem>>, vector<1x40x64xf32>
    %242 = vector.shape_cast %241 : vector<1x40x64xf32> to vector<40x64xf32>
    %cst_144 = arith.constant dense<0.000000e+00> : vector<2x64xf32>
    %243 = tpu.matmul %240, %242, %cst_144 {dimension_numbers = #tpu.dot_dimension_numbers<[1], [0], [0], [1], [0, 0, 1, 1], [], []>} : vector<2x40xf32>, vector<40x64xf32>, vector<2x64xf32> -> vector<2x64xf32>
    %244 = arith.addf %239, %243 : vector<2x64xf32>
    %245 = vector.extract_strided_slice %13 {offsets = [92, 0], sizes = [2, 40], strides = [1, 1]} : vector<128x40xf32> to vector<2x40xf32>
    %c46 = arith.constant 46 : index
    %c0_145 = arith.constant 0 : index
    %c0_146 = arith.constant 0 : index
    %246 = vector.load %arg8[%c46, %c0_145, %c0_146] : memref<64x40x64xf32, #tpu.memory_space<vmem>>, vector<1x40x64xf32>
    %247 = vector.shape_cast %246 : vector<1x40x64xf32> to vector<40x64xf32>
    %cst_147 = arith.constant dense<0.000000e+00> : vector<2x64xf32>
    %248 = tpu.matmul %245, %247, %cst_147 {dimension_numbers = #tpu.dot_dimension_numbers<[1], [0], [0], [1], [0, 0, 1, 1], [], []>} : vector<2x40xf32>, vector<40x64xf32>, vector<2x64xf32> -> vector<2x64xf32>
    %249 = arith.addf %244, %248 : vector<2x64xf32>
    %250 = vector.extract_strided_slice %13 {offsets = [94, 0], sizes = [2, 40], strides = [1, 1]} : vector<128x40xf32> to vector<2x40xf32>
    %c47 = arith.constant 47 : index
    %c0_148 = arith.constant 0 : index
    %c0_149 = arith.constant 0 : index
    %251 = vector.load %arg8[%c47, %c0_148, %c0_149] : memref<64x40x64xf32, #tpu.memory_space<vmem>>, vector<1x40x64xf32>
    %252 = vector.shape_cast %251 : vector<1x40x64xf32> to vector<40x64xf32>
    %cst_150 = arith.constant dense<0.000000e+00> : vector<2x64xf32>
    %253 = tpu.matmul %250, %252, %cst_150 {dimension_numbers = #tpu.dot_dimension_numbers<[1], [0], [0], [1], [0, 0, 1, 1], [], []>} : vector<2x40xf32>, vector<40x64xf32>, vector<2x64xf32> -> vector<2x64xf32>
    %254 = arith.addf %249, %253 : vector<2x64xf32>
    %255 = vector.extract_strided_slice %13 {offsets = [96, 0], sizes = [2, 40], strides = [1, 1]} : vector<128x40xf32> to vector<2x40xf32>
    %c48 = arith.constant 48 : index
    %c0_151 = arith.constant 0 : index
    %c0_152 = arith.constant 0 : index
    %256 = vector.load %arg8[%c48, %c0_151, %c0_152] : memref<64x40x64xf32, #tpu.memory_space<vmem>>, vector<1x40x64xf32>
    %257 = vector.shape_cast %256 : vector<1x40x64xf32> to vector<40x64xf32>
    %cst_153 = arith.constant dense<0.000000e+00> : vector<2x64xf32>
    %258 = tpu.matmul %255, %257, %cst_153 {dimension_numbers = #tpu.dot_dimension_numbers<[1], [0], [0], [1], [0, 0, 1, 1], [], []>} : vector<2x40xf32>, vector<40x64xf32>, vector<2x64xf32> -> vector<2x64xf32>
    %259 = arith.addf %254, %258 : vector<2x64xf32>
    %260 = vector.extract_strided_slice %13 {offsets = [98, 0], sizes = [2, 40], strides = [1, 1]} : vector<128x40xf32> to vector<2x40xf32>
    %c49 = arith.constant 49 : index
    %c0_154 = arith.constant 0 : index
    %c0_155 = arith.constant 0 : index
    %261 = vector.load %arg8[%c49, %c0_154, %c0_155] : memref<64x40x64xf32, #tpu.memory_space<vmem>>, vector<1x40x64xf32>
    %262 = vector.shape_cast %261 : vector<1x40x64xf32> to vector<40x64xf32>
    %cst_156 = arith.constant dense<0.000000e+00> : vector<2x64xf32>
    %263 = tpu.matmul %260, %262, %cst_156 {dimension_numbers = #tpu.dot_dimension_numbers<[1], [0], [0], [1], [0, 0, 1, 1], [], []>} : vector<2x40xf32>, vector<40x64xf32>, vector<2x64xf32> -> vector<2x64xf32>
    %264 = arith.addf %259, %263 : vector<2x64xf32>
    %265 = vector.extract_strided_slice %13 {offsets = [100, 0], sizes = [2, 40], strides = [1, 1]} : vector<128x40xf32> to vector<2x40xf32>
    %c50 = arith.constant 50 : index
    %c0_157 = arith.constant 0 : index
    %c0_158 = arith.constant 0 : index
    %266 = vector.load %arg8[%c50, %c0_157, %c0_158] : memref<64x40x64xf32, #tpu.memory_space<vmem>>, vector<1x40x64xf32>
    %267 = vector.shape_cast %266 : vector<1x40x64xf32> to vector<40x64xf32>
    %cst_159 = arith.constant dense<0.000000e+00> : vector<2x64xf32>
    %268 = tpu.matmul %265, %267, %cst_159 {dimension_numbers = #tpu.dot_dimension_numbers<[1], [0], [0], [1], [0, 0, 1, 1], [], []>} : vector<2x40xf32>, vector<40x64xf32>, vector<2x64xf32> -> vector<2x64xf32>
    %269 = arith.addf %264, %268 : vector<2x64xf32>
    %270 = vector.extract_strided_slice %13 {offsets = [102, 0], sizes = [2, 40], strides = [1, 1]} : vector<128x40xf32> to vector<2x40xf32>
    %c51 = arith.constant 51 : index
    %c0_160 = arith.constant 0 : index
    %c0_161 = arith.constant 0 : index
    %271 = vector.load %arg8[%c51, %c0_160, %c0_161] : memref<64x40x64xf32, #tpu.memory_space<vmem>>, vector<1x40x64xf32>
    %272 = vector.shape_cast %271 : vector<1x40x64xf32> to vector<40x64xf32>
    %cst_162 = arith.constant dense<0.000000e+00> : vector<2x64xf32>
    %273 = tpu.matmul %270, %272, %cst_162 {dimension_numbers = #tpu.dot_dimension_numbers<[1], [0], [0], [1], [0, 0, 1, 1], [], []>} : vector<2x40xf32>, vector<40x64xf32>, vector<2x64xf32> -> vector<2x64xf32>
    %274 = arith.addf %269, %273 : vector<2x64xf32>
    %275 = vector.extract_strided_slice %13 {offsets = [104, 0], sizes = [2, 40], strides = [1, 1]} : vector<128x40xf32> to vector<2x40xf32>
    %c52 = arith.constant 52 : index
    %c0_163 = arith.constant 0 : index
    %c0_164 = arith.constant 0 : index
    %276 = vector.load %arg8[%c52, %c0_163, %c0_164] : memref<64x40x64xf32, #tpu.memory_space<vmem>>, vector<1x40x64xf32>
    %277 = vector.shape_cast %276 : vector<1x40x64xf32> to vector<40x64xf32>
    %cst_165 = arith.constant dense<0.000000e+00> : vector<2x64xf32>
    %278 = tpu.matmul %275, %277, %cst_165 {dimension_numbers = #tpu.dot_dimension_numbers<[1], [0], [0], [1], [0, 0, 1, 1], [], []>} : vector<2x40xf32>, vector<40x64xf32>, vector<2x64xf32> -> vector<2x64xf32>
    %279 = arith.addf %274, %278 : vector<2x64xf32>
    %280 = vector.extract_strided_slice %13 {offsets = [106, 0], sizes = [2, 40], strides = [1, 1]} : vector<128x40xf32> to vector<2x40xf32>
    %c53 = arith.constant 53 : index
    %c0_166 = arith.constant 0 : index
    %c0_167 = arith.constant 0 : index
    %281 = vector.load %arg8[%c53, %c0_166, %c0_167] : memref<64x40x64xf32, #tpu.memory_space<vmem>>, vector<1x40x64xf32>
    %282 = vector.shape_cast %281 : vector<1x40x64xf32> to vector<40x64xf32>
    %cst_168 = arith.constant dense<0.000000e+00> : vector<2x64xf32>
    %283 = tpu.matmul %280, %282, %cst_168 {dimension_numbers = #tpu.dot_dimension_numbers<[1], [0], [0], [1], [0, 0, 1, 1], [], []>} : vector<2x40xf32>, vector<40x64xf32>, vector<2x64xf32> -> vector<2x64xf32>
    %284 = arith.addf %279, %283 : vector<2x64xf32>
    %285 = vector.extract_strided_slice %13 {offsets = [108, 0], sizes = [2, 40], strides = [1, 1]} : vector<128x40xf32> to vector<2x40xf32>
    %c54 = arith.constant 54 : index
    %c0_169 = arith.constant 0 : index
    %c0_170 = arith.constant 0 : index
    %286 = vector.load %arg8[%c54, %c0_169, %c0_170] : memref<64x40x64xf32, #tpu.memory_space<vmem>>, vector<1x40x64xf32>
    %287 = vector.shape_cast %286 : vector<1x40x64xf32> to vector<40x64xf32>
    %cst_171 = arith.constant dense<0.000000e+00> : vector<2x64xf32>
    %288 = tpu.matmul %285, %287, %cst_171 {dimension_numbers = #tpu.dot_dimension_numbers<[1], [0], [0], [1], [0, 0, 1, 1], [], []>} : vector<2x40xf32>, vector<40x64xf32>, vector<2x64xf32> -> vector<2x64xf32>
    %289 = arith.addf %284, %288 : vector<2x64xf32>
    %290 = vector.extract_strided_slice %13 {offsets = [110, 0], sizes = [2, 40], strides = [1, 1]} : vector<128x40xf32> to vector<2x40xf32>
    %c55 = arith.constant 55 : index
    %c0_172 = arith.constant 0 : index
    %c0_173 = arith.constant 0 : index
    %291 = vector.load %arg8[%c55, %c0_172, %c0_173] : memref<64x40x64xf32, #tpu.memory_space<vmem>>, vector<1x40x64xf32>
    %292 = vector.shape_cast %291 : vector<1x40x64xf32> to vector<40x64xf32>
    %cst_174 = arith.constant dense<0.000000e+00> : vector<2x64xf32>
    %293 = tpu.matmul %290, %292, %cst_174 {dimension_numbers = #tpu.dot_dimension_numbers<[1], [0], [0], [1], [0, 0, 1, 1], [], []>} : vector<2x40xf32>, vector<40x64xf32>, vector<2x64xf32> -> vector<2x64xf32>
    %294 = arith.addf %289, %293 : vector<2x64xf32>
    %295 = vector.extract_strided_slice %13 {offsets = [112, 0], sizes = [2, 40], strides = [1, 1]} : vector<128x40xf32> to vector<2x40xf32>
    %c56 = arith.constant 56 : index
    %c0_175 = arith.constant 0 : index
    %c0_176 = arith.constant 0 : index
    %296 = vector.load %arg8[%c56, %c0_175, %c0_176] : memref<64x40x64xf32, #tpu.memory_space<vmem>>, vector<1x40x64xf32>
    %297 = vector.shape_cast %296 : vector<1x40x64xf32> to vector<40x64xf32>
    %cst_177 = arith.constant dense<0.000000e+00> : vector<2x64xf32>
    %298 = tpu.matmul %295, %297, %cst_177 {dimension_numbers = #tpu.dot_dimension_numbers<[1], [0], [0], [1], [0, 0, 1, 1], [], []>} : vector<2x40xf32>, vector<40x64xf32>, vector<2x64xf32> -> vector<2x64xf32>
    %299 = arith.addf %294, %298 : vector<2x64xf32>
    %300 = vector.extract_strided_slice %13 {offsets = [114, 0], sizes = [2, 40], strides = [1, 1]} : vector<128x40xf32> to vector<2x40xf32>
    %c57 = arith.constant 57 : index
    %c0_178 = arith.constant 0 : index
    %c0_179 = arith.constant 0 : index
    %301 = vector.load %arg8[%c57, %c0_178, %c0_179] : memref<64x40x64xf32, #tpu.memory_space<vmem>>, vector<1x40x64xf32>
    %302 = vector.shape_cast %301 : vector<1x40x64xf32> to vector<40x64xf32>
    %cst_180 = arith.constant dense<0.000000e+00> : vector<2x64xf32>
    %303 = tpu.matmul %300, %302, %cst_180 {dimension_numbers = #tpu.dot_dimension_numbers<[1], [0], [0], [1], [0, 0, 1, 1], [], []>} : vector<2x40xf32>, vector<40x64xf32>, vector<2x64xf32> -> vector<2x64xf32>
    %304 = arith.addf %299, %303 : vector<2x64xf32>
    %305 = vector.extract_strided_slice %13 {offsets = [116, 0], sizes = [2, 40], strides = [1, 1]} : vector<128x40xf32> to vector<2x40xf32>
    %c58 = arith.constant 58 : index
    %c0_181 = arith.constant 0 : index
    %c0_182 = arith.constant 0 : index
    %306 = vector.load %arg8[%c58, %c0_181, %c0_182] : memref<64x40x64xf32, #tpu.memory_space<vmem>>, vector<1x40x64xf32>
    %307 = vector.shape_cast %306 : vector<1x40x64xf32> to vector<40x64xf32>
    %cst_183 = arith.constant dense<0.000000e+00> : vector<2x64xf32>
    %308 = tpu.matmul %305, %307, %cst_183 {dimension_numbers = #tpu.dot_dimension_numbers<[1], [0], [0], [1], [0, 0, 1, 1], [], []>} : vector<2x40xf32>, vector<40x64xf32>, vector<2x64xf32> -> vector<2x64xf32>
    %309 = arith.addf %304, %308 : vector<2x64xf32>
    %310 = vector.extract_strided_slice %13 {offsets = [118, 0], sizes = [2, 40], strides = [1, 1]} : vector<128x40xf32> to vector<2x40xf32>
    %c59 = arith.constant 59 : index
    %c0_184 = arith.constant 0 : index
    %c0_185 = arith.constant 0 : index
    %311 = vector.load %arg8[%c59, %c0_184, %c0_185] : memref<64x40x64xf32, #tpu.memory_space<vmem>>, vector<1x40x64xf32>
    %312 = vector.shape_cast %311 : vector<1x40x64xf32> to vector<40x64xf32>
    %cst_186 = arith.constant dense<0.000000e+00> : vector<2x64xf32>
    %313 = tpu.matmul %310, %312, %cst_186 {dimension_numbers = #tpu.dot_dimension_numbers<[1], [0], [0], [1], [0, 0, 1, 1], [], []>} : vector<2x40xf32>, vector<40x64xf32>, vector<2x64xf32> -> vector<2x64xf32>
    %314 = arith.addf %309, %313 : vector<2x64xf32>
    %315 = vector.extract_strided_slice %13 {offsets = [120, 0], sizes = [2, 40], strides = [1, 1]} : vector<128x40xf32> to vector<2x40xf32>
    %c60 = arith.constant 60 : index
    %c0_187 = arith.constant 0 : index
    %c0_188 = arith.constant 0 : index
    %316 = vector.load %arg8[%c60, %c0_187, %c0_188] : memref<64x40x64xf32, #tpu.memory_space<vmem>>, vector<1x40x64xf32>
    %317 = vector.shape_cast %316 : vector<1x40x64xf32> to vector<40x64xf32>
    %cst_189 = arith.constant dense<0.000000e+00> : vector<2x64xf32>
    %318 = tpu.matmul %315, %317, %cst_189 {dimension_numbers = #tpu.dot_dimension_numbers<[1], [0], [0], [1], [0, 0, 1, 1], [], []>} : vector<2x40xf32>, vector<40x64xf32>, vector<2x64xf32> -> vector<2x64xf32>
    %319 = arith.addf %314, %318 : vector<2x64xf32>
    %320 = vector.extract_strided_slice %13 {offsets = [122, 0], sizes = [2, 40], strides = [1, 1]} : vector<128x40xf32> to vector<2x40xf32>
    %c61 = arith.constant 61 : index
    %c0_190 = arith.constant 0 : index
    %c0_191 = arith.constant 0 : index
    %321 = vector.load %arg8[%c61, %c0_190, %c0_191] : memref<64x40x64xf32, #tpu.memory_space<vmem>>, vector<1x40x64xf32>
    %322 = vector.shape_cast %321 : vector<1x40x64xf32> to vector<40x64xf32>
    %cst_192 = arith.constant dense<0.000000e+00> : vector<2x64xf32>
    %323 = tpu.matmul %320, %322, %cst_192 {dimension_numbers = #tpu.dot_dimension_numbers<[1], [0], [0], [1], [0, 0, 1, 1], [], []>} : vector<2x40xf32>, vector<40x64xf32>, vector<2x64xf32> -> vector<2x64xf32>
    %324 = arith.addf %319, %323 : vector<2x64xf32>
    %325 = vector.extract_strided_slice %13 {offsets = [124, 0], sizes = [2, 40], strides = [1, 1]} : vector<128x40xf32> to vector<2x40xf32>
    %c62 = arith.constant 62 : index
    %c0_193 = arith.constant 0 : index
    %c0_194 = arith.constant 0 : index
    %326 = vector.load %arg8[%c62, %c0_193, %c0_194] : memref<64x40x64xf32, #tpu.memory_space<vmem>>, vector<1x40x64xf32>
    %327 = vector.shape_cast %326 : vector<1x40x64xf32> to vector<40x64xf32>
    %cst_195 = arith.constant dense<0.000000e+00> : vector<2x64xf32>
    %328 = tpu.matmul %325, %327, %cst_195 {dimension_numbers = #tpu.dot_dimension_numbers<[1], [0], [0], [1], [0, 0, 1, 1], [], []>} : vector<2x40xf32>, vector<40x64xf32>, vector<2x64xf32> -> vector<2x64xf32>
    %329 = arith.addf %324, %328 : vector<2x64xf32>
    %330 = vector.extract_strided_slice %13 {offsets = [126, 0], sizes = [2, 40], strides = [1, 1]} : vector<128x40xf32> to vector<2x40xf32>
    %c63 = arith.constant 63 : index
    %c0_196 = arith.constant 0 : index
    %c0_197 = arith.constant 0 : index
    %331 = vector.load %arg8[%c63, %c0_196, %c0_197] : memref<64x40x64xf32, #tpu.memory_space<vmem>>, vector<1x40x64xf32>
    %332 = vector.shape_cast %331 : vector<1x40x64xf32> to vector<40x64xf32>
    %cst_198 = arith.constant dense<0.000000e+00> : vector<2x64xf32>
    %333 = tpu.matmul %330, %332, %cst_198 {dimension_numbers = #tpu.dot_dimension_numbers<[1], [0], [0], [1], [0, 0, 1, 1], [], []>} : vector<2x40xf32>, vector<40x64xf32>, vector<2x64xf32> -> vector<2x64xf32>
    %334 = arith.addf %329, %333 : vector<2x64xf32>
    %c0_199 = arith.constant 0 : index
    %c0_200 = arith.constant 0 : index
    %335 = vector.load %arg4[%c0_199, %c0_200] : memref<1x64xf32, #tpu.memory_space<vmem>>, vector<1x64xf32>
    %336 = vector.broadcast %335 : vector<1x64xf32> to vector<2x64xf32>
    %337 = arith.addf %334, %336 : vector<2x64xf32>
    %338 = math.tanh %337 : vector<2x64xf32>
    %c0_201 = arith.constant 0 : index
    %c0_202 = arith.constant 0 : index
    %339 = vector.load %arg5[%c0_201, %c0_202] : memref<64x10xf32, #tpu.memory_space<vmem>>, vector<64x10xf32>
    %cst_203 = arith.constant dense<0.000000e+00> : vector<2x10xf32>
    %340 = tpu.matmul %338, %339, %cst_203 {dimension_numbers = #tpu.dot_dimension_numbers<[1], [0], [0], [1], [0, 0, 1, 1], [], []>} : vector<2x64xf32>, vector<64x10xf32>, vector<2x10xf32> -> vector<2x10xf32>
    %c0_204 = arith.constant 0 : index
    %c0_205 = arith.constant 0 : index
    %341 = vector.load %arg6[%c0_204, %c0_205] : memref<1x10xf32, #tpu.memory_space<vmem>>, vector<1x10xf32>
    %342 = vector.broadcast %341 : vector<1x10xf32> to vector<2x10xf32>
    %343 = arith.addf %340, %342 : vector<2x10xf32>
    %c0_206 = arith.constant 0 : index
    %c0_207 = arith.constant 0 : index
    %344 = vector.load %arg7[%c0_206, %c0_207] : memref<2x10xf32, #tpu.memory_space<vmem>>, vector<2x10xf32>
    tpu.vector_store %arg7[%c0_206, %c0_207], %343 {strides = array<i32>} : memref<2x10xf32, #tpu.memory_space<vmem>>, vector<2x10xf32>,
    return
  }
}

</mosaic_0001>

<bundles_post_ra>
// kernel: convnet_forward.1
= control target key start
LH: loop header
LB: loop body
LE: loop exit
PB: predicated region body
PF: predicated region fallthrough
CT: control target
= control target key end

     0   :  { %12 = vsyncpa [#allocation5], 0  ;;  %s11355_s0 = inlined_call_operand.vmem [shape: f32[512,12], index: 0, kind: input, shape index: {}]   ;;  %s11356_s1 = inlined_call_operand.vmem [shape: f32[12,40], index: 1, kind: input, shape index: {}]   ;;  %s11357_s2 = inlined_call_operand.vmem [shape: f32[1,40], index: 2, kind: input, shape index: {}]   ;;  %s11358_s3 = inlined_call_operand.vmem [shape: f32[64,40,64], index: 3, kind: input, shape index: {}]   ;;  %s11359_s4 = inlined_call_operand.vmem [shape: f32[1,64], index: 4, kind: input, shape index: {}]   ;;  %s11360_s5 = inlined_call_operand.vmem [shape: f32[64,10], index: 5, kind: input, shape index: {}]   ;;  %s11361_s6 = inlined_call_operand.vmem [shape: f32[1,10], index: 6, kind: input, shape index: {}]   ;;  %s11362_s7 = inlined_call_operand.hbm [shape: f32[2,10], index: 7, kind: output, shape index: {}]  }
   0x1   :  { %v8342_v0 = vld [vmem:[%s11358_s3] sm:$0xff]  ;;  %v8347_v1 = vld [vmem:[%s11358_s3 + $0x8] sm:$0xff]  ;;  %v8352_v2 = vld [vmem:[%s11358_s3 + $0x10] sm:$0xff] }
   0x2   :  { %11363 = vst [vmem:[#allocation9_spill] sm:$0xff] %v8342_v0  ;;  %11364 = vst [vmem:[#allocation10_spill] sm:$0xff] %v8347_v1  ;;  %v8357_v3 = vld [vmem:[%s11358_s3 + $0x18] sm:$0xff]  ;;  %v8362_v4 = vld [vmem:[%s11358_s3 + $0x20] sm:$0xff] }
   0x3   :  { %11365 = vst [vmem:[#allocation11_spill] sm:$0xff] %v8352_v2  ;;  %v8367_v5 = vld [vmem:[%s11358_s3 + $0x28] sm:$0xff]  ;;  %v8372_v6 = vld [vmem:[%s11358_s3 + $0x30] sm:$0xff]  ;;  %v8377_v7 = vld [vmem:[%s11358_s3 + $0x38] sm:$0xff] }
   0x4   :  { %11366 = vst [vmem:[#allocation12_spill] sm:$0xff] %v8367_v5  ;;  %11367 = vst [vmem:[#allocation13_spill] sm:$0xff] %v8372_v6  ;;  %v8382_v8 = vld [vmem:[%s11358_s3 + $0x40] sm:$0xff]  ;;  %v8387_v9 = vld [vmem:[%s11358_s3 + $0x48] sm:$0xff] }
   0x5   :  { %11368 = vst [vmem:[#allocation14_spill] sm:$0xff] %v8377_v7  ;;  %v8392_v10 = vld [vmem:[%s11358_s3 + $0x50] sm:$0xff]  ;;  %v8397_v11 = vld [vmem:[%s11358_s3 + $0x58] sm:$0xff]  ;;  %v8402_v12 = vld [vmem:[%s11358_s3 + $0x60] sm:$0xff] }
   0x6   :  { %11369 = vst [vmem:[#allocation15_spill] sm:$0xff] %v8392_v10  ;;  %11370 = vst [vmem:[#allocation16_spill] sm:$0xff] %v8397_v11  ;;  %v8407_v13 = vld [vmem:[%s11358_s3 + $0x68] sm:$0xff]  ;;  %v8412_v14 = vld [vmem:[%s11358_s3 + $0x70] sm:$0xff] }
   0x7   :  { %11371 = vst [vmem:[#allocation17_spill] sm:$0xff] %v8402_v12  ;;  %11372 = vst [vmem:[#allocation18_spill] sm:$0xff] %v8407_v13  ;;  %v8417_v15 = vld [vmem:[%s11358_s3 + $0x78] sm:$0xff]  ;;  %v8422_v16 = vld [vmem:[%s11358_s3 + $0x80] sm:$0xff] }
   0x8   :  { %11373 = vst [vmem:[#allocation19_spill] sm:$0xff] %v8412_v14  ;;  %11374 = vst [vmem:[#allocation20_spill] sm:$0xff] %v8417_v15  ;;  %v8427_v17 = vld [vmem:[%s11358_s3 + $0x88] sm:$0xff]  ;;  %v8432_v18 = vld [vmem:[%s11358_s3 + $0x90] sm:$0xff] }
   0x9   :  { %11375 = vst [vmem:[#allocation21_spill] sm:$0xff] %v8422_v16  ;;  %11376 = vst [vmem:[#allocation22_spill] sm:$0xff] %v8427_v17  ;;  %v8437_v19 = vld [vmem:[%s11358_s3 + $0x98] sm:$0xff]  ;;  %v8442_v20 = vld [vmem:[%s11358_s3 + $0xa0] sm:$0xff] }
   0xa   :  { %11377 = vst [vmem:[#allocation23_spill] sm:$0xff] %v8432_v18  ;;  %11378 = vst [vmem:[#allocation24_spill] sm:$0xff] %v8437_v19  ;;  %v8447_v21 = vld [vmem:[%s11358_s3 + $0xa8] sm:$0xff]  ;;  %v8452_v22 = vld [vmem:[%s11358_s3 + $0xb0] sm:$0xff] }
   0xb   :  { %11379 = vst [vmem:[#allocation25_spill] sm:$0xff] %v8442_v20  ;;  %11380 = vst [vmem:[#allocation26_spill] sm:$0xff] %v8447_v21  ;;  %v8457_v23 = vld [vmem:[%s11358_s3 + $0xb8] sm:$0xff]  ;;  %v8462_v24 = vld [vmem:[%s11358_s3 + $0xc0] sm:$0xff] }
   0xc   :  { %11381 = vst [vmem:[#allocation27_spill] sm:$0xff] %v8452_v22  ;;  %11382 = vst [vmem:[#allocation28_spill] sm:$0xff] %v8457_v23  ;;  %v8467_v25 = vld [vmem:[%s11358_s3 + $0xc8] sm:$0xff]  ;;  %v8472_v26 = vld [vmem:[%s11358_s3 + $0xd0] sm:$0xff] }
   0xd   :  { %11383 = vst [vmem:[#allocation29_spill] sm:$0xff] %v8462_v24  ;;  %11384 = vst [vmem:[#allocation30_spill] sm:$0xff] %v8467_v25  ;;  %v8477_v27 = vld [vmem:[%s11358_s3 + $0xd8] sm:$0xff]  ;;  %v8482_v28 = vld [vmem:[%s11358_s3 + $0xe0] sm:$0xff] }
   0xe   :  { %11385 = vst [vmem:[#allocation31_spill] sm:$0xff] %v8472_v26  ;;  %11386 = vst [vmem:[#allocation32_spill] sm:$0xff] %v8477_v27  ;;  %v8487_v29 = vld [vmem:[%s11358_s3 + $0xe8] sm:$0xff]  ;;  %v8492_v30 = vld [vmem:[%s11358_s3 + $0xf0] sm:$0xff] }
   0xf   :  { %11387 = vst [vmem:[#allocation33_spill] sm:$0xff] %v8482_v28  ;;  %11388 = vst [vmem:[#allocation34_spill] sm:$0xff] %v8487_v29  ;;  %v8497_v31 = vld [vmem:[%s11358_s3 + $0xf8] sm:$0xff]  ;;  %v8502_v32 = vld [vmem:[%s11358_s3 + $0x100] sm:$0xff] }
  0x10   :  { %11389 = vst [vmem:[#allocation35_spill] sm:$0xff] %v8492_v30  ;;  %11390 = vst [vmem:[#allocation36_spill] sm:$0xff] %v8497_v31  ;;  %v8507_v33 = vld [vmem:[%s11358_s3 + $0x108] sm:$0xff]  ;;  %v8512_v34 = vld [vmem:[%s11358_s3 + $0x110] sm:$0xff] }
  0x11   :  { %11391 = vst [vmem:[#allocation37_spill] sm:$0xff] %v8502_v32  ;;  %11392 = vst [vmem:[#allocation38_spill] sm:$0xff] %v8507_v33  ;;  %v8517_v35 = vld [vmem:[%s11358_s3 + $0x118] sm:$0xff]  ;;  %v8522_v36 = vld [vmem:[%s11358_s3 + $0x120] sm:$0xff] }
  0x12   :  { %11393 = vst [vmem:[#allocation39_spill] sm:$0xff] %v8512_v34  ;;  %11394 = vst [vmem:[#allocation40_spill] sm:$0xff] %v8517_v35  ;;  %v8527_v37 = vld [vmem:[%s11358_s3 + $0x128] sm:$0xff]  ;;  %v8532_v38 = vld [vmem:[%s11358_s3 + $0x130] sm:$0xff] }
  0x13   :  { %11395 = vst [vmem:[#allocation41_spill] sm:$0xff] %v8522_v36  ;;  %11396 = vst [vmem:[#allocation42_spill] sm:$0xff] %v8527_v37  ;;  %v8537_v39 = vld [vmem:[%s11358_s3 + $0x138] sm:$0xff]  ;;  %v8542_v40 = vld [vmem:[%s11358_s3 + $0x140] sm:$0xff] }
  0x14   :  { %11397 = vst [vmem:[#allocation43_spill] sm:$0xff] %v8532_v38  ;;  %11398 = vst [vmem:[#allocation44_spill] sm:$0xff] %v8537_v39  ;;  %v8547_v41 = vld [vmem:[%s11358_s3 + $0x148] sm:$0xff]  ;;  %v8552_v42 = vld [vmem:[%s11358_s3 + $0x150] sm:$0xff] }
  0x15   :  { %11399 = vst [vmem:[#allocation45_spill] sm:$0xff] %v8542_v40  ;;  %11400 = vst [vmem:[#allocation46_spill] sm:$0xff] %v8547_v41  ;;  %v8557_v43 = vld [vmem:[%s11358_s3 + $0x158] sm:$0xff]  ;;  %v8562_v44 = vld [vmem:[%s11358_s3 + $0x160] sm:$0xff] }
  0x16   :  { %11401 = vst [vmem:[#allocation47_spill] sm:$0xff] %v8552_v42  ;;  %11402 = vst [vmem:[#allocation48_spill] sm:$0xff] %v8557_v43  ;;  %v8567_v45 = vld [vmem:[%s11358_s3 + $0x168] sm:$0xff]  ;;  %v8572_v46 = vld [vmem:[%s11358_s3 + $0x170] sm:$0xff] }
  0x17   :  { %11403 = vst [vmem:[#allocation49_spill] sm:$0xff] %v8562_v44  ;;  %11404 = vst [vmem:[#allocation50_spill] sm:$0xff] %v8567_v45  ;;  %v8577_v47 = vld [vmem:[%s11358_s3 + $0x178] sm:$0xff]  ;;  %v8582_v48 = vld [vmem:[%s11358_s3 + $0x180] sm:$0xff] }
  0x18   :  { %11405 = vst [vmem:[#allocation51_spill] sm:$0xff] %v8572_v46  ;;  %11406 = vst [vmem:[#allocation52_spill] sm:$0xff] %v8577_v47  ;;  %v8587_v49 = vld [vmem:[%s11358_s3 + $0x188] sm:$0xff]  ;;  %v8592_v50 = vld [vmem:[%s11358_s3 + $0x190] sm:$0xff] }
  0x19   :  { %11407 = vst [vmem:[#allocation53_spill] sm:$0xff] %v8582_v48  ;;  %11408 = vst [vmem:[#allocation54_spill] sm:$0xff] %v8587_v49  ;;  %v8597_v51 = vld [vmem:[%s11358_s3 + $0x198] sm:$0xff]  ;;  %v8602_v52 = vld [vmem:[%s11358_s3 + $0x1a0] sm:$0xff] }
  0x1a   :  { %11409 = vst [vmem:[#allocation55_spill] sm:$0xff] %v8592_v50  ;;  %11410 = vst [vmem:[#allocation56_spill] sm:$0xff] %v8597_v51  ;;  %v8607_v53 = vld [vmem:[%s11358_s3 + $0x1a8] sm:$0xff]  ;;  %v8612_v54 = vld [vmem:[%s11358_s3 + $0x1b0] sm:$0xff] }
  0x1b   :  { %11411 = vst [vmem:[#allocation57_spill] sm:$0xff] %v8602_v52  ;;  %11412 = vst [vmem:[#allocation58_spill] sm:$0xff] %v8607_v53  ;;  %v8617_v55 = vld [vmem:[%s11358_s3 + $0x1b8] sm:$0xff]  ;;  %v8622_v56 = vld [vmem:[%s11358_s3 + $0x1c0] sm:$0xff] }
  0x1c   :  { %11413 = vst [vmem:[#allocation59_spill] sm:$0xff] %v8612_v54  ;;  %11414 = vst [vmem:[#allocation60_spill] sm:$0xff] %v8617_v55  ;;  %v8627_v57 = vld [vmem:[%s11358_s3 + $0x1c8] sm:$0xff]  ;;  %v8632_v58 = vld [vmem:[%s11358_s3 + $0x1d0] sm:$0xff] }
  0x1d   :  { %11415 = vst [vmem:[#allocation61_spill] sm:$0xff] %v8622_v56  ;;  %11416 = vst [vmem:[#allocation62_spill] sm:$0xff] %v8627_v57  ;;  %v8637_v59 = vld [vmem:[%s11358_s3 + $0x1d8] sm:$0xff]  ;;  %v8642_v60 = vld [vmem:[%s11358_s3 + $0x1e0] sm:$0xff] }
  0x1e   :  { %11417 = vst [vmem:[#allocation63_spill] sm:$0xff] %v8632_v58  ;;  %11418 = vst [vmem:[#allocation64_spill] sm:$0xff] %v8637_v59  ;;  %v8647_v61 = vld [vmem:[%s11358_s3 + $0x1e8] sm:$0xff]  ;;  %v8652_v62 = vld [vmem:[%s11358_s3 + $0x1f0] sm:$0xff] }
  0x1f   :  { %11419 = vst [vmem:[#allocation65_spill] sm:$0xff] %v8642_v60  ;;  %11420 = vst [vmem:[#allocation66_spill] sm:$0xff] %v8647_v61  ;;  %v8657_v63 = vld [vmem:[%s11358_s3 + $0x1f8] sm:$0xff]  ;;  %v8662_v55 = vld [vmem:[%s11358_s3 + $0x200] sm:$0xff] }
  0x20   :  { %11421 = vst [vmem:[#allocation67_spill] sm:$0xff] %v8652_v62  ;;  %11422 = vst [vmem:[#allocation68_spill] sm:$0xff] %v8657_v63  ;;  %v8667_v60 = vld [vmem:[%s11358_s3 + $0x208] sm:$0xff]  ;;  %v8672_v61 = vld [vmem:[%s11358_s3 + $0x210] sm:$0xff] }
  0x21   :  { %11423 = vst [vmem:[#allocation69_spill] sm:$0xff] %v8662_v55  ;;  %11424 = vst [vmem:[#allocation70_spill] sm:$0xff] %v8667_v60  ;;  %v8677_v62 = vld [vmem:[%s11358_s3 + $0x218] sm:$0xff]  ;;  %v8682_v63 = vld [vmem:[%s11358_s3 + $0x220] sm:$0xff] }
  0x22   :  { %11425 = vst [vmem:[#allocation71_spill] sm:$0xff] %v8672_v61  ;;  %11426 = vst [vmem:[#allocation72_spill] sm:$0xff] %v8677_v62  ;;  %v8687_v55 = vld [vmem:[%s11358_s3 + $0x228] sm:$0xff]  ;;  %v8692_v56 = vld [vmem:[%s11358_s3 + $0x230] sm:$0xff] }
  0x23   :  { %11427 = vst [vmem:[#allocation73_spill] sm:$0xff] %v8682_v63  ;;  %11428 = vst [vmem:[#allocation74_spill] sm:$0xff] %v8687_v55  ;;  %v8697_v57 = vld [vmem:[%s11358_s3 + $0x238] sm:$0xff]  ;;  %v8702_v58 = vld [vmem:[%s11358_s3 + $0x240] sm:$0xff] }
  0x24   :  { %11429 = vst [vmem:[#allocation75_spill] sm:$0xff] %v8692_v56  ;;  %11430 = vst [vmem:[#allocation76_spill] sm:$0xff] %v8697_v57  ;;  %v8707_v59 = vld [vmem:[%s11358_s3 + $0x248] sm:$0xff]  ;;  %v8712_v50 = vld [vmem:[%s11358_s3 + $0x250] sm:$0xff] }
  0x25   :  { %11431 = vst [vmem:[#allocation77_spill] sm:$0xff] %v8702_v58  ;;  %11432 = vst [vmem:[#allocation78_spill] sm:$0xff] %v8707_v59  ;;  %v8717_v56 = vld [vmem:[%s11358_s3 + $0x258] sm:$0xff]  ;;  %v8722_v57 = vld [vmem:[%s11358_s3 + $0x260] sm:$0xff] }
  0x26   :  { %11433 = vst [vmem:[#allocation79_spill] sm:$0xff] %v8712_v50  ;;  %11434 = vst [vmem:[#allocation80_spill] sm:$0xff] %v8717_v56  ;;  %v8727_v58 = vld [vmem:[%s11358_s3 + $0x268] sm:$0xff]  ;;  %v8732_v59 = vld [vmem:[%s11358_s3 + $0x270] sm:$0xff] }
  0x27   :  { %11435 = vst [vmem:[#allocation81_spill] sm:$0xff] %v8722_v57  ;;  %11436 = vst [vmem:[#allocation82_spill] sm:$0xff] %v8727_v58  ;;  %v8737_v50 = vld [vmem:[%s11358_s3 + $0x278] sm:$0xff]  ;;  %v8742_v51 = vld [vmem:[%s11358_s3 + $0x280] sm:$0xff] }
  0x28   :  { %11437 = vst [vmem:[#allocation83_spill] sm:$0xff] %v8732_v59  ;;  %11438 = vst [vmem:[#allocation84_spill] sm:$0xff] %v8737_v50  ;;  %v8747_v52 = vld [vmem:[%s11358_s3 + $0x288] sm:$0xff]  ;;  %v8752_v53 = vld [vmem:[%s11358_s3 + $0x290] sm:$0xff] }
  0x29   :  { %11439 = vst [vmem:[#allocation85_spill] sm:$0xff] %v8742_v51  ;;  %11440 = vst [vmem:[#allocation86_spill] sm:$0xff] %v8747_v52  ;;  %v8757_v54 = vld [vmem:[%s11358_s3 + $0x298] sm:$0xff]  ;;  %v8762_v45 = vld [vmem:[%s11358_s3 + $0x2a0] sm:$0xff] }
  0x2a   :  { %11441 = vst [vmem:[#allocation87_spill] sm:$0xff] %v8752_v53  ;;  %11442 = vst [vmem:[#allocation88_spill] sm:$0xff] %v8757_v54  ;;  %v8767_v51 = vld [vmem:[%s11358_s3 + $0x2a8] sm:$0xff]  ;;  %v8772_v52 = vld [vmem:[%s11358_s3 + $0x2b0] sm:$0xff] }
  0x2b   :  { %11443 = vst [vmem:[#allocation89_spill] sm:$0xff] %v8762_v45  ;;  %11444 = vst [vmem:[#allocation90_spill] sm:$0xff] %v8767_v51  ;;  %v8777_v53 = vld [vmem:[%s11358_s3 + $0x2b8] sm:$0xff]  ;;  %v8782_v54 = vld [vmem:[%s11358_s3 + $0x2c0] sm:$0xff] }
  0x2c   :  { %11445 = vst [vmem:[#allocation91_spill] sm:$0xff] %v8772_v52  ;;  %11446 = vst [vmem:[#allocation92_spill] sm:$0xff] %v8777_v53  ;;  %v8787_v45 = vld [vmem:[%s11358_s3 + $0x2c8] sm:$0xff]  ;;  %v8792_v46 = vld [vmem:[%s11358_s3 + $0x2d0] sm:$0xff] }
  0x2d   :  { %11447 = vst [vmem:[#allocation93_spill] sm:$0xff] %v8782_v54  ;;  %11448 = vst [vmem:[#allocation94_spill] sm:$0xff] %v8787_v45  ;;  %v8797_v47 = vld [vmem:[%s11358_s3 + $0x2d8] sm:$0xff]  ;;  %v8802_v48 = vld [vmem:[%s11358_s3 + $0x2e0] sm:$0xff] }
  0x2e   :  { %11449 = vst [vmem:[#allocation95_spill] sm:$0xff] %v8792_v46  ;;  %11450 = vst [vmem:[#allocation96_spill] sm:$0xff] %v8797_v47  ;;  %v8807_v49 = vld [vmem:[%s11358_s3 + $0x2e8] sm:$0xff]  ;;  %v8812_v40 = vld [vmem:[%s11358_s3 + $0x2f0] sm:$0xff] }
  0x2f   :  { %11451 = vst [vmem:[#allocation97_spill] sm:$0xff] %v8802_v48  ;;  %11452 = vst [vmem:[#allocation98_spill] sm:$0xff] %v8807_v49  ;;  %v8817_v46 = vld [vmem:[%s11358_s3 + $0x2f8] sm:$0xff]  ;;  %v8822_v47 = vld [vmem:[%s11358_s3 + $0x300] sm:$0xff] }
  0x30   :  { %11453 = vst [vmem:[#allocation99_spill] sm:$0xff] %v8812_v40  ;;  %11454 = vst [vmem:[#allocation100_spill] sm:$0xff] %v8817_v46  ;;  %v8827_v48 = vld [vmem:[%s11358_s3 + $0x308] sm:$0xff]  ;;  %v8832_v49 = vld [vmem:[%s11358_s3 + $0x310] sm:$0xff] }
  0x31   :  { %11455 = vst [vmem:[#allocation101_spill] sm:$0xff] %v8822_v47  ;;  %11456 = vst [vmem:[#allocation102_spill] sm:$0xff] %v8827_v48  ;;  %v8837_v40 = vld [vmem:[%s11358_s3 + $0x318] sm:$0xff]  ;;  %v8842_v41 = vld [vmem:[%s11358_s3 + $0x320] sm:$0xff] }
  0x32   :  { %11457 = vst [vmem:[#allocation103_spill] sm:$0xff] %v8832_v49  ;;  %11458 = vst [vmem:[#allocation104_spill] sm:$0xff] %v8837_v40  ;;  %v8847_v42 = vld [vmem:[%s11358_s3 + $0x328] sm:$0xff]  ;;  %v8852_v43 = vld [vmem:[%s11358_s3 + $0x330] sm:$0xff] }
  0x33   :  { %11459 = vst [vmem:[#allocation105_spill] sm:$0xff] %v8842_v41  ;;  %11460 = vst [vmem:[#allocation106_spill] sm:$0xff] %v8847_v42  ;;  %v8857_v44 = vld [vmem:[%s11358_s3 + $0x338] sm:$0xff]  ;;  %v8862_v35 = vld [vmem:[%s11358_s3 + $0x340] sm:$0xff] }
  0x34   :  { %11461 = vst [vmem:[#allocation107_spill] sm:$0xff] %v8852_v43  ;;  %11462 = vst [vmem:[#allocation108_spill] sm:$0xff] %v8857_v44  ;;  %v8867_v41 = vld [vmem:[%s11358_s3 + $0x348] sm:$0xff]  ;;  %v8872_v42 = vld [vmem:[%s11358_s3 + $0x350] sm:$0xff] }
  0x35   :  { %11463 = vst [vmem:[#allocation109_spill] sm:$0xff] %v8862_v35  ;;  %11464 = vst [vmem:[#allocation110_spill] sm:$0xff] %v8867_v41  ;;  %v8877_v43 = vld [vmem:[%s11358_s3 + $0x358] sm:$0xff]  ;;  %v8882_v44 = vld [vmem:[%s11358_s3 + $0x360] sm:$0xff] }
  0x36   :  { %11465 = vst [vmem:[#allocation111_spill] sm:$0xff] %v8872_v42  ;;  %11466 = vst [vmem:[#allocation112_spill] sm:$0xff] %v8877_v43  ;;  %v8887_v35 = vld [vmem:[%s11358_s3 + $0x368] sm:$0xff]  ;;  %v8892_v41 = vld [vmem:[%s11358_s3 + $0x370] sm:$0xff] }
  0x37   :  { %11467 = vst [vmem:[#allocation113_spill] sm:$0xff] %v8882_v44  ;;  %11468 = vst [vmem:[#allocation114_spill] sm:$0xff] %v8887_v35  ;;  %v8897_v42 = vld [vmem:[%s11358_s3 + $0x378] sm:$0xff]  ;;  %v8902_v43 = vld [vmem:[%s11358_s3 + $0x380] sm:$0xff] }
  0x38   :  { %11469 = vst [vmem:[#allocation115_spill] sm:$0xff] %v8892_v41  ;;  %11470 = vst [vmem:[#allocation116_spill] sm:$0xff] %v8897_v42  ;;  %v8907_v44 = vld [vmem:[%s11358_s3 + $0x388] sm:$0xff]  ;;  %v8912_v35 = vld [vmem:[%s11358_s3 + $0x390] sm:$0xff] }
  0x39   :  { %11471 = vst [vmem:[#allocation117_spill] sm:$0xff] %v8902_v43  ;;  %11472 = vst [vmem:[#allocation118_spill] sm:$0xff] %v8907_v44  ;;  %v8917_v41 = vld [vmem:[%s11358_s3 + $0x398] sm:$0xff]  ;;  %v8922_v42 = vld [vmem:[%s11358_s3 + $0x3a0] sm:$0xff] }
  0x3a   :  { %11473 = vst [vmem:[#allocation119_spill] sm:$0xff] %v8912_v35  ;;  %11474 = vst [vmem:[#allocation120_spill] sm:$0xff] %v8917_v41  ;;  %v8927_v43 = vld [vmem:[%s11358_s3 + $0x3a8] sm:$0xff]  ;;  %v8932_v44 = vld [vmem:[%s11358_s3 + $0x3b0] sm:$0xff] }
  0x3b   :  { %11475 = vst [vmem:[#allocation121_spill] sm:$0xff] %v8922_v42  ;;  %11476 = vst [vmem:[#allocation122_spill] sm:$0xff] %v8927_v43  ;;  %v8937_v35 = vld [vmem:[%s11358_s3 + $0x3b8] sm:$0xff]  ;;  %v8942_v41 = vld [vmem:[%s11358_s3 + $0x3c0] sm:$0xff] }
  0x3c   :  { %11477 = vst [vmem:[#allocation123_spill] sm:$0xff] %v8932_v44  ;;  %11478 = vst [vmem:[#allocation124_spill] sm:$0xff] %v8937_v35  ;;  %v8947_v42 = vld [vmem:[%s11358_s3 + $0x3c8] sm:$0xff]  ;;  %v8952_v43 = vld [vmem:[%s11358_s3 + $0x3d0] sm:$0xff] }
  0x3d   :  { %11479 = vst [vmem:[#allocation125_spill] sm:$0xff] %v8942_v41  ;;  %11480 = vst [vmem:[#allocation126_spill] sm:$0xff] %v8947_v42  ;;  %v8957_v44 = vld [vmem:[%s11358_s3 + $0x3d8] sm:$0xff]  ;;  %v8962_v35 = vld [vmem:[%s11358_s3 + $0x3e0] sm:$0xff] }
  0x3e   :  { %11481 = vst [vmem:[#allocation127_spill] sm:$0xff] %v8952_v43  ;;  %11482 = vst [vmem:[#allocation128_spill] sm:$0xff] %v8957_v44  ;;  %v8967_v41 = vld [vmem:[%s11358_s3 + $0x3e8] sm:$0xff]  ;;  %v8972_v42 = vld [vmem:[%s11358_s3 + $0x3f0] sm:$0xff] }
  0x3f   :  { %11483 = vst [vmem:[#allocation129_spill] sm:$0xff] %v8962_v35  ;;  %11484 = vst [vmem:[#allocation130_spill] sm:$0xff] %v8967_v41  ;;  %v8977_v43 = vld [vmem:[%s11358_s3 + $0x3f8] sm:$0xff]  ;;  %v8982_v44 = vld [vmem:[%s11358_s3 + $0x400] sm:$0xff] }
  0x40   :  { %11485 = vst [vmem:[#allocation131_spill] sm:$0xff] %v8972_v42  ;;  %11486 = vst [vmem:[#allocation132_spill] sm:$0xff] %v8977_v43  ;;  %v8987_v35 = vld [vmem:[%s11358_s3 + $0x408] sm:$0xff]  ;;  %v8992_v41 = vld [vmem:[%s11358_s3 + $0x410] sm:$0xff] }
  0x41   :  { %11487 = vst [vmem:[#allocation133_spill] sm:$0xff] %v8982_v44  ;;  %11488 = vst [vmem:[#allocation134_spill] sm:$0xff] %v8987_v35  ;;  %v8997_v42 = vld [vmem:[%s11358_s3 + $0x418] sm:$0xff]  ;;  %v9002_v43 = vld [vmem:[%s11358_s3 + $0x420] sm:$0xff] }
  0x42   :  { %11489 = vst [vmem:[#allocation135_spill] sm:$0xff] %v8992_v41  ;;  %11490 = vst [vmem:[#allocation136_spill] sm:$0xff] %v8997_v42  ;;  %v9007_v44 = vld [vmem:[%s11358_s3 + $0x428] sm:$0xff]  ;;  %v9012_v35 = vld [vmem:[%s11358_s3 + $0x430] sm:$0xff] }
  0x43   :  { %11491 = vst [vmem:[#allocation137_spill] sm:$0xff] %v9002_v43  ;;  %11492 = vst [vmem:[#allocation138_spill] sm:$0xff] %v9007_v44  ;;  %v9017_v41 = vld [vmem:[%s11358_s3 + $0x438] sm:$0xff]  ;;  %v9022_v42 = vld [vmem:[%s11358_s3 + $0x440] sm:$0xff] }
  0x44   :  { %11493 = vst [vmem:[#allocation139_spill] sm:$0xff] %v9012_v35  ;;  %11494 = vst [vmem:[#allocation140_spill] sm:$0xff] %v9017_v41  ;;  %v9027_v43 = vld [vmem:[%s11358_s3 + $0x448] sm:$0xff]  ;;  %v9032_v44 = vld [vmem:[%s11358_s3 + $0x450] sm:$0xff] }
  0x45   :  { %11495 = vst [vmem:[#allocation141_spill] sm:$0xff] %v9022_v42  ;;  %11496 = vst [vmem:[#allocation142_spill] sm:$0xff] %v9027_v43  ;;  %v9037_v35 = vld [vmem:[%s11358_s3 + $0x458] sm:$0xff]  ;;  %v9042_v41 = vld [vmem:[%s11358_s3 + $0x460] sm:$0xff] }
  0x46   :  { %11497 = vst [vmem:[#allocation143_spill] sm:$0xff] %v9032_v44  ;;  %11498 = vst [vmem:[#allocation144_spill] sm:$0xff] %v9037_v35  ;;  %v9047_v42 = vld [vmem:[%s11358_s3 + $0x468] sm:$0xff]  ;;  %v9052_v43 = vld [vmem:[%s11358_s3 + $0x470] sm:$0xff] }
  0x47   :  { %11499 = vst [vmem:[#allocation145_spill] sm:$0xff] %v9042_v41  ;;  %11500 = vst [vmem:[#allocation146_spill] sm:$0xff] %v9047_v42  ;;  %v9057_v44 = vld [vmem:[%s11358_s3 + $0x478] sm:$0xff]  ;;  %v9062_v35 = vld [vmem:[%s11358_s3 + $0x480] sm:$0xff] }
  0x48   :  { %11501 = vst [vmem:[#allocation147_spill] sm:$0xff] %v9052_v43  ;;  %11502 = vst [vmem:[#allocation148_spill] sm:$0xff] %v9057_v44  ;;  %v9067_v41 = vld [vmem:[%s11358_s3 + $0x488] sm:$0xff]  ;;  %v9072_v42 = vld [vmem:[%s11358_s3 + $0x490] sm:$0xff] }
  0x49   :  { %11503 = vst [vmem:[#allocation149_spill] sm:$0xff] %v9062_v35  ;;  %11504 = vst [vmem:[#allocation150_spill] sm:$0xff] %v9067_v41  ;;  %v9077_v43 = vld [vmem:[%s11358_s3 + $0x498] sm:$0xff]  ;;  %v9082_v44 = vld [vmem:[%s11358_s3 + $0x4a0] sm:$0xff] }
  0x4a   :  { %11505 = vst [vmem:[#allocation151_spill] sm:$0xff] %v9072_v42  ;;  %11506 = vst [vmem:[#allocation152_spill] sm:$0xff] %v9077_v43  ;;  %v9087_v35 = vld [vmem:[%s11358_s3 + $0x4a8] sm:$0xff]  ;;  %v9092_v41 = vld [vmem:[%s11358_s3 + $0x4b0] sm:$0xff] }
  0x4b   :  { %11507 = vst [vmem:[#allocation153_spill] sm:$0xff] %v9082_v44  ;;  %11508 = vst [vmem:[#allocation154_spill] sm:$0xff] %v9087_v35  ;;  %v9097_v42 = vld [vmem:[%s11358_s3 + $0x4b8] sm:$0xff]  ;;  %v9102_v43 = vld [vmem:[%s11358_s3 + $0x4c0] sm:$0xff] }
  0x4c   :  { %11509 = vst [vmem:[#allocation155_spill] sm:$0xff] %v9092_v41  ;;  %11510 = vst [vmem:[#allocation156_spill] sm:$0xff] %v9097_v42  ;;  %v9107_v44 = vld [vmem:[%s11358_s3 + $0x4c8] sm:$0xff]  ;;  %v9112_v35 = vld [vmem:[%s11358_s3 + $0x4d0] sm:$0xff] }
  0x4d   :  { %11511 = vst [vmem:[#allocation157_spill] sm:$0xff] %v9102_v43  ;;  %11512 = vst [vmem:[#allocation158_spill] sm:$0xff] %v9107_v44  ;;  %v9117_v41 = vld [vmem:[%s11358_s3 + $0x4d8] sm:$0xff]  ;;  %v9122_v42 = vld [vmem:[%s11358_s3 + $0x4e0] sm:$0xff] }
  0x4e   :  { %11513 = vst [vmem:[#allocation159_spill] sm:$0xff] %v9112_v35  ;;  %11514 = vst [vmem:[#allocation160_spill] sm:$0xff] %v9117_v41  ;;  %v9127_v43 = vld [vmem:[%s11358_s3 + $0x4e8] sm:$0xff]  ;;  %v9132_v44 = vld [vmem:[%s11358_s3 + $0x4f0] sm:$0xff] }
  0x4f   :  { %11515 = vst [vmem:[#allocation161_spill] sm:$0xff] %v9122_v42  ;;  %11516 = vst [vmem:[#allocation162_spill] sm:$0xff] %v9127_v43  ;;  %v9137_v35 = vld [vmem:[%s11358_s3 + $0x4f8] sm:$0xff]  ;;  %v9142_v41 = vld [vmem:[%s11358_s3 + $0x500] sm:$0xff] }
  0x50   :  { %11517 = vst [vmem:[#allocation163_spill] sm:$0xff] %v9132_v44  ;;  %11518 = vst [vmem:[#allocation164_spill] sm:$0xff] %v9137_v35  ;;  %v9147_v42 = vld [vmem:[%s11358_s3 + $0x508] sm:$0xff]  ;;  %v9152_v43 = vld [vmem:[%s11358_s3 + $0x510] sm:$0xff] }
  0x51   :  { %11519 = vst [vmem:[#allocation165_spill] sm:$0xff] %v9142_v41  ;;  %11520 = vst [vmem:[#allocation166_spill] sm:$0xff] %v9147_v42  ;;  %v9157_v44 = vld [vmem:[%s11358_s3 + $0x518] sm:$0xff]  ;;  %v9162_v35 = vld [vmem:[%s11358_s3 + $0x520] sm:$0xff] }
  0x52   :  { %11521 = vst [vmem:[#allocation167_spill] sm:$0xff] %v9152_v43  ;;  %11522 = vst [vmem:[#allocation168_spill] sm:$0xff] %v9157_v44  ;;  %v9167_v41 = vld [vmem:[%s11358_s3 + $0x528] sm:$0xff]  ;;  %v9172_v42 = vld [vmem:[%s11358_s3 + $0x530] sm:$0xff] }
  0x53   :  { %11523 = vst [vmem:[#allocation169_spill] sm:$0xff] %v9162_v35  ;;  %11524 = vst [vmem:[#allocation170_spill] sm:$0xff] %v9167_v41  ;;  %v9177_v43 = vld [vmem:[%s11358_s3 + $0x538] sm:$0xff]  ;;  %v9182_v44 = vld [vmem:[%s11358_s3 + $0x540] sm:$0xff] }
  0x54   :  { %11525 = vst [vmem:[#allocation171_spill] sm:$0xff] %v9172_v42  ;;  %11526 = vst [vmem:[#allocation172_spill] sm:$0xff] %v9177_v43  ;;  %v9187_v35 = vld [vmem:[%s11358_s3 + $0x548] sm:$0xff]  ;;  %v9192_v41 = vld [vmem:[%s11358_s3 + $0x550] sm:$0xff] }
  0x55   :  { %11527 = vst [vmem:[#allocation173_spill] sm:$0xff] %v9182_v44  ;;  %11528 = vst [vmem:[#allocation174_spill] sm:$0xff] %v9187_v35  ;;  %v9197_v42 = vld [vmem:[%s11358_s3 + $0x558] sm:$0xff]  ;;  %v9202_v43 = vld [vmem:[%s11358_s3 + $0x560] sm:$0xff] }
  0x56   :  { %11529 = vst [vmem:[#allocation175_spill] sm:$0xff] %v9192_v41  ;;  %11530 = vst [vmem:[#allocation176_spill] sm:$0xff] %v9197_v42  ;;  %v9207_v44 = vld [vmem:[%s11358_s3 + $0x568] sm:$0xff]  ;;  %v9212_v35 = vld [vmem:[%s11358_s3 + $0x570] sm:$0xff] }
  0x57   :  { %11531 = vst [vmem:[#allocation177_spill] sm:$0xff] %v9202_v43  ;;  %11532 = vst [vmem:[#allocation178_spill] sm:$0xff] %v9207_v44  ;;  %v9217_v41 = vld [vmem:[%s11358_s3 + $0x578] sm:$0xff]  ;;  %v9222_v42 = vld [vmem:[%s11358_s3 + $0x580] sm:$0xff] }
  0x58   :  { %11533 = vst [vmem:[#allocation179_spill] sm:$0xff] %v9212_v35  ;;  %11534 = vst [vmem:[#allocation180_spill] sm:$0xff] %v9217_v41  ;;  %v9227_v43 = vld [vmem:[%s11358_s3 + $0x588] sm:$0xff]  ;;  %v9232_v44 = vld [vmem:[%s11358_s3 + $0x590] sm:$0xff] }
  0x59   :  { %11535 = vst [vmem:[#allocation181_spill] sm:$0xff] %v9222_v42  ;;  %11536 = vst [vmem:[#allocation182_spill] sm:$0xff] %v9227_v43  ;;  %v9237_v35 = vld [vmem:[%s11358_s3 + $0x598] sm:$0xff]  ;;  %v9242_v41 = vld [vmem:[%s11358_s3 + $0x5a0] sm:$0xff] }
  0x5a   :  { %11537 = vst [vmem:[#allocation183_spill] sm:$0xff] %v9232_v44  ;;  %11538 = vst [vmem:[#allocation184_spill] sm:$0xff] %v9237_v35  ;;  %v9247_v42 = vld [vmem:[%s11358_s3 + $0x5a8] sm:$0xff]  ;;  %v9252_v43 = vld [vmem:[%s11358_s3 + $0x5b0] sm:$0xff] }
  0x5b   :  { %11539 = vst [vmem:[#allocation185_spill] sm:$0xff] %v9242_v41  ;;  %11540 = vst [vmem:[#allocation186_spill] sm:$0xff] %v9247_v42  ;;  %v9257_v44 = vld [vmem:[%s11358_s3 + $0x5b8] sm:$0xff]  ;;  %v9262_v35 = vld [vmem:[%s11358_s3 + $0x5c0] sm:$0xff] }
  0x5c   :  { %11541 = vst [vmem:[#allocation187_spill] sm:$0xff] %v9252_v43  ;;  %11542 = vst [vmem:[#allocation188_spill] sm:$0xff] %v9257_v44  ;;  %v9267_v41 = vld [vmem:[%s11358_s3 + $0x5c8] sm:$0xff]  ;;  %v9272_v42 = vld [vmem:[%s11358_s3 + $0x5d0] sm:$0xff] }
  0x5d   :  { %11543 = vst [vmem:[#allocation189_spill] sm:$0xff] %v9262_v35  ;;  %11544 = vst [vmem:[#allocation190_spill] sm:$0xff] %v9267_v41  ;;  %v9277_v43 = vld [vmem:[%s11358_s3 + $0x5d8] sm:$0xff]  ;;  %v9282_v44 = vld [vmem:[%s11358_s3 + $0x5e0] sm:$0xff] }
  0x5e   :  { %11545 = vst [vmem:[#allocation191_spill] sm:$0xff] %v9272_v42  ;;  %11546 = vst [vmem:[#allocation192_spill] sm:$0xff] %v9277_v43  ;;  %v9287_v35 = vld [vmem:[%s11358_s3 + $0x5e8] sm:$0xff]  ;;  %v9292_v41 = vld [vmem:[%s11358_s3 + $0x5f0] sm:$0xff] }
  0x5f   :  { %11547 = vst [vmem:[#allocation193_spill] sm:$0xff] %v9282_v44  ;;  %11548 = vst [vmem:[#allocation194_spill] sm:$0xff] %v9287_v35  ;;  %v9297_v42 = vld [vmem:[%s11358_s3 + $0x5f8] sm:$0xff]  ;;  %v9302_v43 = vld [vmem:[%s11358_s3 + $0x600] sm:$0xff] }
  0x60   :  { %11549 = vst [vmem:[#allocation195_spill] sm:$0xff] %v9292_v41  ;;  %11550 = vst [vmem:[#allocation196_spill] sm:$0xff] %v9297_v42  ;;  %v9307_v44 = vld [vmem:[%s11358_s3 + $0x608] sm:$0xff]  ;;  %v9312_v35 = vld [vmem:[%s11358_s3 + $0x610] sm:$0xff] }
  0x61   :  { %11551 = vst [vmem:[#allocation197_spill] sm:$0xff] %v9302_v43  ;;  %11552 = vst [vmem:[#allocation198_spill] sm:$0xff] %v9307_v44  ;;  %v9317_v41 = vld [vmem:[%s11358_s3 + $0x618] sm:$0xff]  ;;  %v9322_v42 = vld [vmem:[%s11358_s3 + $0x620] sm:$0xff] }
  0x62   :  { %11553 = vst [vmem:[#allocation199_spill] sm:$0xff] %v9312_v35  ;;  %11554 = vst [vmem:[#allocation200_spill] sm:$0xff] %v9317_v41  ;;  %v9327_v43 = vld [vmem:[%s11358_s3 + $0x628] sm:$0xff]  ;;  %v9332_v44 = vld [vmem:[%s11358_s3 + $0x630] sm:$0xff] }
  0x63   :  { %11555 = vst [vmem:[#allocation201_spill] sm:$0xff] %v9322_v42  ;;  %11556 = vst [vmem:[#allocation202_spill] sm:$0xff] %v9327_v43  ;;  %v9337_v35 = vld [vmem:[%s11358_s3 + $0x638] sm:$0xff]  ;;  %v9342_v41 = vld [vmem:[%s11358_s3 + $0x640] sm:$0xff] }
  0x64   :  { %11557 = vst [vmem:[#allocation203_spill] sm:$0xff] %v9332_v44  ;;  %11558 = vst [vmem:[#allocation204_spill] sm:$0xff] %v9337_v35  ;;  %v9347_v42 = vld [vmem:[%s11358_s3 + $0x648] sm:$0xff]  ;;  %v9352_v43 = vld [vmem:[%s11358_s3 + $0x650] sm:$0xff] }
  0x65   :  { %11559 = vst [vmem:[#allocation205_spill] sm:$0xff] %v9342_v41  ;;  %11560 = vst [vmem:[#allocation206_spill] sm:$0xff] %v9347_v42  ;;  %v9357_v44 = vld [vmem:[%s11358_s3 + $0x658] sm:$0xff]  ;;  %v9362_v35 = vld [vmem:[%s11358_s3 + $0x660] sm:$0xff] }
  0x66   :  { %11561 = vst [vmem:[#allocation207_spill] sm:$0xff] %v9352_v43  ;;  %11562 = vst [vmem:[#allocation208_spill] sm:$0xff] %v9357_v44  ;;  %v9367_v41 = vld [vmem:[%s11358_s3 + $0x668] sm:$0xff]  ;;  %v9372_v42 = vld [vmem:[%s11358_s3 + $0x670] sm:$0xff] }
  0x67   :  { %11563 = vst [vmem:[#allocation209_spill] sm:$0xff] %v9362_v35  ;;  %11564 = vst [vmem:[#allocation210_spill] sm:$0xff] %v9367_v41  ;;  %v9377_v43 = vld [vmem:[%s11358_s3 + $0x678] sm:$0xff]  ;;  %v9382_v44 = vld [vmem:[%s11358_s3 + $0x680] sm:$0xff] }
  0x68   :  { %11565 = vst [vmem:[#allocation211_spill] sm:$0xff] %v9372_v42  ;;  %11566 = vst [vmem:[#allocation212_spill] sm:$0xff] %v9377_v43  ;;  %v9387_v35 = vld [vmem:[%s11358_s3 + $0x688] sm:$0xff]  ;;  %v9392_v41 = vld [vmem:[%s11358_s3 + $0x690] sm:$0xff] }
  0x69   :  { %11567 = vst [vmem:[#allocation213_spill] sm:$0xff] %v9382_v44  ;;  %11568 = vst [vmem:[#allocation214_spill] sm:$0xff] %v9387_v35  ;;  %v9397_v42 = vld [vmem:[%s11358_s3 + $0x698] sm:$0xff]  ;;  %v9402_v43 = vld [vmem:[%s11358_s3 + $0x6a0] sm:$0xff] }
  0x6a   :  { %11569 = vst [vmem:[#allocation215_spill] sm:$0xff] %v9392_v41  ;;  %11570 = vst [vmem:[#allocation216_spill] sm:$0xff] %v9397_v42  ;;  %v9407_v44 = vld [vmem:[%s11358_s3 + $0x6a8] sm:$0xff]  ;;  %v9412_v35 = vld [vmem:[%s11358_s3 + $0x6b0] sm:$0xff] }
  0x6b   :  { %11571 = vst [vmem:[#allocation217_spill] sm:$0xff] %v9402_v43  ;;  %11572 = vst [vmem:[#allocation218_spill] sm:$0xff] %v9407_v44  ;;  %v9417_v41 = vld [vmem:[%s11358_s3 + $0x6b8] sm:$0xff]  ;;  %v9422_v42 = vld [vmem:[%s11358_s3 + $0x6c0] sm:$0xff] }
  0x6c   :  { %11573 = vst [vmem:[#allocation219_spill] sm:$0xff] %v9412_v35  ;;  %11574 = vst [vmem:[#allocation220_spill] sm:$0xff] %v9417_v41  ;;  %v9427_v43 = vld [vmem:[%s11358_s3 + $0x6c8] sm:$0xff]  ;;  %v9432_v44 = vld [vmem:[%s11358_s3 + $0x6d0] sm:$0xff] }
  0x6d   :  { %11575 = vst [vmem:[#allocation221_spill] sm:$0xff] %v9422_v42  ;;  %11576 = vst [vmem:[#allocation222_spill] sm:$0xff] %v9427_v43  ;;  %v9437_v35 = vld [vmem:[%s11358_s3 + $0x6d8] sm:$0xff]  ;;  %v9442_v41 = vld [vmem:[%s11358_s3 + $0x6e0] sm:$0xff] }
  0x6e   :  { %11577 = vst [vmem:[#allocation223_spill] sm:$0xff] %v9432_v44  ;;  %11578 = vst [vmem:[#allocation224_spill] sm:$0xff] %v9437_v35  ;;  %v9447_v42 = vld [vmem:[%s11358_s3 + $0x6e8] sm:$0xff]  ;;  %v9452_v43 = vld [vmem:[%s11358_s3 + $0x6f0] sm:$0xff] }
  0x6f   :  { %11579 = vst [vmem:[#allocation225_spill] sm:$0xff] %v9442_v41  ;;  %11580 = vst [vmem:[#allocation226_spill] sm:$0xff] %v9447_v42  ;;  %v9457_v44 = vld [vmem:[%s11358_s3 + $0x6f8] sm:$0xff]  ;;  %v9462_v35 = vld [vmem:[%s11358_s3 + $0x700] sm:$0xff] }
  0x70   :  { %11581 = vst [vmem:[#allocation227_spill] sm:$0xff] %v9452_v43  ;;  %11582 = vst [vmem:[#allocation228_spill] sm:$0xff] %v9457_v44  ;;  %v9467_v41 = vld [vmem:[%s11358_s3 + $0x708] sm:$0xff]  ;;  %v9472_v42 = vld [vmem:[%s11358_s3 + $0x710] sm:$0xff] }
  0x71   :  { %11583 = vst [vmem:[#allocation229_spill] sm:$0xff] %v9462_v35  ;;  %11584 = vst [vmem:[#allocation230_spill] sm:$0xff] %v9467_v41  ;;  %v9477_v43 = vld [vmem:[%s11358_s3 + $0x718] sm:$0xff]  ;;  %v9482_v44 = vld [vmem:[%s11358_s3 + $0x720] sm:$0xff] }
  0x72   :  { %11585 = vst [vmem:[#allocation231_spill] sm:$0xff] %v9472_v42  ;;  %11586 = vst [vmem:[#allocation232_spill] sm:$0xff] %v9477_v43  ;;  %v9487_v35 = vld [vmem:[%s11358_s3 + $0x728] sm:$0xff]  ;;  %v9492_v41 = vld [vmem:[%s11358_s3 + $0x730] sm:$0xff] }
  0x73   :  { %11587 = vst [vmem:[#allocation233_spill] sm:$0xff] %v9482_v44  ;;  %11588 = vst [vmem:[#allocation234_spill] sm:$0xff] %v9487_v35  ;;  %v9497_v42 = vld [vmem:[%s11358_s3 + $0x738] sm:$0xff]  ;;  %v9502_v43 = vld [vmem:[%s11358_s3 + $0x740] sm:$0xff] }
  0x74   :  { %11589 = vst [vmem:[#allocation235_spill] sm:$0xff] %v9492_v41  ;;  %11590 = vst [vmem:[#allocation236_spill] sm:$0xff] %v9497_v42  ;;  %v9507_v44 = vld [vmem:[%s11358_s3 + $0x748] sm:$0xff]  ;;  %v9512_v35 = vld [vmem:[%s11358_s3 + $0x750] sm:$0xff] }
  0x75   :  { %11591 = vst [vmem:[#allocation237_spill] sm:$0xff] %v9502_v43  ;;  %11592 = vst [vmem:[#allocation238_spill] sm:$0xff] %v9507_v44  ;;  %v9517_v41 = vld [vmem:[%s11358_s3 + $0x758] sm:$0xff]  ;;  %v9522_v42 = vld [vmem:[%s11358_s3 + $0x760] sm:$0xff] }
  0x76   :  { %11593 = vst [vmem:[#allocation239_spill] sm:$0xff] %v9512_v35  ;;  %11594 = vst [vmem:[#allocation240_spill] sm:$0xff] %v9517_v41  ;;  %v9527_v43 = vld [vmem:[%s11358_s3 + $0x768] sm:$0xff]  ;;  %v9532_v44 = vld [vmem:[%s11358_s3 + $0x770] sm:$0xff] }
  0x77   :  { %11595 = vst [vmem:[#allocation241_spill] sm:$0xff] %v9522_v42  ;;  %11596 = vst [vmem:[#allocation242_spill] sm:$0xff] %v9527_v43  ;;  %v9537_v35 = vld [vmem:[%s11358_s3 + $0x778] sm:$0xff]  ;;  %v9542_v41 = vld [vmem:[%s11358_s3 + $0x780] sm:$0xff] }
  0x78   :  { %11597 = vst [vmem:[#allocation243_spill] sm:$0xff] %v9532_v44  ;;  %11598 = vst [vmem:[#allocation244_spill] sm:$0xff] %v9537_v35  ;;  %v9547_v42 = vld [vmem:[%s11358_s3 + $0x788] sm:$0xff]  ;;  %v9552_v43 = vld [vmem:[%s11358_s3 + $0x790] sm:$0xff] }
  0x79   :  { %11599 = vst [vmem:[#allocation245_spill] sm:$0xff] %v9542_v41  ;;  %11600 = vst [vmem:[#allocation246_spill] sm:$0xff] %v9547_v42  ;;  %v9557_v44 = vld [vmem:[%s11358_s3 + $0x798] sm:$0xff]  ;;  %v9562_v35 = vld [vmem:[%s11358_s3 + $0x7a0] sm:$0xff] }
  0x7a   :  { %11601 = vst [vmem:[#allocation247_spill] sm:$0xff] %v9552_v43  ;;  %11602 = vst [vmem:[#allocation248_spill] sm:$0xff] %v9557_v44  ;;  %v9567_v41 = vld [vmem:[%s11358_s3 + $0x7a8] sm:$0xff]  ;;  %v9572_v42 = vld [vmem:[%s11358_s3 + $0x7b0] sm:$0xff] }
  0x7b   :  { %11603 = vst [vmem:[#allocation249_spill] sm:$0xff] %v9562_v35  ;;  %11604 = vst [vmem:[#allocation250_spill] sm:$0xff] %v9567_v41  ;;  %v9577_v43 = vld [vmem:[%s11358_s3 + $0x7b8] sm:$0xff]  ;;  %v9582_v44 = vld [vmem:[%s11358_s3 + $0x7c0] sm:$0xff] }
  0x7c   :  { %11605 = vst [vmem:[#allocation251_spill] sm:$0xff] %v9572_v42  ;;  %11606 = vst [vmem:[#allocation252_spill] sm:$0xff] %v9577_v43  ;;  %v9587_v35 = vld [vmem:[%s11358_s3 + $0x7c8] sm:$0xff]  ;;  %v9592_v41 = vld [vmem:[%s11358_s3 + $0x7d0] sm:$0xff] }
  0x7d   :  { %11607 = vst [vmem:[#allocation253_spill] sm:$0xff] %v9582_v44  ;;  %11608 = vst [vmem:[#allocation254_spill] sm:$0xff] %v9587_v35  ;;  %v9597_v42 = vld [vmem:[%s11358_s3 + $0x7d8] sm:$0xff]  ;;  %v9602_v43 = vld [vmem:[%s11358_s3 + $0x7e0] sm:$0xff] }
  0x7e   :  { %11609 = vst [vmem:[#allocation255_spill] sm:$0xff] %v9592_v41  ;;  %11610 = vst [vmem:[#allocation256_spill] sm:$0xff] %v9597_v42  ;;  %v9607_v44 = vld [vmem:[%s11358_s3 + $0x7e8] sm:$0xff]  ;;  %v9612_v35 = vld [vmem:[%s11358_s3 + $0x7f0] sm:$0xff] }
  0x7f   :  { %11611 = vst [vmem:[#allocation257_spill] sm:$0xff] %v9602_v43  ;;  %11612 = vst [vmem:[#allocation258_spill] sm:$0xff] %v9607_v44  ;;  %v9617_v41 = vld [vmem:[%s11358_s3 + $0x7f8] sm:$0xff]  ;;  %v9622_v42 = vld [vmem:[%s11358_s3 + $0x800] sm:$0xff] }
  0x80   :  { %11613 = vst [vmem:[#allocation259_spill] sm:$0xff] %v9612_v35  ;;  %11614 = vst [vmem:[#allocation260_spill] sm:$0xff] %v9617_v41  ;;  %v9627_v43 = vld [vmem:[%s11358_s3 + $0x808] sm:$0xff]  ;;  %v9632_v44 = vld [vmem:[%s11358_s3 + $0x810] sm:$0xff] }
  0x81   :  { %11615 = vst [vmem:[#allocation261_spill] sm:$0xff] %v9622_v42  ;;  %11616 = vst [vmem:[#allocation262_spill] sm:$0xff] %v9627_v43  ;;  %v9637_v35 = vld [vmem:[%s11358_s3 + $0x818] sm:$0xff]  ;;  %v9642_v41 = vld [vmem:[%s11358_s3 + $0x820] sm:$0xff] }
  0x82   :  { %11617 = vst [vmem:[#allocation263_spill] sm:$0xff] %v9632_v44  ;;  %11618 = vst [vmem:[#allocation264_spill] sm:$0xff] %v9637_v35  ;;  %v9647_v42 = vld [vmem:[%s11358_s3 + $0x828] sm:$0xff]  ;;  %v9652_v43 = vld [vmem:[%s11358_s3 + $0x830] sm:$0xff] }
  0x83   :  { %11619 = vst [vmem:[#allocation265_spill] sm:$0xff] %v9642_v41  ;;  %11620 = vst [vmem:[#allocation266_spill] sm:$0xff] %v9647_v42  ;;  %v9657_v44 = vld [vmem:[%s11358_s3 + $0x838] sm:$0xff]  ;;  %v9662_v35 = vld [vmem:[%s11358_s3 + $0x840] sm:$0xff] }
  0x84   :  { %11621 = vst [vmem:[#allocation267_spill] sm:$0xff] %v9652_v43  ;;  %11622 = vst [vmem:[#allocation268_spill] sm:$0xff] %v9657_v44  ;;  %v9667_v41 = vld [vmem:[%s11358_s3 + $0x848] sm:$0xff]  ;;  %v9672_v42 = vld [vmem:[%s11358_s3 + $0x850] sm:$0xff] }
  0x85   :  { %11623 = vst [vmem:[#allocation269_spill] sm:$0xff] %v9662_v35  ;;  %11624 = vst [vmem:[#allocation270_spill] sm:$0xff] %v9667_v41  ;;  %v9677_v43 = vld [vmem:[%s11358_s3 + $0x858] sm:$0xff]  ;;  %v9682_v44 = vld [vmem:[%s11358_s3 + $0x860] sm:$0xff] }
  0x86   :  { %11625 = vst [vmem:[#allocation271_spill] sm:$0xff] %v9672_v42  ;;  %11626 = vst [vmem:[#allocation272_spill] sm:$0xff] %v9677_v43  ;;  %v9687_v35 = vld [vmem:[%s11358_s3 + $0x868] sm:$0xff]  ;;  %v9692_v41 = vld [vmem:[%s11358_s3 + $0x870] sm:$0xff] }
  0x87   :  { %11627 = vst [vmem:[#allocation273_spill] sm:$0xff] %v9682_v44  ;;  %11628 = vst [vmem:[#allocation274_spill] sm:$0xff] %v9687_v35  ;;  %v9697_v42 = vld [vmem:[%s11358_s3 + $0x878] sm:$0xff]  ;;  %v9702_v43 = vld [vmem:[%s11358_s3 + $0x880] sm:$0xff] }
  0x88   :  { %11629 = vst [vmem:[#allocation275_spill] sm:$0xff] %v9692_v41  ;;  %11630 = vst [vmem:[#allocation276_spill] sm:$0xff] %v9697_v42  ;;  %v9707_v44 = vld [vmem:[%s11358_s3 + $0x888] sm:$0xff]  ;;  %v9712_v35 = vld [vmem:[%s11358_s3 + $0x890] sm:$0xff] }
  0x89   :  { %11631 = vst [vmem:[#allocation277_spill] sm:$0xff] %v9702_v43  ;;  %11632 = vst [vmem:[#allocation278_spill] sm:$0xff] %v9707_v44  ;;  %v9717_v41 = vld [vmem:[%s11358_s3 + $0x898] sm:$0xff]  ;;  %v9722_v42 = vld [vmem:[%s11358_s3 + $0x8a0] sm:$0xff] }
  0x8a   :  { %11633 = vst [vmem:[#allocation279_spill] sm:$0xff] %v9712_v35  ;;  %11634 = vst [vmem:[#allocation280_spill] sm:$0xff] %v9717_v41  ;;  %v9727_v43 = vld [vmem:[%s11358_s3 + $0x8a8] sm:$0xff]  ;;  %v9732_v44 = vld [vmem:[%s11358_s3 + $0x8b0] sm:$0xff] }
  0x8b   :  { %11635 = vst [vmem:[#allocation281_spill] sm:$0xff] %v9722_v42  ;;  %11636 = vst [vmem:[#allocation282_spill] sm:$0xff] %v9727_v43  ;;  %v9737_v35 = vld [vmem:[%s11358_s3 + $0x8b8] sm:$0xff]  ;;  %v9742_v41 = vld [vmem:[%s11358_s3 + $0x8c0] sm:$0xff] }
  0x8c   :  { %11637 = vst [vmem:[#allocation283_spill] sm:$0xff] %v9732_v44  ;;  %11638 = vst [vmem:[#allocation284_spill] sm:$0xff] %v9737_v35  ;;  %v9747_v42 = vld [vmem:[%s11358_s3 + $0x8c8] sm:$0xff]  ;;  %v9752_v43 = vld [vmem:[%s11358_s3 + $0x8d0] sm:$0xff] }
  0x8d   :  { %11639 = vst [vmem:[#allocation285_spill] sm:$0xff] %v9742_v41  ;;  %11640 = vst [vmem:[#allocation286_spill] sm:$0xff] %v9747_v42  ;;  %v9757_v44 = vld [vmem:[%s11358_s3 + $0x8d8] sm:$0xff]  ;;  %v9762_v35 = vld [vmem:[%s11358_s3 + $0x8e0] sm:$0xff] }
  0x8e   :  { %11641 = vst [vmem:[#allocation287_spill] sm:$0xff] %v9752_v43  ;;  %11642 = vst [vmem:[#allocation288_spill] sm:$0xff] %v9757_v44  ;;  %v9767_v41 = vld [vmem:[%s11358_s3 + $0x8e8] sm:$0xff]  ;;  %v9772_v42 = vld [vmem:[%s11358_s3 + $0x8f0] sm:$0xff] }
  0x8f   :  { %11643 = vst [vmem:[#allocation289_spill] sm:$0xff] %v9762_v35  ;;  %11644 = vst [vmem:[#allocation290_spill] sm:$0xff] %v9767_v41  ;;  %v9777_v43 = vld [vmem:[%s11358_s3 + $0x8f8] sm:$0xff]  ;;  %v9782_v44 = vld [vmem:[%s11358_s3 + $0x900] sm:$0xff] }
  0x90   :  { %11645 = vst [vmem:[#allocation291_spill] sm:$0xff] %v9772_v42  ;;  %11646 = vst [vmem:[#allocation292_spill] sm:$0xff] %v9777_v43  ;;  %v9787_v35 = vld [vmem:[%s11358_s3 + $0x908] sm:$0xff]  ;;  %v9792_v41 = vld [vmem:[%s11358_s3 + $0x910] sm:$0xff] }
  0x91   :  { %11647 = vst [vmem:[#allocation293_spill] sm:$0xff] %v9782_v44  ;;  %11648 = vst [vmem:[#allocation294_spill] sm:$0xff] %v9787_v35  ;;  %v9797_v42 = vld [vmem:[%s11358_s3 + $0x918] sm:$0xff]  ;;  %v9802_v43 = vld [vmem:[%s11358_s3 + $0x920] sm:$0xff] }
  0x92   :  { %11649 = vst [vmem:[#allocation295_spill] sm:$0xff] %v9792_v41  ;;  %11650 = vst [vmem:[#allocation296_spill] sm:$0xff] %v9797_v42  ;;  %v9807_v44 = vld [vmem:[%s11358_s3 + $0x928] sm:$0xff]  ;;  %v9812_v35 = vld [vmem:[%s11358_s3 + $0x930] sm:$0xff] }
  0x93   :  { %11651 = vst [vmem:[#allocation297_spill] sm:$0xff] %v9802_v43  ;;  %11652 = vst [vmem:[#allocation298_spill] sm:$0xff] %v9807_v44  ;;  %v9817_v41 = vld [vmem:[%s11358_s3 + $0x938] sm:$0xff]  ;;  %v9822_v42 = vld [vmem:[%s11358_s3 + $0x940] sm:$0xff] }
  0x94   :  { %11653 = vst [vmem:[#allocation299_spill] sm:$0xff] %v9812_v35  ;;  %11654 = vst [vmem:[#allocation300_spill] sm:$0xff] %v9817_v41  ;;  %v9827_v43 = vld [vmem:[%s11358_s3 + $0x948] sm:$0xff]  ;;  %v9832_v44 = vld [vmem:[%s11358_s3 + $0x950] sm:$0xff] }
  0x95   :  { %11655 = vst [vmem:[#allocation301_spill] sm:$0xff] %v9822_v42  ;;  %11656 = vst [vmem:[#allocation302_spill] sm:$0xff] %v9827_v43  ;;  %v9837_v35 = vld [vmem:[%s11358_s3 + $0x958] sm:$0xff]  ;;  %v9842_v41 = vld [vmem:[%s11358_s3 + $0x960] sm:$0xff] }
  0x96   :  { %11657 = vst [vmem:[#allocation303_spill] sm:$0xff] %v9832_v44  ;;  %11658 = vst [vmem:[#allocation304_spill] sm:$0xff] %v9837_v35  ;;  %v9847_v42 = vld [vmem:[%s11358_s3 + $0x968] sm:$0xff]  ;;  %v9852_v43 = vld [vmem:[%s11358_s3 + $0x970] sm:$0xff] }
  0x97   :  { %11659 = vst [vmem:[#allocation305_spill] sm:$0xff] %v9842_v41  ;;  %11660 = vst [vmem:[#allocation306_spill] sm:$0xff] %v9847_v42  ;;  %v9857_v44 = vld [vmem:[%s11358_s3 + $0x978] sm:$0xff]  ;;  %v9862_v35 = vld [vmem:[%s11358_s3 + $0x980] sm:$0xff] }
  0x98   :  { %11661 = vst [vmem:[#allocation307_spill] sm:$0xff] %v9852_v43  ;;  %11662 = vst [vmem:[#allocation308_spill] sm:$0xff] %v9857_v44  ;;  %v9867_v41 = vld [vmem:[%s11358_s3 + $0x988] sm:$0xff]  ;;  %v9872_v42 = vld [vmem:[%s11358_s3 + $0x990] sm:$0xff] }
  0x99   :  { %11663 = vst [vmem:[#allocation309_spill] sm:$0xff] %v9862_v35  ;;  %11664 = vst [vmem:[#allocation310_spill] sm:$0xff] %v9867_v41  ;;  %v9877_v43 = vld [vmem:[%s11358_s3 + $0x998] sm:$0xff]  ;;  %v9882_v44 = vld [vmem:[%s11358_s3 + $0x9a0] sm:$0xff] }
  0x9a   :  { %11665 = vst [vmem:[#allocation311_spill] sm:$0xff] %v9872_v42  ;;  %11666 = vst [vmem:[#allocation312_spill] sm:$0xff] %v9877_v43  ;;  %v9887_v35 = vld [vmem:[%s11358_s3 + $0x9a8] sm:$0xff]  ;;  %v9892_v41 = vld [vmem:[%s11358_s3 + $0x9b0] sm:$0xff] }
  0x9b   :  { %11667 = vst [vmem:[#allocation313_spill] sm:$0xff] %v9882_v44  ;;  %11668 = vst [vmem:[#allocation314_spill] sm:$0xff] %v9887_v35  ;;  %v9897_v42 = vld [vmem:[%s11358_s3 + $0x9b8] sm:$0xff]  ;;  %v9902_v43 = vld [vmem:[%s11358_s3 + $0x9c0] sm:$0xff] }
  0x9c   :  { %11669 = vst [vmem:[#allocation315_spill] sm:$0xff] %v9892_v41  ;;  %11670 = vst [vmem:[#allocation316_spill] sm:$0xff] %v9897_v42  ;;  %v9907_v44 = vld [vmem:[%s11358_s3 + $0x9c8] sm:$0xff]  ;;  %v9912_v35 = vld [vmem:[%s11358_s3 + $0x9d0] sm:$0xff] }
  0x9d   :  { %11671 = vst [vmem:[#allocation317_spill] sm:$0xff] %v9902_v43  ;;  %11672 = vst [vmem:[#allocation318_spill] sm:$0xff] %v9907_v44  ;;  %v9917_v41 = vld [vmem:[%s11358_s3 + $0x9d8] sm:$0xff]  ;;  %v9922_v42 = vld [vmem:[%s11358_s3 + $0x9e0] sm:$0xff] }
  0x9e   :  { %11673 = vst [vmem:[#allocation319_spill] sm:$0xff] %v9912_v35  ;;  %11674 = vst [vmem:[#allocation320_spill] sm:$0xff] %v9917_v41  ;;  %v9927_v43 = vld [vmem:[%s11358_s3 + $0x9e8] sm:$0xff]  ;;  %v9932_v44 = vld [vmem:[%s11358_s3 + $0x9f0] sm:$0xff] }
  0x9f   :  { %11675 = vst [vmem:[#allocation321_spill] sm:$0xff] %v9922_v42  ;;  %11676 = vst [vmem:[#allocation322_spill] sm:$0xff] %v9927_v43  ;;  %v9937_v35 = vld [vmem:[%s11358_s3 + $0x9f8] sm:$0xff] }
  0xa0   :  { %11677 = vst [vmem:[#allocation323_spill] sm:$0xff] %v9932_v44  ;;  %11678 = vst [vmem:[#allocation324_spill] sm:$0xff] %v9937_v35 }
  0xa1   :  { %705 = vsyncadd [#allocation3], 40960  ;;  %v771_v41 = vld [vmem:[%s11356_s1 + $0x8] sm:$0xf]  ;;  %vm965_vm0 = vcmask 1043456   ;;  %v770_v42 = vld [vmem:[%s11356_s1] sm:$0xff] }
  0xa2   :  { %7284 = vmatprep.subr.msk.mxu0 %vm965_vm0, %v771_v41  ;;  %v706_v43 = vld [vmem:[%s11355_s0] sm:$0xff]  ;;  %vm772_vm1 = vcmask 97280   ;;  %v707_v44 = vld [vmem:[%s11355_s0 + $0x8] sm:$0xff]  ;;  %v708_v35 = vld [vmem:[%s11355_s0 + $0x10] sm:$0xff] }
  0xa3   :  { %7285 = vmatpush3.msk.msra.mxu0 %vm965_vm0, %v771_v41  ;;  %7288 = vmatprep.mubr.msk.f32.mxu0 %vm772_vm1, %v706_v43  ;;  %v709_v41 = vld [vmem:[%s11355_s0 + $0x18] sm:$0xff]  ;;  %v710_v43 = vld [vmem:[%s11355_s0 + $0x20] sm:$0xff] }
  0xa4   :  { %7286 = vmatprep.subr.mxu0 %v770_v42  ;;  %v10298_v19 = vld [vmem:[%s11357_s2] ss:$0 sm:$0xff] }
  0xa5   :  { %7287 = vmatpush3.msra.mxu0 %v770_v42  ;;  %v711_v42 = vld [vmem:[%s11355_s0 + $0x28] sm:$0xff] }
  0xa6   :  { %7289 = vmatmul.mubr.msk.f32.vlgmr.msra.gmra.mxu0 %vm772_vm1, %v707_v44  ;;  %v713_v44 = vld [vmem:[%s11355_s0 + $0x38] sm:$0xff] }
  0xa7   :  { %7291 = vmatprep.mubr.msk.f32.mxu0 %vm772_vm1, %v708_v35  ;;  %v712_v35 = vld [vmem:[%s11355_s0 + $0x30] sm:$0xff] }
  0xaa   :  { %7292 = vmatmul.mubr.msk.f32.gmra.mxu0 %vm772_vm1, %v709_v41  ;;  %v714_v41 = vld [vmem:[%s11355_s0 + $0x40] sm:$0xff] }
  0xab   :  { %7294 = vmatprep.mubr.msk.f32.mxu0 %vm772_vm1, %v710_v43  ;;  %v715_v43 = vld [vmem:[%s11355_s0 + $0x48] sm:$0xff] }
  0xae   :  { %7295 = vmatmul.mubr.msk.f32.gmra.mxu0 %vm772_vm1, %v711_v42  ;;  %v716_v42 = vld [vmem:[%s11355_s0 + $0x50] sm:$0xff] }
  0xaf   :  { %7297 = vmatprep.mubr.msk.f32.mxu0 %vm772_vm1, %v712_v35  ;;  %v717_v35 = vld [vmem:[%s11355_s0 + $0x58] sm:$0xff] }
  0xb2   :  { %7298 = vmatmul.mubr.msk.f32.gmra.mxu0 %vm772_vm1, %v713_v44  ;;  %v718_v44 = vld [vmem:[%s11355_s0 + $0x60] sm:$0xff] }
  0xb3   :  { %7300 = vmatprep.mubr.msk.f32.mxu0 %vm772_vm1, %v714_v41  ;;  %v719_v41 = vld [vmem:[%s11355_s0 + $0x68] sm:$0xff] }
  0xb6   :  { %7301 = vmatmul.mubr.msk.f32.gmra.mxu0 %vm772_vm1, %v715_v43  ;;  %v720_v43 = vld [vmem:[%s11355_s0 + $0x70] sm:$0xff] }
  0xb7   :  { %7303 = vmatprep.mubr.msk.f32.mxu0 %vm772_vm1, %v716_v42  ;;  %v721_v42 = vld [vmem:[%s11355_s0 + $0x78] sm:$0xff] }
  0xba   :  { %7304 = vmatmul.mubr.msk.f32.gmra.mxu0 %vm772_vm1, %v717_v35  ;;  %v722_v35 = vld [vmem:[%s11355_s0 + $0x80] sm:$0xff] }
  0xbb   :  { %7306 = vmatprep.mubr.msk.f32.mxu0 %vm772_vm1, %v718_v44  ;;  %v723_v44 = vld [vmem:[%s11355_s0 + $0x88] sm:$0xff] }
  0xbe   :  { %7307 = vmatmul.mubr.msk.f32.gmra.mxu0 %vm772_vm1, %v719_v41  ;;  %v724_v41 = vld [vmem:[%s11355_s0 + $0x90] sm:$0xff] }
  0xbf   :  { %7309 = vmatprep.mubr.msk.f32.mxu0 %vm772_vm1, %v720_v43  ;;  %v725_v43 = vld [vmem:[%s11355_s0 + $0x98] sm:$0xff] }
  0xc2   :  { %7310 = vmatmul.mubr.msk.f32.gmra.mxu0 %vm772_vm1, %v721_v42  ;;  %v726_v42 = vld [vmem:[%s11355_s0 + $0xa0] sm:$0xff] }
  0xc3   :  { %7312 = vmatprep.mubr.msk.f32.mxu0 %vm772_vm1, %v722_v35  ;;  %v727_v35 = vld [vmem:[%s11355_s0 + $0xa8] sm:$0xff] }
  0xc6   :  { %7313 = vmatmul.mubr.msk.f32.gmra.mxu0 %vm772_vm1, %v723_v44  ;;  %v728_v44 = vld [vmem:[%s11355_s0 + $0xb0] sm:$0xff] }
  0xc7   :  { %7315 = vmatprep.mubr.msk.f32.mxu0 %vm772_vm1, %v724_v41  ;;  %v729_v41 = vld [vmem:[%s11355_s0 + $0xb8] sm:$0xff] }
  0xca   :  { %7316 = vmatmul.mubr.msk.f32.gmra.mxu0 %vm772_vm1, %v725_v43  ;;  %v730_v43 = vld [vmem:[%s11355_s0 + $0xc0] sm:$0xff] }
  0xcb   :  { %7318 = vmatprep.mubr.msk.f32.mxu0 %vm772_vm1, %v726_v42  ;;  %v731_v42 = vld [vmem:[%s11355_s0 + $0xc8] sm:$0xff] }
  0xce   :  { %7319 = vmatmul.mubr.msk.f32.gmra.mxu0 %vm772_vm1, %v727_v35  ;;  %v732_v35 = vld [vmem:[%s11355_s0 + $0xd0] sm:$0xff] }
  0xcf   :  { %7321 = vmatprep.mubr.msk.f32.mxu0 %vm772_vm1, %v728_v44  ;;  %v733_v44 = vld [vmem:[%s11355_s0 + $0xd8] sm:$0xff] }
  0xd2   :  { %7322 = vmatmul.mubr.msk.f32.gmra.mxu0 %vm772_vm1, %v729_v41  ;;  %v734_v41 = vld [vmem:[%s11355_s0 + $0xe0] sm:$0xff] }
  0xd3   :  { %7324 = vmatprep.mubr.msk.f32.mxu0 %vm772_vm1, %v730_v43  ;;  %v735_v43 = vld [vmem:[%s11355_s0 + $0xe8] sm:$0xff] }
  0xd6   :  { %7325 = vmatmul.mubr.msk.f32.gmra.mxu0 %vm772_vm1, %v731_v42  ;;  %v736_v42 = vld [vmem:[%s11355_s0 + $0xf0] sm:$0xff] }
  0xd7   :  { %7327 = vmatprep.mubr.msk.f32.mxu0 %vm772_vm1, %v732_v35  ;;  %v737_v35 = vld [vmem:[%s11355_s0 + $0xf8] sm:$0xff] }
  0xda   :  { %7328 = vmatmul.mubr.msk.f32.gmra.mxu0 %vm772_vm1, %v733_v44  ;;  %v738_v44 = vld [vmem:[%s11355_s0 + $0x100] sm:$0xff] }
  0xdb   :  { %7330 = vmatprep.mubr.msk.f32.mxu0 %vm772_vm1, %v734_v41  ;;  %v739_v41 = vld [vmem:[%s11355_s0 + $0x108] sm:$0xff] }
  0xde   :  { %7331 = vmatmul.mubr.msk.f32.gmra.mxu0 %vm772_vm1, %v735_v43  ;;  %v740_v43 = vld [vmem:[%s11355_s0 + $0x110] sm:$0xff] }
  0xdf   :  { %7333 = vmatprep.mubr.msk.f32.mxu0 %vm772_vm1, %v736_v42  ;;  %v741_v42 = vld [vmem:[%s11355_s0 + $0x118] sm:$0xff] }
  0xe2   :  { %7334 = vmatmul.mubr.msk.f32.gmra.mxu0 %vm772_vm1, %v737_v35  ;;  %v742_v35 = vld [vmem:[%s11355_s0 + $0x120] sm:$0xff] }
  0xe3   :  { %7336 = vmatprep.mubr.msk.f32.mxu0 %vm772_vm1, %v738_v44  ;;  %v743_v44 = vld [vmem:[%s11355_s0 + $0x128] sm:$0xff] }
  0xe6   :  { %7337 = vmatmul.mubr.msk.f32.gmra.mxu0 %vm772_vm1, %v739_v41  ;;  %v744_v41 = vld [vmem:[%s11355_s0 + $0x130] sm:$0xff] }
  0xe7   :  { %7339 = vmatprep.mubr.msk.f32.mxu0 %vm772_vm1, %v740_v43  ;;  %v745_v43 = vld [vmem:[%s11355_s0 + $0x138] sm:$0xff] }
  0xea   :  { %7340 = vmatmul.mubr.msk.f32.gmra.mxu0 %vm772_vm1, %v741_v42  ;;  %v746_v42 = vld [vmem:[%s11355_s0 + $0x140] sm:$0xff] }
  0xeb   :  { %7342 = vmatprep.mubr.msk.f32.mxu0 %vm772_vm1, %v742_v35  ;;  %v747_v35 = vld [vmem:[%s11355_s0 + $0x148] sm:$0xff] }
  0xee   :  { %7343 = vmatmul.mubr.msk.f32.gmra.mxu0 %vm772_vm1, %v743_v44  ;;  %v748_v44 = vld [vmem:[%s11355_s0 + $0x150] sm:$0xff] }
  0xef   :  { %7345 = vmatprep.mubr.msk.f32.mxu0 %vm772_vm1, %v744_v41  ;;  %v749_v41 = vld [vmem:[%s11355_s0 + $0x158] sm:$0xff] }
  0xf2   :  { %7346 = vmatmul.mubr.msk.f32.gmra.mxu0 %vm772_vm1, %v745_v43  ;;  %v750_v43 = vld [vmem:[%s11355_s0 + $0x160] sm:$0xff] }
  0xf3   :  { %7348 = vmatprep.mubr.msk.f32.mxu0 %vm772_vm1, %v746_v42  ;;  %v751_v42 = vld [vmem:[%s11355_s0 + $0x168] sm:$0xff] }
  0xf6   :  { %7349 = vmatmul.mubr.msk.f32.gmra.mxu0 %vm772_vm1, %v747_v35  ;;  %v752_v35 = vld [vmem:[%s11355_s0 + $0x170] sm:$0xff] }
  0xf7   :  { %7351 = vmatprep.mubr.msk.f32.mxu0 %vm772_vm1, %v748_v44  ;;  %v753_v44 = vld [vmem:[%s11355_s0 + $0x178] sm:$0xff] }
  0xfa   :  { %7352 = vmatmul.mubr.msk.f32.gmra.mxu0 %vm772_vm1, %v749_v41  ;;  %v754_v41 = vld [vmem:[%s11355_s0 + $0x180] sm:$0xff] }
  0xfb   :  { %7354 = vmatprep.mubr.msk.f32.mxu0 %vm772_vm1, %v750_v43  ;;  %v755_v43 = vld [vmem:[%s11355_s0 + $0x188] sm:$0xff] }
  0xfe   :  { %7355 = vmatmul.mubr.msk.f32.gmra.mxu0 %vm772_vm1, %v751_v42  ;;  %v756_v42 = vld [vmem:[%s11355_s0 + $0x190] sm:$0xff] }
  0xff   :  { %7357 = vmatprep.mubr.msk.f32.mxu0 %vm772_vm1, %v752_v35  ;;  %v757_v35 = vld [vmem:[%s11355_s0 + $0x198] sm:$0xff] }
 0x102   :  { %7358 = vmatmul.mubr.msk.f32.gmra.mxu0 %vm772_vm1, %v753_v44  ;;  %v758_v44 = vld [vmem:[%s11355_s0 + $0x1a0] sm:$0xff] }
 0x103   :  { %7360 = vmatprep.mubr.msk.f32.mxu0 %vm772_vm1, %v754_v41  ;;  %v759_v41 = vld [vmem:[%s11355_s0 + $0x1a8] sm:$0xff] }
 0x106   :  { %7361 = vmatmul.mubr.msk.f32.gmra.mxu0 %vm772_vm1, %v755_v43  ;;  %v760_v43 = vld [vmem:[%s11355_s0 + $0x1b0] sm:$0xff] }
 0x107   :  { %7363 = vmatprep.mubr.msk.f32.mxu0 %vm772_vm1, %v756_v42  ;;  %v761_v42 = vld [vmem:[%s11355_s0 + $0x1b8] sm:$0xff] }
 0x10a   :  { %7364 = vmatmul.mubr.msk.f32.gmra.mxu0 %vm772_vm1, %v757_v35  ;;  %v762_v35 = vld [vmem:[%s11355_s0 + $0x1c0] sm:$0xff] }
 0x10b   :  { %7366 = vmatprep.mubr.msk.f32.mxu0 %vm772_vm1, %v758_v44  ;;  %v763_v44 = vld [vmem:[%s11355_s0 + $0x1c8] sm:$0xff] }
 0x10e   :  { %7367 = vmatmul.mubr.msk.f32.gmra.mxu0 %vm772_vm1, %v759_v41  ;;  %v764_v41 = vld [vmem:[%s11355_s0 + $0x1d0] sm:$0xff] }
 0x10f   :  { %7369 = vmatprep.mubr.msk.f32.mxu0 %vm772_vm1, %v760_v43  ;;  %v765_v43 = vld [vmem:[%s11355_s0 + $0x1d8] sm:$0xff] }
 0x112   :  { %7370 = vmatmul.mubr.msk.f32.gmra.mxu0 %vm772_vm1, %v761_v42  ;;  %v766_v42 = vld [vmem:[%s11355_s0 + $0x1e0] sm:$0xff] }
 0x113   :  { %7372 = vmatprep.mubr.msk.f32.mxu0 %vm772_vm1, %v762_v35  ;;  %v767_v35 = vld [vmem:[%s11355_s0 + $0x1e8] sm:$0xff] }
 0x116   :  { %7373 = vmatmul.mubr.msk.f32.gmra.mxu0 %vm772_vm1, %v763_v44  ;;  %v768_v44 = vld [vmem:[%s11355_s0 + $0x1f0] sm:$0xff] }
 0x117   :  { %7375 = vmatprep.mubr.msk.f32.mxu0 %vm772_vm1, %v764_v41  ;;  %v769_v41 = vld [vmem:[%s11355_s0 + $0x1f8] sm:$0xff] }
 0x11a   :  { %7376 = vmatmul.mubr.msk.f32.gmra.mxu0 %vm772_vm1, %v765_v43 }
 0x11b   :  { %7378 = vmatprep.mubr.msk.f32.mxu0 %vm772_vm1, %v766_v42 }
 0x11e   :  { %7379 = vmatmul.mubr.msk.f32.gmra.mxu0 %vm772_vm1, %v767_v35 }
 0x11f   :  { %7381 = vmatprep.mubr.msk.f32.mxu0 %vm772_vm1, %v768_v44 }
 0x122   :  { %7382 = vmatmul.mubr.msk.f32.gmra.mxu0 %vm772_vm1, %v769_v41 }
 0x166   :  { %v10201_v43 = vpop.f32.mrf.mxu0 }
 0x168   :  { %v10203_v42 = vpop.f32.mrf.mxu0 }
 0x16a   :  { %v10205_v46 = vpop.f32.mrf.mxu0 }
 0x16c   :  { %v10207_v36 = vpop.f32.mrf.mxu0 }
 0x16e   :  { %v10209_v47 = vpop.f32.mrf.mxu0 }
 0x170   :  { %v10211_v37 = vpop.f32.mrf.mxu0 }
 0x172   :  { %v10213_v35 = vpop.f32.mrf.mxu0 }
 0x174   :  { %v10215_v44 = vpop.f32.mrf.mxu0 }
 0x176   :  { %v10217_v48 = vpop.f32.mrf.mxu0 }
 0x178   :  { %v10219_v38 = vpop.f32.mrf.mxu0 }
 0x17a   :  { %v10221_v41 = vpop.f32.mrf.mxu0 }
 0x17c   :  { %v10223_v49 = vpop.f32.mrf.mxu0 }
 0x17e   :  { %v10225_v39 = vpop.f32.mrf.mxu0 }
 0x180   :  { %v10227_v30 = vpop.f32.mrf.mxu0 }
 0x182   :  { %v10229_v40 = vpop.f32.mrf.mxu0 }
 0x184   :  { %v10231_v31 = vpop.f32.mrf.mxu0 }
 0x186   :  { %v7314_v32 = vpop.f32.mrf.mxu0 }
 0x187   :  { %v1355_v51 = vmax.f32 %v10201_v43, %v7314_v32 }
 0x188   :  { %v1115_v33 = vpop.f32.mrf.mxu0 }
 0x189   :  { %v1354_v52 = vmax.f32 %v10203_v42, %v1115_v33 }
 0x18a   :  { %v7317_v34 = vpop.f32.mrf.mxu0 }
 0x18b   :  { %v1357_v25 = vmax.f32 %v10205_v46, %v7317_v34 }
 0x18c   :  { %v1125_v53 = vpop.f32.mrf.mxu0 }
 0x18d   :  { %v1356_v26 = vmax.f32 %v10207_v36, %v1125_v53 }
 0x18e   :  { %v10237_v54 = vpop.f32.mrf.mxu0 }
 0x18f   :  { %v1359_v27 = vmax.f32 %v10209_v47, %v10237_v54 }
 0x190   :  { %v10241_v45 = vpop.f32.mrf.mxu0 }
 0x192   :  { %v10245_v32 = vpop.f32.mrf.mxu0 }
 0x194   :  { %v10249_v43 = vpop.f32.mrf.mxu0 }
 0x196   :  { %v10253_v36 = vpop.f32.mrf.mxu0 }
 0x198   :  { %v10257_v47 = vpop.f32.mrf.mxu0 }
 0x19a   :  { %v10261_v54 = vpop.f32.mrf.mxu0 }
 0x19c   :  { %v10265_v33 = vpop.f32.mrf.mxu0 }
 0x19e   :  { %v10269_v28 = vpop.f32.mrf.mxu0 }
 0x1a0   :  { %v10273_v29 = vpop.f32.mrf.mxu0 }
 0x1a2   :  { %v10277_v20 = vpop.f32.mrf.mxu0 }
 0x1a4   :  { %v10281_v56 = vpop.f32.mrf.mxu0 }
 0x1a6   :  { %v7338_v21 = vpop.f32.mrf.mxu0 }
 0x1a8   :  { %v1195_v57 = vpop.f32.mrf.mxu0 }
 0x1aa   :  { %v7341_v22 = vpop.f32.mrf.mxu0 }
 0x1ac   :  { %v1205_v58 = vpop.f32.mrf.mxu0 }
 0x1ae   :  { %v7344_v46 = vpop.f32.mrf.mxu0 }
 0x1b0   :  { %v1215_v23 = vpop.f32.mrf.mxu0 }
 0x1b2   :  { %v7347_v59 = vpop.f32.mrf.mxu0 }
 0x1b4   :  { %v1225_v24 = vpop.f32.mrf.mxu0 }
 0x1b6   :  { %v7350_v15 = vpop.f32.mrf.mxu0 }
 0x1b8   :  { %v1235_v53 = vpop.f32.mrf.mxu0 }
 0x1ba   :  { %v7353_v50 = vpop.f32.mrf.mxu0 }
 0x1bc   :  { %v10285_v16 = vpop.f32.mrf.mxu0 }
 0x1be   :  { %v10287_v17 = vpop.f32.mrf.mxu0 }
 0x1c0   :  { %v10289_v42 = vpop.f32.mrf.mxu0 }
 0x1c2   :  { %v10291_v60 = vpop.f32.mrf.mxu0 }
 0x1c4   :  { %v10293_v34 = vpop.f32.mrf.mxu0 }
 0x1c6   :  { %v7362_v18 = vpop.f32.mrf.mxu0 }
 0x1c7   :  { %v1371_v61 = vmax.f32 %v7338_v21, %v7362_v18 }
 0x1c8   :  { %v1275_v10 = vpop.f32.mrf.mxu0 }
 0x1c9   :  { %v1387_v62 = vmax.f32 %v1355_v51, %v1371_v61  ;;  %v1370_v11 = vmax.f32 %v1195_v57, %v1275_v10 }
 0x1ca   :  { %v7365_v63 = vpop.f32.mrf.mxu0 }
 0x1cb   :  { %v1410_v12 = vadd.f32 %v10298_v19, %v1387_v62  ;;  %v1386_v55 = vmax.f32 %v1354_v52, %v1370_v11  ;;  %v1373_v13 = vmax.f32 %v7341_v22, %v7365_v63  ;;  %v11682_v52 = vmax.f32 %v10217_v48, %v10253_v36 }
 0x1cc   :  { %v1285_v14 = vpop.f32.mrf.mxu0  ;;  %v11683_v62 = vmax.f32 %v10219_v38, %v10257_v47  ;;  %v11684_v48 = vmax.f32 %v10221_v41, %v10261_v54 }
 0x1cd   :  { %8238 = vtanh.f32 %v1410_v12  ;;  %v1409_v5 = vadd.f32 %v10298_v19, %v1386_v55  ;;  %v1389_v0 = vmax.f32 %v1357_v25, %v1373_v13  ;;  %v1372_v6 = vmax.f32 %v1205_v58, %v1285_v14 }
 0x1ce   :  { %v7368_v18 = vpop.f32.mrf.mxu0  ;;  %v11679_v13 = vmax.f32 %v10211_v37, %v10241_v45 }
 0x1cf   :  { %8240 = vtanh.f32 %v1409_v5  ;;  %v1412_v21 = vadd.f32 %v10298_v19, %v1389_v0  ;;  %v1388_v1 = vmax.f32 %v1356_v26, %v1372_v6  ;;  %v1375_v7 = vmax.f32 %v7344_v46, %v7368_v18 }
 0x1d0   :  { %v1295_v2 = vpop.f32.mrf.mxu0  ;;  %v11680_v6 = vmax.f32 %v10213_v35, %v10245_v32 }
 0x1d1   :  { %8242 = vtanh.f32 %v1412_v21  ;;  %v1411_v10 = vadd.f32 %v10298_v19, %v1388_v1  ;;  %v1391_v51 = vmax.f32 %v1359_v27, %v1375_v7  ;;  %v1374_v57 = vmax.f32 %v1215_v23, %v1295_v2 }
 0x1d2   :  { %v7371_v11 = vpop.f32.mrf.mxu0  ;;  %v11681_v23 = vmax.f32 %v10215_v44, %v10249_v43 }
 0x1d3   :  { %8244 = vtanh.f32 %v1411_v10  ;;  %v1414_v12 = vadd.f32 %v10298_v19, %v1391_v51  ;;  %v1390_v14 = vmax.f32 %v11679_v13, %v1374_v57  ;;  %v1377_v22 = vmax.f32 %v7347_v59, %v7371_v11 }
 0x1d4   :  { %v1305_v5 = vpop.f32.mrf.mxu0 }
 0x1d5   :  { %8246 = vtanh.f32 %v1414_v12  ;;  %v1413_v0 = vadd.f32 %v10298_v19, %v1390_v14  ;;  %v1393_v25 = vmax.f32 %v11680_v6, %v1377_v22  ;;  %v1376_v1 = vmax.f32 %v1225_v24, %v1305_v5 }
 0x1d6   :  { %v7374_v7 = vpop.f32.mrf.mxu0 }
 0x1d7   :  { %8248 = vtanh.f32 %v1413_v0  ;;  %v1416_v2 = vadd.f32 %v10298_v19, %v1393_v25  ;;  %v1392_v26 = vmax.f32 %v11681_v23, %v1376_v1  ;;  %v1379_v27 = vmax.f32 %v7350_v15, %v7374_v7 }
 0x1d8   :  { %v1315_v37 = vpop.f32.mrf.mxu0 }
 0x1d9   :  { %8250 = vtanh.f32 %v1416_v2  ;;  %v1415_v45 = vadd.f32 %v10298_v19, %v1392_v26  ;;  %v1395_v55 = vmax.f32 %v11682_v52, %v1379_v27  ;;  %v1378_v58 = vmax.f32 %v1235_v53, %v1315_v37 }
 0x1da   :  { %v10320_v59 = vpop.eup %8238  ;;  %v7377_v24 = vpop.f32.mrf.mxu0 }
 0x1db   :  { %8252 = vtanh.f32 %v1415_v45  ;;  %v1418_v61 = vadd.f32 %v10298_v19, %v1395_v55  ;;  %v1394_v63 = vmax.f32 %v11683_v62, %v1378_v58  ;;  %v1381_v15 = vmax.f32 %v7353_v50, %v7377_v24 }
 0x1dc   :  { %v10326_v35 = vpop.eup %8240  ;;  %v1325_v44 = vpop.f32.mrf.mxu0  ;;  %v11685_v50 = vmax.f32 %v10223_v49, %v10265_v33 }
 0x1dd   :  { %8254 = vtanh.f32 %v1418_v61  ;;  %v1417_v32 = vadd.f32 %v10298_v19, %v1394_v63  ;;  %v1397_v43 = vmax.f32 %v11684_v48, %v1381_v15  ;;  %v1380_v36 = vmax.f32 %v10285_v16, %v1325_v44 }
 0x1de   :  { %v10333_v46 = vpop.eup %8242  ;;  %v7380_v53 = vpop.f32.mrf.mxu0  ;;  %v11686_v16 = vmax.f32 %v10225_v39, %v10269_v28  ;;  %v11688_v39 = vmax.f32 %v10229_v40, %v10277_v20 }
 0x1df   :  { %8256 = vtanh.f32 %v1417_v32  ;;  %v1420_v38 = vadd.f32 %v10298_v19, %v1397_v43  ;;  %v1396_v47 = vmax.f32 %v11685_v50, %v1380_v36  ;;  %v1383_v18 = vmax.f32 %v10287_v17, %v7380_v53 }
 0x1e0   :  { %v10340_v21 = vpop.eup %8244  ;;  %v1335_v10 = vpop.f32.mrf.mxu0  ;;  %v11687_v17 = vmax.f32 %v10227_v30, %v10273_v29  ;;  %v11689_v30 = vmax.f32 %v10231_v31, %v10281_v56 }
 0x1e1   :  { %8258 = vtanh.f32 %v1420_v38  ;;  %v1419_v41 = vadd.f32 %v10298_v19, %v1396_v47  ;;  %v1399_v54 = vmax.f32 %v11686_v16, %v1383_v18  ;;  %v1382_v51 = vmax.f32 %v10289_v42, %v1335_v10 }
 0x1e2   :  { %v10347_v57 = vpop.eup %8246  ;;  %v7383_v11 = vpop.f32.mrf.mxu0 }
 0x1e3   :  { %8260 = vtanh.f32 %v1419_v41  ;;  %v1422_v49 = vadd.f32 %v10298_v19, %v1399_v54  ;;  %v1398_v33 = vmax.f32 %v11687_v17, %v1382_v51  ;;  %v1385_v12 = vmax.f32 %v10291_v60, %v7383_v11 }
 0x1e4   :  { %v10354_v13 = vpop.eup %8248  ;;  %v1345_v14 = vpop.f32.mrf.mxu0 }
 0x1e5   :  { %8262 = vtanh.f32 %v1422_v49  ;;  %v1421_v28 = vadd.f32 %v10298_v19, %v1398_v33  ;;  %v1401_v42 = vmax.f32 %v11688_v39, %v1385_v12  ;;  %v1384_v22 = vmax.f32 %v10293_v34, %v1345_v14 }
 0x1e6   :  { %v10361_v5 = vpop.eup %8250 }
 0x1e7   :  { %8264 = vtanh.f32 %v1421_v28  ;;  %v1424_v29 = vadd.f32 %v10298_v19, %v1401_v42  ;;  %v1400_v60 = vmax.f32 %v11689_v30, %v1384_v22 }
 0x1e8   :  { %v10367_v0 = vpop.eup %8252 }
 0x1e9   :  { %8266 = vtanh.f32 %v1424_v29  ;;  %v1423_v6 = vadd.f32 %v10298_v19, %v1400_v60 }
 0x1ea   :  { %v10370_v25 = vpop.eup %8254 }
 0x1eb   :  { %8268 = vtanh.f32 %v1423_v6 }
 0x1ec   :  { %v10372_v20 = vpop.eup %8256 }
 0x1ee   :  { %v10374_v40 = vpop.eup %8258 }
 0x1f0   :  { %v10376_v34 = vpop.eup %8260 }
 0x1f2   :  { %v10378_v1 = vpop.eup %8262 }
 0x1f4   :  { %v10380_v7 = vpop.eup %8264 }
 0x1f6   :  { %v10382_v31 = vpop.eup %8266 }
 0x1f8   :  { %v10384_v56 = vpop.eup %8268 }
 0x1f9   :  { %8292 = dma.done.wait [#allocation3], 40960 }
 0x1fa   :  { %8293 = vsyncadd [#allocation3], 4294926336  ;;  %v8296_v19 = vmov 0.0   ;;  %v11690_v2 = vld [vmem:[#allocation11_spill] sm:$0xff]  ;;  %v11691_v23 = vld [vmem:[#allocation14_spill] sm:$0xff]  ;;  %vm1458_vm2 = vcmask 326656  }
 0x1fb   :  { %7397 = vmatprep.subr.mxu1 %v8296_v19  ;;  %7384 = vmatprep.subr.mxu0 %v8296_v19  ;;  %vm8297_vm3 = vmmov 0   ;;  %v11695_v26 = vld [vmem:[#allocation12_spill] sm:$0xff]  ;;  %v11696_v27 = vld [vmem:[#allocation19_spill] sm:$0xff]  ;;  %v11697_v37 = vld [vmem:[#allocation18_spill] sm:$0xff]  ;;  %v1609_v55 = vrot.slane %v10326_v35, 4  ;;  %v2489_v32 = vrot.slane %v10333_v46, 2 }
 0x1fc   :  { %7398 = vmatpush3.msra.mxu1 %v8362_v4  ;;  %7385 = vmatpush3.msra.mxu0 %v8387_v9  ;;  %v11692_v4 = vld [vmem:[#allocation10_spill] sm:$0xff]  ;;  %v11693_v9 = vld [vmem:[#allocation13_spill] sm:$0xff]  ;;  %v11701_v24 = vld [vmem:[#allocation16_spill] sm:$0xff]  ;;  %v1689_v36 = vrot.slane %v10326_v35, 6  ;;  %v2649_v49 = vrot.slane %v10333_v46, 6  ;;  %v1849_v28 = vrot.slane %v10320_v59, 2 }
 0x1fd   :  { %7399 = vmatprep.subr.mxu1 %v8296_v19  ;;  %7386 = vmatprep.subr.mxu0 %v8296_v19  ;;  %v11698_v45 = vld [vmem:[#allocation74_spill] sm:$0xff]  ;;  %v11699_v52 = vld [vmem:[#allocation17_spill] sm:$0xff]  ;;  %v11702_v61 = vld [vmem:[#allocation72_spill] sm:$0xff]  ;;  %vm6587_vm4 = vcmask 523264   ;;  %s8298_s21 = smov [#allocation4]   ;;  %vm6661_vm5 = vcmask 74752  }
 0x1fe   :  { %7400 = vmatpush3.msra.mxu1 %v8357_v3  ;;  %7387 = vmatpush3.msra.mxu0 %v8382_v8  ;;  %v1457_v3 = vrot.slane %v10326_v35, 2  ;;  %v11694_v8 = vld [vmem:[#allocation9_spill] sm:$0xff]  ;;  %v11703_v62 = vld [vmem:[#allocation15_spill] sm:$0xff]  ;;  %v11704_v63 = vld [vmem:[#allocation24_spill] sm:$0xff]  ;;  %s6669_s22 = sshll.u32 %s8298_s21, 4  ;;  %s6670_s22 = int_to_ptr.vmem [resolvable:$true] %s6669_s22 }
 0x1ff   :  { %7401 = vmatprep.subr.mxu1 %v8296_v19  ;;  %7388 = vmatprep.subr.mxu0 %v8296_v19  ;;  %v11700_v58 = vld [vmem:[#allocation73_spill] sm:$0xff]  ;;  %v11705_v15 = vld [vmem:[#allocation71_spill] sm:$0xff]  ;;  %v11707_v48 = vld [vmem:[#allocation70_spill] sm:$0xff]  ;;  %p8277_p1 = scmp.lt.s32.totalorder %s6670_s22, %s6670_s22 }
 0x200   :  { %7402 = vmatpush3.msra.mxu1 %v11690_v2  ;;  %7389 = vmatpush3.msra.mxu0 %v11691_v23  ;;  %v11706_v44 = vld [vmem:[#allocation23_spill] sm:$0xff]  ;;  %v11708_v43 = vld [vmem:[#allocation22_spill] sm:$0xff]  ;;  %v11709_v53 = vld [vmem:[#allocation21_spill] sm:$0xff]  ;;  %v2809_v2 = vrot.slane %v10354_v13, 2 }
 0x201   :  { %7403 = vmatprep.subr.mxu1 %v8296_v19  ;;  %7390 = vmatprep.subr.mxu0 %v8296_v19  ;;  %v11710_v38 = vld [vmem:[#allocation84_spill] sm:$0xff]  ;;  %v11712_v47 = vld [vmem:[#allocation29_spill] sm:$0xff]  ;;  %v11715_v10 = vld [vmem:[#allocation82_spill] sm:$0xff] }
 0x202   :  { %7404 = vmatpush3.msra.mxu1 %v11692_v4  ;;  %7391 = vmatpush3.msra.mxu0 %v11693_v9  ;;  %v11711_v50 = vld [vmem:[#allocation20_spill] sm:$0xff]  ;;  %v11716_v41 = vld [vmem:[#allocation27_spill] sm:$0xff]  ;;  %v11717_v16 = vld [vmem:[#allocation81_spill] sm:$0xff]  ;;  %v1929_v9 = vrot.slane %v10320_v59, 4 }
 0x203   :  { %7405 = vmatprep.subr.mxu1 %v8296_v19  ;;  %7392 = vmatprep.subr.mxu0 %v8296_v19  ;;  %v11714_v18 = vld [vmem:[#allocation28_spill] sm:$0xff]  ;;  %v11718_v54 = vld [vmem:[#allocation26_spill] sm:$0xff]  ;;  %v11720_v11 = vld [vmem:[#allocation25_spill] sm:$0xff] }
 0x204   :  { %7406 = vmatpush3.msra.mxu1 %v11694_v8  ;;  %7407 = vmatprep.mubr.msk.f32.mxu1 %vm8297_vm3, %v8296_v19  ;;  %v11719_v51 = vld [vmem:[#allocation80_spill] sm:$0xff]  ;;  %v11721_v17 = vld [vmem:[#allocation34_spill] sm:$0xff]  ;;  %v11722_v33 = vld [vmem:[#allocation33_spill] sm:$0xff] }
 0x205   :  { %7393 = vmatpush3.msra.mxu0 %v11695_v26  ;;  %7394 = vmatprep.mubr.msk.f32.mxu0 %vm8297_vm3, %v8296_v19  ;;  %v11723_v12 = vld [vmem:[#allocation94_spill] sm:$0xff]  ;;  %v11724_v14 = vld [vmem:[#allocation32_spill] sm:$0xff]  ;;  %v11725_v39 = vld [vmem:[#allocation93_spill] sm:$0xff] }
 0x206   :  { %7408 = vmatmul.mubr.msk.f32.vlgmr.msra.gmra.mxu1 %vm1458_vm2, %v10326_v35  ;;  %7410 = vmatprep.subr.mxu1 %v8296_v19  ;;  %v11713_v35 = vld [vmem:[#allocation83_spill] sm:$0xff]  ;;  %v11727_v22 = vld [vmem:[#allocation92_spill] sm:$0xff]  ;;  %v11728_v29 = vld [vmem:[#allocation30_spill] sm:$0xff] }
 0x207   :  { %7395 = vmatmul.mubr.msk.f32.vlgmr.msra.gmra.mxu0 %vm1458_vm2, %v1457_v3  ;;  %7411 = vmatpush3.msra.mxu1 %v11696_v27  ;;  %v11726_v42 = vld [vmem:[#allocation31_spill] sm:$0xff]  ;;  %v11731_v6 = vld [vmem:[#allocation38_spill] sm:$0xff]  ;;  %v11733_v4 = vld [vmem:[#allocation37_spill] sm:$0xff] }
 0x208   :  { %7412 = vmatprep.subr.mxu1 %v8296_v19  ;;  %7420 = vmatprep.mubr.msk.f32.mxu1 %vm8297_vm3, %v8296_v19  ;;  %v11729_v30 = vld [vmem:[#allocation39_spill] sm:$0xff]  ;;  %v11732_v23 = vld [vmem:[#allocation90_spill] sm:$0xff]  ;;  %v11734_v3 = vld [vmem:[#allocation36_spill] sm:$0xff] }
 0x209   :  { %7413 = vmatpush3.msra.mxu1 %v11697_v37  ;;  %7553 = vmatprep.subr.mxu0 %v8296_v19  ;;  %v11730_v60 = vld [vmem:[#allocation91_spill] sm:$0xff]  ;;  %v11735_v8 = vld [vmem:[#allocation104_spill] sm:$0xff] }
 0x20a   :  { %7414 = vmatprep.subr.mxu1 %v8296_v19  ;;  %7554 = vmatpush3.msra.mxu0 %v11698_v45  ;;  %v11736_v26 = vld [vmem:[#allocation35_spill] sm:$0xff]  ;;  %v11737_v27 = vld [vmem:[#allocation44_spill] sm:$0xff] }
 0x20b   :  { %7415 = vmatpush3.msra.mxu1 %v11699_v52  ;;  %7555 = vmatprep.subr.mxu0 %v8296_v19  ;;  %v11738_v37 = vld [vmem:[#allocation103_spill] sm:$0xff]  ;;  %v11740_v52 = vld [vmem:[#allocation102_spill] sm:$0xff] }
 0x20c   :  { %7416 = vmatprep.subr.mxu1 %v8296_v19  ;;  %7556 = vmatpush3.msra.mxu0 %v11700_v58  ;;  %v11739_v45 = vld [vmem:[#allocation43_spill] sm:$0xff]  ;;  %v2009_v58 = vrot.slane %v10320_v59, 6 }
 0x20d   :  { %7417 = vmatpush3.msra.mxu1 %v11701_v24  ;;  %7557 = vmatprep.subr.mxu0 %v8296_v19  ;;  %v11742_v24 = vld [vmem:[#allocation101_spill] sm:$0xff] }
 0x20e   :  { %7418 = vmatprep.subr.mxu1 %v8296_v19  ;;  %7558 = vmatpush3.msra.mxu0 %v11702_v61  ;;  %v11743_v61 = vld [vmem:[#allocation41_spill] sm:$0xff] }
 0x20f   :  { %7419 = vmatpush3.msra.mxu1 %v11703_v62  ;;  %7559 = vmatprep.subr.mxu0 %v8296_v19  ;;  %v11744_v62 = vld [vmem:[#allocation100_spill] sm:$0xff] }
 0x210   :  { %7421 = vmatmul.mubr.msk.f32.vlgmr.msra.gmra.mxu1 %vm1458_vm2, %v1609_v55  ;;  %7423 = vmatprep.subr.mxu1 %v8296_v19  ;;  %v11741_v55 = vld [vmem:[#allocation42_spill] sm:$0xff] }
 0x211   :  { %7424 = vmatpush3.msra.mxu1 %v11704_v63  ;;  %7433 = vmatprep.mubr.msk.f32.mxu1 %vm8297_vm3, %v8296_v19  ;;  %v11745_v63 = vld [vmem:[#allocation40_spill] sm:$0xff] }
 0x212   :  { %7425 = vmatprep.subr.mxu1 %v8296_v19  ;;  %7560 = vmatpush3.msra.mxu0 %v11705_v15  ;;  %v2969_v15 = vrot.slane %v10354_v13, 6 }
 0x213   :  { %7426 = vmatpush3.msra.mxu1 %v11706_v44  ;;  %7561 = vmatprep.subr.mxu0 %v8296_v19  ;;  %v11747_v44 = vld [vmem:[#allocation48_spill] sm:$0xff] }
 0x214   :  { %7427 = vmatprep.subr.mxu1 %v8296_v19  ;;  %7562 = vmatpush3.msra.mxu0 %v11707_v48  ;;  %v11749_v48 = vld [vmem:[#allocation47_spill] sm:$0xff] }
 0x215   :  { %7428 = vmatpush3.msra.mxu1 %v11708_v43  ;;  %7563 = vmatprep.mubr.msk.f32.mxu0 %vm8297_vm3, %v8296_v19  ;;  %v11750_v43 = vld [vmem:[#allocation113_spill] sm:$0xff] }
 0x216   :  { %7429 = vmatprep.subr.mxu1 %v8296_v19  ;;  %7579 = vmatprep.subr.mxu0 %v8296_v19 }
 0x217   :  { %7430 = vmatpush3.msra.mxu1 %v11709_v53  ;;  %7564 = vmatmul.mubr.msk.f32.vlgmr.msra.gmra.mxu0 %vm1458_vm2, %v2489_v32  ;;  %v11748_v32 = vld [vmem:[#allocation114_spill] sm:$0xff]  ;;  %v11752_v53 = vld [vmem:[#allocation112_spill] sm:$0xff] }
 0x218   :  { %7431 = vmatprep.subr.mxu1 %v8296_v19  ;;  %7580 = vmatpush3.msra.mxu0 %v11710_v38  ;;  %v11753_v38 = vld [vmem:[#allocation45_spill] sm:$0xff] }
 0x219   :  { %7432 = vmatpush3.msra.mxu1 %v11711_v50  ;;  %7581 = vmatprep.subr.mxu0 %v8296_v19  ;;  %v11754_v50 = vld [vmem:[#allocation54_spill] sm:$0xff] }
 0x21a   :  { %7434 = vmatmul.mubr.msk.f32.vlgmr.msra.gmra.mxu1 %vm1458_vm2, %v1689_v36  ;;  %7436 = vmatprep.subr.mxu1 %v8296_v19  ;;  %v11751_v36 = vld [vmem:[#allocation46_spill] sm:$0xff] }
 0x21b   :  { %7437 = vmatpush3.msra.mxu1 %v11712_v47  ;;  %7446 = vmatprep.mubr.msk.f32.mxu1 %vm8297_vm3, %v8296_v19  ;;  %v11755_v47 = vld [vmem:[#allocation111_spill] sm:$0xff] }
 0x21c   :  { %7438 = vmatprep.subr.mxu1 %v8296_v19  ;;  %7582 = vmatpush3.msra.mxu0 %v11713_v35  ;;  %v11756_v35 = vld [vmem:[#allocation53_spill] sm:$0xff] }
 0x21d   :  { %7439 = vmatpush3.msra.mxu1 %v11714_v18  ;;  %7583 = vmatprep.subr.mxu0 %v8296_v19  ;;  %v3129_v18 = vrot.slane %v10347_v57, 2 }
 0x21e   :  { %7440 = vmatprep.subr.mxu1 %v8296_v19  ;;  %7584 = vmatpush3.msra.mxu0 %v11715_v10  ;;  %v11757_v10 = vld [vmem:[#allocation110_spill] sm:$0xff] }
 0x21f   :  { %7441 = vmatpush3.msra.mxu1 %v11716_v41  ;;  %7585 = vmatprep.subr.mxu0 %v8296_v19  ;;  %v11758_v41 = vld [vmem:[#allocation52_spill] sm:$0xff] }
 0x220   :  { %7442 = vmatprep.subr.mxu1 %v8296_v19  ;;  %7586 = vmatpush3.msra.mxu0 %v11717_v16  ;;  %v2169_v16 = vrot.slane %v10340_v21, 2 }
 0x221   :  { %7443 = vmatpush3.msra.mxu1 %v11718_v54  ;;  %7587 = vmatprep.subr.mxu0 %v8296_v19  ;;  %v11759_v54 = vld [vmem:[#allocation51_spill] sm:$0xff] }
 0x222   :  { %7444 = vmatprep.subr.mxu1 %v8296_v19  ;;  %7588 = vmatpush3.msra.mxu0 %v11719_v51  ;;  %v11760_v51 = vld [vmem:[#allocation124_spill] sm:$0xff] }
 0x223   :  { %7445 = vmatpush3.msra.mxu1 %v11720_v11  ;;  %7589 = vmatprep.mubr.msk.f32.mxu0 %vm8297_vm3, %v8296_v19  ;;  %v11761_v11 = vld [vmem:[#allocation50_spill] sm:$0xff] }
 0x224   :  { %7447 = vmatmul.mubr.msk.f32.vlgmr.msra.gmra.mxu1 %vm1458_vm2, %v10320_v59  ;;  %7449 = vmatprep.subr.mxu1 %v8296_v19  ;;  %v11746_v59 = vld [vmem:[#allocation49_spill] sm:$0xff] }
 0x225   :  { %7450 = vmatpush3.msra.mxu1 %v11721_v17  ;;  %7459 = vmatprep.mubr.msk.f32.mxu1 %vm8297_vm3, %v8296_v19  ;;  %v11763_v17 = vld [vmem:[#allocation123_spill] sm:$0xff] }
 0x226   :  { %7451 = vmatprep.subr.mxu1 %v8296_v19  ;;  %7605 = vmatprep.subr.mxu0 %v8296_v19 }
 0x227   :  { %7452 = vmatpush3.msra.mxu1 %v11722_v33  ;;  %7590 = vmatmul.mubr.msk.f32.vlgmr.msra.gmra.mxu0 %vm1458_vm2, %v2649_v49  ;;  %v11762_v49 = vld [vmem:[#allocation59_spill] sm:$0xff]  ;;  %v11764_v33 = vld [vmem:[#allocation58_spill] sm:$0xff] }
 0x228   :  { %7453 = vmatprep.subr.mxu1 %v8296_v19  ;;  %7606 = vmatpush3.msra.mxu0 %v11723_v12  ;;  %v11765_v12 = vld [vmem:[#allocation122_spill] sm:$0xff] }
 0x229   :  { %7454 = vmatpush3.msra.mxu1 %v11724_v14  ;;  %7607 = vmatprep.subr.mxu0 %v8296_v19  ;;  %v11766_v14 = vld [vmem:[#allocation57_spill] sm:$0xff] }
 0x22a   :  { %7455 = vmatprep.subr.mxu1 %v8296_v19  ;;  %7608 = vmatpush3.msra.mxu0 %v11725_v39  ;;  %v11767_v39 = vld [vmem:[#allocation121_spill] sm:$0xff] }
 0x22b   :  { %7456 = vmatpush3.msra.mxu1 %v11726_v42  ;;  %7609 = vmatprep.subr.mxu0 %v8296_v19  ;;  %v11768_v42 = vld [vmem:[#allocation56_spill] sm:$0xff] }
 0x22c   :  { %7457 = vmatprep.subr.mxu1 %v8296_v19  ;;  %7610 = vmatpush3.msra.mxu0 %v11727_v22  ;;  %v11769_v22 = vld [vmem:[#allocation120_spill] sm:$0xff] }
 0x22d   :  { %7458 = vmatpush3.msra.mxu1 %v11728_v29  ;;  %7611 = vmatprep.subr.mxu0 %v8296_v19  ;;  %v11770_v29 = vld [vmem:[#allocation55_spill] sm:$0xff] }
 0x22e   :  { %7460 = vmatmul.mubr.msk.f32.vlgmr.msra.gmra.mxu1 %vm1458_vm2, %v1849_v28  ;;  %7462 = vmatprep.subr.mxu1 %v8296_v19  ;;  %v2249_v28 = vrot.slane %v10340_v21, 4 }
 0x22f   :  { %7463 = vmatpush3.msra.mxu1 %v11729_v30  ;;  %7472 = vmatprep.mubr.msk.f32.mxu1 %vm8297_vm3, %v8296_v19  ;;  %v3289_v30 = vrot.slane %v10347_v57, 6 }
 0x230   :  { %7464 = vmatprep.subr.mxu1 %v8296_v19  ;;  %7612 = vmatpush3.msra.mxu0 %v11730_v60  ;;  %v11771_v60 = vld [vmem:[#allocation64_spill] sm:$0xff] }
 0x231   :  { %7465 = vmatpush3.msra.mxu1 %v11731_v6  ;;  %7613 = vmatprep.subr.mxu0 %v8296_v19  ;;  %v11772_v6 = vld [vmem:[#allocation63_spill] sm:$0xff] }
 0x232   :  { %7466 = vmatprep.subr.mxu1 %v8296_v19  ;;  %7614 = vmatpush3.msra.mxu0 %v11732_v23  ;;  %v11774_v23 = vld [vmem:[#allocation62_spill] sm:$0xff] }
 0x233   :  { %7467 = vmatpush3.msra.mxu1 %v11733_v4  ;;  %7615 = vmatprep.mubr.msk.f32.mxu0 %vm8297_vm3, %v8296_v19  ;;  %v2329_v4 = vrot.slane %v10340_v21, 6 }
 0x234   :  { %7468 = vmatprep.subr.mxu1 %v8296_v19  ;;  %7631 = vmatprep.subr.mxu0 %v8296_v19 }
 0x235   :  { %7469 = vmatpush3.msra.mxu1 %v11734_v3  ;;  %7616 = vmatmul.mubr.msk.f32.vlgmr.msra.gmra.mxu0 %vm1458_vm2, %v2809_v2  ;;  %v11773_v2 = vld [vmem:[#allocation134_spill] sm:$0xff]  ;;  %v11776_v3 = vld [vmem:[#allocation61_spill] sm:$0xff] }
 0x236   :  { %7470 = vmatprep.subr.mxu1 %v8296_v19  ;;  %7632 = vmatpush3.msra.mxu0 %v11735_v8  ;;  %v11777_v8 = vld [vmem:[#allocation132_spill] sm:$0xff] }
 0x237   :  { %7471 = vmatpush3.msra.mxu1 %v11736_v26  ;;  %7633 = vmatprep.subr.mxu0 %v8296_v19  ;;  %v11778_v26 = vld [vmem:[#allocation60_spill] sm:$0xff] }
 0x238   :  { %7473 = vmatmul.mubr.msk.f32.vlgmr.msra.gmra.mxu1 %vm1458_vm2, %v1929_v9  ;;  %7475 = vmatprep.subr.mxu1 %v8296_v19  ;;  %v11775_v9 = vld [vmem:[#allocation133_spill] sm:$0xff] }
 0x239   :  { %7476 = vmatpush3.msra.mxu1 %v11737_v27  ;;  %7485 = vmatprep.mubr.msk.f32.mxu1 %vm8297_vm3, %v8296_v19  ;;  %v11779_v27 = vld [vmem:[#allocation69_spill] sm:$0xff] }
 0x23a   :  { %7477 = vmatprep.subr.mxu1 %v8296_v19  ;;  %7634 = vmatpush3.msra.mxu0 %v11738_v37  ;;  %v11781_v37 = vld [vmem:[#allocation68_spill] sm:$0xff] }
 0x23b   :  { %7478 = vmatpush3.msra.mxu1 %v11739_v45  ;;  %7635 = vmatprep.subr.mxu0 %v8296_v19  ;;  %v3449_v45 = vrot.slane %v10367_v0, 2 }
 0x23c   :  { %7479 = vmatprep.subr.mxu1 %v8296_v19  ;;  %7636 = vmatpush3.msra.mxu0 %v11740_v52  ;;  %v11782_v52 = vld [vmem:[#allocation130_spill] sm:$0xff] }
 0x23d   :  { %7480 = vmatpush3.msra.mxu1 %v11741_v55  ;;  %7637 = vmatprep.subr.mxu0 %v8296_v19  ;;  %v11783_v55 = vld [vmem:[#allocation67_spill] sm:$0xff] }
 0x23e   :  { %7481 = vmatprep.subr.mxu1 %v8296_v19  ;;  %7638 = vmatpush3.msra.mxu0 %v11742_v24  ;;  %v11785_v24 = vld [vmem:[#allocation144_spill] sm:$0xff] }
 0x23f   :  { %7482 = vmatpush3.msra.mxu1 %v11743_v61  ;;  %7639 = vmatprep.subr.mxu0 %v8296_v19  ;;  %v11786_v61 = vld [vmem:[#allocation65_spill] sm:$0xff] }
 0x240   :  { %7483 = vmatprep.subr.mxu1 %v8296_v19  ;;  %7640 = vmatpush3.msra.mxu0 %v11744_v62  ;;  %v11787_v62 = vld [vmem:[#allocation79_spill] sm:$0xff] }
 0x241   :  { %7484 = vmatpush3.msra.mxu1 %v11745_v63  ;;  %7641 = vmatprep.mubr.msk.f32.mxu0 %vm8297_vm3, %v8296_v19  ;;  %v11788_v63 = vld [vmem:[#allocation143_spill] sm:$0xff] }
 0x242   :  { %7486 = vmatmul.mubr.msk.f32.vlgmr.msra.gmra.mxu1 %vm1458_vm2, %v2009_v58  ;;  %7488 = vmatprep.subr.mxu1 %v8296_v19  ;;  %v11784_v58 = vld [vmem:[#allocation66_spill] sm:$0xff] }
 0x243   :  { %7489 = vmatpush3.msra.mxu1 %v11746_v59  ;;  %7498 = vmatprep.mubr.msk.f32.mxu1 %vm8297_vm3, %v8296_v19  ;;  %v11790_v59 = vld [vmem:[#allocation142_spill] sm:$0xff] }
 0x244   :  { %7490 = vmatprep.subr.mxu1 %v8296_v19  ;;  %7657 = vmatprep.subr.mxu0 %v8296_v19 }
 0x245   :  { %7491 = vmatpush3.msra.mxu1 %v11747_v44  ;;  %7642 = vmatmul.mubr.msk.f32.vlgmr.msra.gmra.mxu0 %vm1458_vm2, %v2969_v15  ;;  %v11789_v15 = vld [vmem:[#allocation78_spill] sm:$0xff]  ;;  %v11791_v44 = vld [vmem:[#allocation77_spill] sm:$0xff] }
 0x246   :  { %7492 = vmatprep.subr.mxu1 %v8296_v19  ;;  %7658 = vmatpush3.msra.mxu0 %v11748_v32  ;;  %v2569_v32 = vrot.slane %v10333_v46, 4 }
 0x247   :  { %7493 = vmatpush3.msra.mxu1 %v11749_v48  ;;  %7659 = vmatprep.subr.mxu0 %v8296_v19  ;;  %v11792_v48 = vld [vmem:[#allocation141_spill] sm:$0xff] }
 0x248   :  { %7494 = vmatprep.subr.mxu1 %v8296_v19  ;;  %7660 = vmatpush3.msra.mxu0 %v11750_v43  ;;  %v11793_v43 = vld [vmem:[#allocation76_spill] sm:$0xff] }
 0x249   :  { %7495 = vmatpush3.msra.mxu1 %v11751_v36  ;;  %7661 = vmatprep.subr.mxu0 %v8296_v19  ;;  %v11794_v36 = vld [vmem:[#allocation140_spill] sm:$0xff] }
 0x24a   :  { %7496 = vmatprep.subr.mxu1 %v8296_v19  ;;  %7662 = vmatpush3.msra.mxu0 %v11752_v53  ;;  %v11795_v53 = vld [vmem:[#allocation75_spill] sm:$0xff] }
 0x24b   :  { %7497 = vmatpush3.msra.mxu1 %v11753_v38  ;;  %7663 = vmatprep.subr.mxu0 %v8296_v19  ;;  %v3609_v38 = vrot.slane %v10367_v0, 6 }
 0x24c   :  { %7499 = vmatmul.mubr.msk.f32.vlgmr.msra.gmra.mxu1 %vm1458_vm2, %v10340_v21  ;;  %7501 = vmatprep.subr.mxu1 %v8296_v19  ;;  %v11780_v21 = vld [vmem:[#allocation131_spill] sm:$0xff] }
 0x24d   :  { %7502 = vmatpush3.msra.mxu1 %v11754_v50  ;;  %7511 = vmatprep.mubr.msk.f32.mxu1 %vm8297_vm3, %v8296_v19  ;;  %v11797_v50 = vld [vmem:[#allocation88_spill] sm:$0xff] }
 0x24e   :  { %7503 = vmatprep.subr.mxu1 %v8296_v19  ;;  %7664 = vmatpush3.msra.mxu0 %v11755_v47  ;;  %v11798_v47 = vld [vmem:[#allocation154_spill] sm:$0xff] }
 0x24f   :  { %7504 = vmatpush3.msra.mxu1 %v11756_v35  ;;  %7665 = vmatprep.subr.mxu0 %v8296_v19  ;;  %v11799_v35 = vld [vmem:[#allocation87_spill] sm:$0xff] }
 0x250   :  { %7505 = vmatprep.subr.mxu1 %v8296_v19  ;;  %7666 = vmatpush3.msra.mxu0 %v11757_v10  ;;  %v11801_v10 = vld [vmem:[#allocation86_spill] sm:$0xff] }
 0x251   :  { %7506 = vmatpush3.msra.mxu1 %v11758_v41  ;;  %7667 = vmatprep.mubr.msk.f32.mxu0 %vm8297_vm3, %v8296_v19  ;;  %v11802_v41 = vld [vmem:[#allocation152_spill] sm:$0xff] }
 0x252   :  { %7507 = vmatprep.subr.mxu1 %v8296_v19  ;;  %7683 = vmatprep.subr.mxu0 %v8296_v19 }
 0x253   :  { %7508 = vmatpush3.msra.mxu1 %v11759_v54  ;;  %7668 = vmatmul.mubr.msk.f32.vlgmr.msra.gmra.mxu0 %vm1458_vm2, %v3129_v18  ;;  %v11800_v18 = vld [vmem:[#allocation153_spill] sm:$0xff]  ;;  %v11804_v54 = vld [vmem:[#allocation99_spill] sm:$0xff] }
 0x254   :  { %7509 = vmatprep.subr.mxu1 %v8296_v19  ;;  %7684 = vmatpush3.msra.mxu0 %v11760_v51  ;;  %v11805_v51 = vld [vmem:[#allocation151_spill] sm:$0xff] }
 0x255   :  { %7510 = vmatpush3.msra.mxu1 %v11761_v11  ;;  %7685 = vmatprep.subr.mxu0 %v8296_v19  ;;  %v11806_v11 = vld [vmem:[#allocation98_spill] sm:$0xff] }
 0x256   :  { %7512 = vmatmul.mubr.msk.f32.vlgmr.msra.gmra.mxu1 %vm1458_vm2, %v2169_v16  ;;  %7514 = vmatprep.subr.mxu1 %v8296_v19  ;;  %v11803_v16 = vld [vmem:[#allocation85_spill] sm:$0xff] }
 0x257   :  { %7515 = vmatpush3.msra.mxu1 %v11762_v49  ;;  %7524 = vmatprep.mubr.msk.f32.mxu1 %vm8297_vm3, %v8296_v19  ;;  %v3769_v49 = vrot.slane %v10361_v5, 2 }
 0x258   :  { %7516 = vmatprep.subr.mxu1 %v8296_v19  ;;  %7686 = vmatpush3.msra.mxu0 %v11763_v17  ;;  %v11807_v17 = vld [vmem:[#allocation150_spill] sm:$0xff] }
 0x259   :  { %7517 = vmatpush3.msra.mxu1 %v11764_v33  ;;  %7687 = vmatprep.subr.mxu0 %v8296_v19  ;;  %v11808_v33 = vld [vmem:[#allocation97_spill] sm:$0xff] }
 0x25a   :  { %7518 = vmatprep.subr.mxu1 %v8296_v19  ;;  %7688 = vmatpush3.msra.mxu0 %v11765_v12  ;;  %v2889_v12 = vrot.slane %v10354_v13, 4 }
 0x25b   :  { %7519 = vmatpush3.msra.mxu1 %v11766_v14  ;;  %7689 = vmatprep.subr.mxu0 %v8296_v19  ;;  %v11809_v14 = vld [vmem:[#allocation96_spill] sm:$0xff] }
 0x25c   :  { %7520 = vmatprep.subr.mxu1 %v8296_v19  ;;  %7690 = vmatpush3.msra.mxu0 %v11767_v39  ;;  %v11811_v39 = vld [vmem:[#allocation95_spill] sm:$0xff] }
 0x25d   :  { %7521 = vmatpush3.msra.mxu1 %v11768_v42  ;;  %7691 = vmatprep.subr.mxu0 %v8296_v19  ;;  %v11812_v42 = vld [vmem:[#allocation109_spill] sm:$0xff] }
 0x25e   :  { %7522 = vmatprep.subr.mxu1 %v8296_v19  ;;  %7692 = vmatpush3.msra.mxu0 %v11769_v22  ;;  %v11814_v22 = vld [vmem:[#allocation108_spill] sm:$0xff] }
 0x25f   :  { %7523 = vmatpush3.msra.mxu1 %v11770_v29  ;;  %7693 = vmatprep.mubr.msk.f32.mxu0 %vm8297_vm3, %v8296_v19  ;;  %v11815_v29 = vld [vmem:[#allocation162_spill] sm:$0xff] }
 0x260   :  { %7525 = vmatmul.mubr.msk.f32.vlgmr.msra.gmra.mxu1 %vm1458_vm2, %v2249_v28  ;;  %7527 = vmatprep.subr.mxu1 %v8296_v19  ;;  %v11810_v28 = vld [vmem:[#allocation164_spill] sm:$0xff] }
 0x261   :  { %7528 = vmatpush3.msra.mxu1 %v11771_v60  ;;  %7537 = vmatprep.mubr.msk.f32.mxu1 %vm8297_vm3, %v8296_v19  ;;  %v11817_v60 = vld [vmem:[#allocation161_spill] sm:$0xff] }
 0x262   :  { %7529 = vmatprep.subr.mxu1 %v8296_v19  ;;  %7709 = vmatprep.subr.mxu0 %v8296_v19 }
 0x263   :  { %7530 = vmatpush3.msra.mxu1 %v11772_v6  ;;  %7694 = vmatmul.mubr.msk.f32.vlgmr.msra.gmra.mxu0 %vm1458_vm2, %v3289_v30  ;;  %v11816_v30 = vld [vmem:[#allocation107_spill] sm:$0xff]  ;;  %v11818_v6 = vld [vmem:[#allocation106_spill] sm:$0xff] }
 0x264   :  { %7531 = vmatprep.subr.mxu1 %v8296_v19  ;;  %7710 = vmatpush3.msra.mxu0 %v11773_v2  ;;  %v11819_v2 = vld [vmem:[#allocation160_spill] sm:$0xff] }
 0x265   :  { %7532 = vmatpush3.msra.mxu1 %v11774_v23  ;;  %7711 = vmatprep.subr.mxu0 %v8296_v19  ;;  %v11820_v23 = vld [vmem:[#allocation105_spill] sm:$0xff] }
 0x266   :  { %7533 = vmatprep.subr.mxu1 %v8296_v19  ;;  %7712 = vmatpush3.msra.mxu0 %v11775_v9  ;;  %v11821_v9 = vld [vmem:[#allocation119_spill] sm:$0xff] }
 0x267   :  { %7534 = vmatpush3.msra.mxu1 %v11776_v3  ;;  %7713 = vmatprep.subr.mxu0 %v8296_v19  ;;  %v11822_v3 = vld [vmem:[#allocation118_spill] sm:$0xff] }
 0x268   :  { %7535 = vmatprep.subr.mxu1 %v8296_v19  ;;  %7714 = vmatpush3.msra.mxu0 %v11777_v8  ;;  %v11823_v8 = vld [vmem:[#allocation174_spill] sm:$0xff] }
 0x269   :  { %7536 = vmatpush3.msra.mxu1 %v11778_v26  ;;  %7715 = vmatprep.subr.mxu0 %v8296_v19  ;;  %v11824_v26 = vld [vmem:[#allocation117_spill] sm:$0xff] }
 0x26a   :  { %7538 = vmatmul.mubr.msk.f32.vlgmr.msra.gmra.mxu1 %vm1458_vm2, %v2329_v4  ;;  %7540 = vmatprep.subr.mxu1 %v8296_v19  ;;  %v3929_v4 = vrot.slane %v10361_v5, 6 }
 0x26b   :  { %7541 = vmatpush3.msra.mxu1 %v11779_v27  ;;  %7550 = vmatprep.mubr.msk.f32.mxu1 %vm8297_vm3, %v8296_v19  ;;  %v3209_v27 = vrot.slane %v10347_v57, 4 }
 0x26c   :  { %7542 = vmatprep.subr.mxu1 %v8296_v19  ;;  %7716 = vmatpush3.msra.mxu0 %v11780_v21  ;;  %v11825_v21 = vld [vmem:[#allocation173_spill] sm:$0xff] }
 0x26d   :  { %7543 = vmatpush3.msra.mxu1 %v11781_v37  ;;  %7717 = vmatprep.subr.mxu0 %v8296_v19  ;;  %v11826_v37 = vld [vmem:[#allocation116_spill] sm:$0xff] }
 0x26e   :  { %7544 = vmatprep.subr.mxu1 %v8296_v19  ;;  %7718 = vmatpush3.msra.mxu0 %v11782_v52  ;;  %v11828_v52 = vld [vmem:[#allocation115_spill] sm:$0xff] }
 0x26f   :  { %7545 = vmatpush3.msra.mxu1 %v11783_v55  ;;  %7719 = vmatprep.mubr.msk.f32.mxu0 %vm8297_vm3, %v8296_v19  ;;  %v11829_v55 = vld [vmem:[#allocation129_spill] sm:$0xff] }
 0x270   :  { %7546 = vmatprep.subr.mxu1 %v8296_v19  ;;  %7735 = vmatprep.subr.mxu0 %v8296_v19 }
 0x271   :  { %7547 = vmatpush3.msra.mxu1 %v11784_v58  ;;  %7720 = vmatmul.mubr.msk.f32.vlgmr.msra.gmra.mxu0 %vm1458_vm2, %v3449_v45  ;;  %v11827_v45 = vld [vmem:[#allocation172_spill] sm:$0xff] }
 0x272   :  { %7548 = vmatprep.subr.mxu1 %v8296_v19  ;;  %7736 = vmatpush3.msra.mxu0 %v11785_v24  ;;  %v11831_v58 = vld [vmem:[#allocation128_spill] sm:$0xff]  ;;  %v4089_v24 = vrot.slane %v10372_v20, 2 }
 0x273   :  { %7549 = vmatpush3.msra.mxu1 %v11786_v61  ;;  %7737 = vmatprep.subr.mxu0 %v8296_v19  ;;  %v11832_v61 = vld [vmem:[#allocation170_spill] sm:$0xff] }
 0x274   :  { %7551 = vmatmul.mubr.msk.f32.vlgmr.msra.gmra.mxu1 %vm1458_vm2, %v10333_v46  ;;  %7566 = vmatprep.subr.mxu1 %v8296_v19  ;;  %v11796_v46 = vld [vmem:[#allocation89_spill] sm:$0xff] }
 0x275   :  { %7567 = vmatpush3.msra.mxu1 %v11787_v62  ;;  %7576 = vmatprep.mubr.msk.f32.mxu1 %vm8297_vm3, %v8296_v19  ;;  %v11833_v62 = vld [vmem:[#allocation127_spill] sm:$0xff] }
 0x276   :  { %7568 = vmatprep.subr.mxu1 %v8296_v19  ;;  %7738 = vmatpush3.msra.mxu0 %v11788_v63  ;;  %v11834_v63 = vld [vmem:[#allocation126_spill] sm:$0xff] }
 0x277   :  { %7569 = vmatpush3.msra.mxu1 %v11789_v15  ;;  %7739 = vmatprep.subr.mxu0 %v8296_v19  ;;  %v11835_v15 = vld [vmem:[#allocation184_spill] sm:$0xff] }
 0x278   :  { %7570 = vmatprep.subr.mxu1 %v8296_v19  ;;  %7740 = vmatpush3.msra.mxu0 %v11790_v59  ;;  %v11836_v59 = vld [vmem:[#allocation125_spill] sm:$0xff] }
 0x279   :  { %7571 = vmatpush3.msra.mxu1 %v11791_v44  ;;  %7741 = vmatprep.subr.mxu0 %v8296_v19  ;;  %v11837_v44 = vld [vmem:[#allocation139_spill] sm:$0xff] }
 0x27a   :  { %7572 = vmatprep.subr.mxu1 %v8296_v19  ;;  %7742 = vmatpush3.msra.mxu0 %v11792_v48  ;;  %v11839_v48 = vld [vmem:[#allocation138_spill] sm:$0xff] }
 0x27b   :  { %7573 = vmatpush3.msra.mxu1 %v11793_v43  ;;  %7743 = vmatprep.subr.mxu0 %v8296_v19  ;;  %v11840_v43 = vld [vmem:[#allocation182_spill] sm:$0xff] }
 0x27c   :  { %7574 = vmatprep.subr.mxu1 %v8296_v19  ;;  %7744 = vmatpush3.msra.mxu0 %v11794_v36  ;;  %v11841_v36 = vld [vmem:[#allocation137_spill] sm:$0xff] }
 0x27d   :  { %7575 = vmatpush3.msra.mxu1 %v11795_v53  ;;  %7745 = vmatprep.mubr.msk.f32.mxu0 %vm8297_vm3, %v8296_v19  ;;  %v3529_v53 = vrot.slane %v10367_v0, 4 }
 0x27e   :  { %7577 = vmatmul.mubr.msk.f32.vlgmr.msra.gmra.mxu1 %vm1458_vm2, %v2569_v32  ;;  %7592 = vmatprep.subr.mxu1 %v8296_v19  ;;  %v11838_v32 = vld [vmem:[#allocation183_spill] sm:$0xff] }
 0x27f   :  { %7593 = vmatpush3.msra.mxu1 %v11796_v46  ;;  %7602 = vmatprep.mubr.msk.f32.mxu1 %vm8297_vm3, %v8296_v19  ;;  %v11843_v46 = vld [vmem:[#allocation136_spill] sm:$0xff] }
 0x280   :  { %7594 = vmatprep.subr.mxu1 %v8296_v19  ;;  %7761 = vmatprep.subr.mxu0 %v8296_v19 }
 0x281   :  { %7595 = vmatpush3.msra.mxu1 %v11797_v50  ;;  %7746 = vmatmul.mubr.msk.f32.vlgmr.msra.gmra.mxu0 %vm1458_vm2, %v3609_v38  ;;  %v11842_v38 = vld [vmem:[#allocation181_spill] sm:$0xff]  ;;  %v11844_v50 = vld [vmem:[#allocation180_spill] sm:$0xff] }
 0x282   :  { %7596 = vmatprep.subr.mxu1 %v8296_v19  ;;  %7762 = vmatpush3.msra.mxu0 %v11798_v47  ;;  %v11845_v47 = vld [vmem:[#allocation135_spill] sm:$0xff] }
 0x283   :  { %7597 = vmatpush3.msra.mxu1 %v11799_v35  ;;  %7763 = vmatprep.subr.mxu0 %v8296_v19  ;;  %v4249_v35 = vrot.slane %v10372_v20, 6 }
 0x284   :  { %7598 = vmatprep.subr.mxu1 %v8296_v19  ;;  %7764 = vmatpush3.msra.mxu0 %v11800_v18  ;;  %v11847_v18 = vld [vmem:[#allocation148_spill] sm:$0xff] }
 0x285   :  { %7599 = vmatpush3.msra.mxu1 %v11801_v10  ;;  %7765 = vmatprep.subr.mxu0 %v8296_v19  ;;  %v11848_v10 = vld [vmem:[#allocation194_spill] sm:$0xff] }
 0x286   :  { %7600 = vmatprep.subr.mxu1 %v8296_v19  ;;  %7766 = vmatpush3.msra.mxu0 %v11802_v41  ;;  %v11849_v41 = vld [vmem:[#allocation147_spill] sm:$0xff] }
 0x287   :  { %7601 = vmatpush3.msra.mxu1 %v11803_v16  ;;  %7767 = vmatprep.subr.mxu0 %v8296_v19  ;;  %v11850_v16 = vld [vmem:[#allocation193_spill] sm:$0xff] }
 0x288   :  { %7603 = vmatmul.mubr.msk.f32.vlgmr.msra.gmra.mxu1 %vm1458_vm2, %v10354_v13  ;;  %7618 = vmatprep.subr.mxu1 %v8296_v19  ;;  %v11813_v13 = vld [vmem:[#allocation163_spill] sm:$0xff] }
 0x289   :  { %7619 = vmatpush3.msra.mxu1 %v11804_v54  ;;  %7628 = vmatprep.mubr.msk.f32.mxu1 %vm8297_vm3, %v8296_v19  ;;  %v11851_v54 = vld [vmem:[#allocation146_spill] sm:$0xff] }
 0x28a   :  { %7620 = vmatprep.subr.mxu1 %v8296_v19  ;;  %7768 = vmatpush3.msra.mxu0 %v11805_v51  ;;  %v11852_v51 = vld [vmem:[#allocation192_spill] sm:$0xff] }
 0x28b   :  { %7621 = vmatpush3.msra.mxu1 %v11806_v11  ;;  %7769 = vmatprep.subr.mxu0 %v8296_v19  ;;  %v11853_v11 = vld [vmem:[#allocation145_spill] sm:$0xff] }
 0x28c   :  { %7622 = vmatprep.subr.mxu1 %v8296_v19  ;;  %7770 = vmatpush3.msra.mxu0 %v11807_v17 }
 0x28d   :  { %7623 = vmatpush3.msra.mxu1 %v11808_v33  ;;  %7771 = vmatprep.mubr.msk.f32.mxu0 %vm8297_vm3, %v8296_v19  ;;  %v11855_v33 = vld [vmem:[#allocation191_spill] sm:$0xff] }
 0x28e   :  { %7624 = vmatprep.subr.mxu1 %v8296_v19  ;;  %7787 = vmatprep.subr.mxu0 %v8296_v19 }
 0x28f   :  { %7625 = vmatpush3.msra.mxu1 %v11809_v14  ;;  %7772 = vmatmul.mubr.msk.f32.vlgmr.msra.gmra.mxu0 %vm1458_vm2, %v3769_v49  ;;  %v11854_v49 = vld [vmem:[#allocation159_spill] sm:$0xff]  ;;  %v11856_v14 = vld [vmem:[#allocation158_spill] sm:$0xff] }
 0x290   :  { %7626 = vmatprep.subr.mxu1 %v8296_v19  ;;  %7788 = vmatpush3.msra.mxu0 %v11810_v28  ;;  %v4409_v28 = vrot.slane %v10370_v25, 2 }
 0x291   :  { %7627 = vmatpush3.msra.mxu1 %v11811_v39  ;;  %7789 = vmatprep.subr.mxu0 %v8296_v19 }
 0x292   :  { %7629 = vmatmul.mubr.msk.f32.vlgmr.msra.gmra.mxu1 %vm1458_vm2, %v2889_v12  ;;  %7644 = vmatprep.subr.mxu1 %v8296_v19 }
 0x293   :  { %7645 = vmatpush3.msra.mxu1 %v11812_v42  ;;  %7654 = vmatprep.mubr.msk.f32.mxu1 %vm8297_vm3, %v8296_v19 }
 0x294   :  { %7646 = vmatprep.subr.mxu1 %v8296_v19  ;;  %7790 = vmatpush3.msra.mxu0 %v11813_v13  ;;  %v11857_v13 = vld [vmem:[#allocation190_spill] sm:$0xff] }
 0x295   :  { %7647 = vmatpush3.msra.mxu1 %v11814_v22  ;;  %7791 = vmatprep.subr.mxu0 %v8296_v19  ;;  %v11858_v22 = vld [vmem:[#allocation157_spill] sm:$0xff] }
 0x296   :  { %7648 = vmatprep.subr.mxu1 %v8296_v19  ;;  %7792 = vmatpush3.msra.mxu0 %v11815_v29 }
 0x297   :  { %7649 = vmatpush3.msra.mxu1 %v11816_v30  ;;  %7793 = vmatprep.subr.mxu0 %v8296_v19  ;;  %v3849_v30 = vrot.slane %v10361_v5, 4 }
 0x298   :  { %7650 = vmatprep.subr.mxu1 %v8296_v19  ;;  %7794 = vmatpush3.msra.mxu0 %v11817_v60  ;;  %v11859_v60 = vld [vmem:[#allocation156_spill] sm:$0xff] }
 0x299   :  { %7651 = vmatpush3.msra.mxu1 %v11818_v6  ;;  %7795 = vmatprep.subr.mxu0 %v8296_v19  ;;  %v11860_v6 = vld [vmem:[#allocation204_spill] sm:$0xff] }
 0x29a   :  { %7652 = vmatprep.subr.mxu1 %v8296_v19  ;;  %7796 = vmatpush3.msra.mxu0 %v11819_v2  ;;  %v11861_v2 = vld [vmem:[#allocation155_spill] sm:$0xff] }
 0x29b   :  { %7653 = vmatpush3.msra.mxu1 %v11820_v23  ;;  %7797 = vmatprep.mubr.msk.f32.mxu0 %vm8297_vm3, %v8296_v19  ;;  %v11862_v23 = vld [vmem:[#allocation169_spill] sm:$0xff] }
 0x29c   :  { %7655 = vmatmul.mubr.msk.f32.vlgmr.msra.gmra.mxu1 %vm1458_vm2, %v10347_v57  ;;  %7670 = vmatprep.subr.mxu1 %v8296_v19  ;;  %v11830_v57 = vld [vmem:[#allocation171_spill] sm:$0xff] }
 0x29d   :  { %7671 = vmatpush3.msra.mxu1 %v11821_v9  ;;  %7680 = vmatprep.mubr.msk.f32.mxu1 %vm8297_vm3, %v8296_v19 }
 0x29e   :  { %7672 = vmatprep.subr.mxu1 %v8296_v19  ;;  %7813 = vmatprep.subr.mxu0 %v8296_v19 }
 0x29f   :  { %7673 = vmatpush3.msra.mxu1 %v11822_v3  ;;  %7798 = vmatmul.mubr.msk.f32.vlgmr.msra.gmra.mxu0 %vm1458_vm2, %v3929_v4  ;;  %v11863_v4 = vld [vmem:[#allocation203_spill] sm:$0xff]  ;;  %v11864_v3 = vld [vmem:[#allocation168_spill] sm:$0xff] }
 0x2a0   :  { %7674 = vmatprep.subr.mxu1 %v8296_v19  ;;  %7814 = vmatpush3.msra.mxu0 %v11823_v8 }
 0x2a1   :  { %7675 = vmatpush3.msra.mxu1 %v11824_v26  ;;  %7815 = vmatprep.subr.mxu0 %v8296_v19  ;;  %v11865_v26 = vld [vmem:[#allocation202_spill] sm:$0xff] }
 0x2a2   :  { %7676 = vmatprep.subr.mxu1 %v8296_v19  ;;  %7816 = vmatpush3.msra.mxu0 %v11825_v21  ;;  %v11867_v21 = vld [vmem:[#allocation201_spill] sm:$0xff] }
 0x2a3   :  { %7677 = vmatpush3.msra.mxu1 %v11826_v37  ;;  %7817 = vmatprep.subr.mxu0 %v8296_v19  ;;  %v11868_v37 = vld [vmem:[#allocation166_spill] sm:$0xff] }
 0x2a4   :  { %7678 = vmatprep.subr.mxu1 %v8296_v19  ;;  %7818 = vmatpush3.msra.mxu0 %v11827_v45  ;;  %v11869_v45 = vld [vmem:[#allocation200_spill] sm:$0xff] }
 0x2a5   :  { %7679 = vmatpush3.msra.mxu1 %v11828_v52  ;;  %7819 = vmatprep.subr.mxu0 %v8296_v19  ;;  %v11870_v52 = vld [vmem:[#allocation165_spill] sm:$0xff] }
 0x2a6   :  { %7681 = vmatmul.mubr.msk.f32.vlgmr.msra.gmra.mxu1 %vm1458_vm2, %v3209_v27  ;;  %7696 = vmatprep.subr.mxu1 %v8296_v19  ;;  %v11866_v27 = vld [vmem:[#allocation167_spill] sm:$0xff] }
 0x2a7   :  { %7697 = vmatpush3.msra.mxu1 %v11829_v55  ;;  %7706 = vmatprep.mubr.msk.f32.mxu1 %vm8297_vm3, %v8296_v19  ;;  %v4569_v55 = vrot.slane %v10370_v25, 6 }
 0x2a8   :  { %7698 = vmatprep.subr.mxu1 %v8296_v19  ;;  %7820 = vmatpush3.msra.mxu0 %v11830_v57 }
 0x2a9   :  { %7699 = vmatpush3.msra.mxu1 %v11831_v58  ;;  %7821 = vmatprep.subr.mxu0 %v8296_v19  ;;  %v11871_v58 = vld [vmem:[#allocation179_spill] sm:$0xff] }
 0x2aa   :  { %7700 = vmatprep.subr.mxu1 %v8296_v19  ;;  %7822 = vmatpush3.msra.mxu0 %v11832_v61 }
 0x2ab   :  { %7701 = vmatpush3.msra.mxu1 %v11833_v62  ;;  %7823 = vmatprep.mubr.msk.f32.mxu0 %vm8297_vm3, %v8296_v19 }
 0x2ac   :  { %7702 = vmatprep.subr.mxu1 %v8296_v19  ;;  %7839 = vmatprep.subr.mxu0 %v8296_v19 }
 0x2ad   :  { %7703 = vmatpush3.msra.mxu1 %v11834_v63  ;;  %7824 = vmatmul.mubr.msk.f32.vlgmr.msra.gmra.mxu0 %vm1458_vm2, %v4089_v24  ;;  %v11872_v63 = vld [vmem:[#allocation178_spill] sm:$0xff] }
 0x2ae   :  { %7704 = vmatprep.subr.mxu1 %v8296_v19  ;;  %7840 = vmatpush3.msra.mxu0 %v11835_v15 }
 0x2af   :  { %7705 = vmatpush3.msra.mxu1 %v11836_v59  ;;  %7841 = vmatprep.subr.mxu0 %v8296_v19  ;;  %v11873_v59 = vld [vmem:[#allocation214_spill] sm:$0xff] }
 0x2b0   :  { %7707 = vmatmul.mubr.msk.f32.vlgmr.msra.gmra.mxu1 %vm1458_vm2, %v10367_v0  ;;  %7722 = vmatprep.subr.mxu1 %v8296_v19  ;;  %v11846_v0 = vld [vmem:[#allocation149_spill] sm:$0xff] }
 0x2b1   :  { %7723 = vmatpush3.msra.mxu1 %v11837_v44  ;;  %7732 = vmatprep.mubr.msk.f32.mxu1 %vm8297_vm3, %v8296_v19  ;;  %v11874_v44 = vld [vmem:[#allocation177_spill] sm:$0xff] }
 0x2b2   :  { %7724 = vmatprep.subr.mxu1 %v8296_v19  ;;  %7842 = vmatpush3.msra.mxu0 %v11838_v32  ;;  %v4169_v32 = vrot.slane %v10372_v20, 4 }
 0x2b3   :  { %7725 = vmatpush3.msra.mxu1 %v11839_v48  ;;  %7843 = vmatprep.subr.mxu0 %v8296_v19  ;;  %v11875_v48 = vld [vmem:[#allocation213_spill] sm:$0xff] }
 0x2b4   :  { %7726 = vmatprep.subr.mxu1 %v8296_v19  ;;  %7844 = vmatpush3.msra.mxu0 %v11840_v43  ;;  %v11876_v43 = vld [vmem:[#allocation176_spill] sm:$0xff] }
 0x2b5   :  { %7727 = vmatpush3.msra.mxu1 %v11841_v36  ;;  %7845 = vmatprep.subr.mxu0 %v8296_v19  ;;  %v11877_v36 = vld [vmem:[#allocation212_spill] sm:$0xff] }
 0x2b6   :  { %7728 = vmatprep.subr.mxu1 %v8296_v19  ;;  %7846 = vmatpush3.msra.mxu0 %v11842_v38  ;;  %v11879_v38 = vld [vmem:[#allocation189_spill] sm:$0xff] }
 0x2b7   :  { %7729 = vmatpush3.msra.mxu1 %v11843_v46  ;;  %7847 = vmatprep.subr.mxu0 %v8296_v19  ;;  %v11880_v46 = vld [vmem:[#allocation211_spill] sm:$0xff] }
 0x2b8   :  { %7730 = vmatprep.subr.mxu1 %v8296_v19  ;;  %7848 = vmatpush3.msra.mxu0 %v11844_v50 }
 0x2b9   :  { %7731 = vmatpush3.msra.mxu1 %v11845_v47  ;;  %7849 = vmatprep.mubr.msk.f32.mxu0 %vm8297_vm3, %v8296_v19  ;;  %v11881_v47 = vld [vmem:[#allocation188_spill] sm:$0xff] }
 0x2ba   :  { %7733 = vmatmul.mubr.msk.f32.vlgmr.msra.gmra.mxu1 %vm1458_vm2, %v3529_v53  ;;  %7748 = vmatprep.subr.mxu1 %v8296_v19  ;;  %v11878_v53 = vld [vmem:[#allocation175_spill] sm:$0xff] }
 0x2bb   :  { %7749 = vmatpush3.msra.mxu1 %v11846_v0  ;;  %7758 = vmatprep.mubr.msk.f32.mxu1 %vm8297_vm3, %v8296_v19 }
 0x2bc   :  { %7750 = vmatprep.subr.mxu1 %v8296_v19  ;;  %7865 = vmatprep.subr.mxu0 %v8296_v19 }
 0x2bd   :  { %7751 = vmatpush3.msra.mxu1 %v11847_v18  ;;  %7850 = vmatmul.mubr.msk.f32.vlgmr.msra.gmra.mxu0 %vm1458_vm2, %v4249_v35  ;;  %v4729_v35 = vrot.slane %v10376_v34, 2  ;;  %v11882_v18 = vld [vmem:[#allocation210_spill] sm:$0xff] }
 0x2be   :  { %7752 = vmatprep.subr.mxu1 %v8296_v19  ;;  %7866 = vmatpush3.msra.mxu0 %v11848_v10  ;;  %v11883_v10 = vld [vmem:[#allocation187_spill] sm:$0xff] }
 0x2bf   :  { %7753 = vmatpush3.msra.mxu1 %v11849_v41  ;;  %7867 = vmatprep.subr.mxu0 %v8296_v19 }
 0x2c0   :  { %7754 = vmatprep.subr.mxu1 %v8296_v19  ;;  %7868 = vmatpush3.msra.mxu0 %v11850_v16  ;;  %v11884_v16 = vld [vmem:[#allocation186_spill] sm:$0xff] }
 0x2c1   :  { %7755 = vmatpush3.msra.mxu1 %v11851_v54  ;;  %7869 = vmatprep.subr.mxu0 %v8296_v19 }
 0x2c2   :  { %7756 = vmatprep.subr.mxu1 %v8296_v19  ;;  %7870 = vmatpush3.msra.mxu0 %v11852_v51  ;;  %v11885_v51 = vld [vmem:[#allocation224_spill] sm:$0xff] }
 0x2c3   :  { %7757 = vmatpush3.msra.mxu1 %v11853_v11  ;;  %7871 = vmatprep.subr.mxu0 %v8296_v19  ;;  %v11886_v11 = vld [vmem:[#allocation185_spill] sm:$0xff] }
 0x2c4   :  { %7759 = vmatmul.mubr.msk.f32.vlgmr.msra.gmra.mxu1 %vm1458_vm2, %v10361_v5  ;;  %7774 = vmatprep.subr.mxu1 %v8296_v19 }
 0x2c5   :  { %7775 = vmatpush3.msra.mxu1 %v11854_v49  ;;  %7784 = vmatprep.mubr.msk.f32.mxu1 %vm8297_vm3, %v8296_v19  ;;  %v11887_v49 = vld [vmem:[#allocation199_spill] sm:$0xff] }
 0x2c6   :  { %v1599_v17 = vpop.f32.mrf.mxu1  ;;  %7776 = vmatprep.subr.mxu1 %v8296_v19  ;;  %7872 = vmatpush3.msra.mxu0 %v11855_v33  ;;  %v11888_v33 = vld [vmem:[#allocation223_spill] sm:$0xff] }
 0x2c7   :  { %v1527_v12 = vpop.f32.mrf.mxu0  ;;  %7777 = vmatpush3.msra.mxu1 %v11856_v14  ;;  %7873 = vmatprep.subr.mxu0 %v8296_v19  ;;  %v11889_v14 = vld [vmem:[#allocation198_spill] sm:$0xff] }
 0x2c8   :  { %v1600_v39 = vadd.f32 %v1599_v17, %v1527_v12  ;;  %v7409_v42 = vpop.f32.mrf.mxu1  ;;  %7778 = vmatprep.subr.mxu1 %v8296_v19  ;;  %7874 = vmatpush3.msra.mxu0 %v11857_v13  ;;  %v4489_v13 = vrot.slane %v10370_v25, 4 }
 0x2c9   :  { %7779 = vmatpush3.msra.mxu1 %v11858_v22  ;;  %7875 = vmatprep.mubr.msk.f32.mxu0 %vm8297_vm3, %v8296_v19  ;;  %v7396_v29 = vpop.f32.mrf.mxu0  ;;  %v11891_v42 = vld [vmem:[#allocation197_spill] sm:$0xff] }
 0x2ca   :  { %7780 = vmatprep.subr.mxu1 %v8296_v19  ;;  %7891 = vmatprep.subr.mxu0 %v8296_v19  ;;  %v11892_v22 = vld [vmem:[#allocation221_spill] sm:$0xff]  ;;  %v11893_v29 = vld [vmem:[#allocation196_spill] sm:$0xff] }
 0x2cb   :  { %7781 = vmatpush3.msra.mxu1 %v11859_v60  ;;  %7876 = vmatmul.mubr.msk.f32.vlgmr.msra.gmra.mxu0 %vm1458_vm2, %v4409_v28  ;;  %v11895_v60 = vld [vmem:[#allocation195_spill] sm:$0xff] }
 0x2cc   :  { %7782 = vmatprep.subr.mxu1 %v8296_v19  ;;  %7892 = vmatpush3.msra.mxu0 %v11860_v6  ;;  %v4889_v6 = vrot.slane %v10376_v34, 6 }
 0x2cd   :  { %7783 = vmatpush3.msra.mxu1 %v11861_v2  ;;  %7893 = vmatprep.subr.mxu0 %v8296_v19 }
 0x2ce   :  { %7785 = vmatmul.mubr.msk.f32.vlgmr.msra.gmra.mxu1 %vm1458_vm2, %v3849_v30  ;;  %7800 = vmatprep.subr.mxu1 %v8296_v19  ;;  %v11894_v30 = vld [vmem:[#allocation220_spill] sm:$0xff] }
 0x2cf   :  { %7801 = vmatpush3.msra.mxu1 %v11862_v23  ;;  %7810 = vmatprep.mubr.msk.f32.mxu1 %vm8297_vm3, %v8296_v19 }
 0x2d0   :  { %v1678_v5 = vpop.f32.mrf.mxu1  ;;  %7802 = vmatprep.subr.mxu1 %v8296_v19  ;;  %7894 = vmatpush3.msra.mxu0 %v11863_v4 }
 0x2d1   :  { %v1682_v9 = vadd.f32 %v1678_v5, %v1600_v39  ;;  %7803 = vmatpush3.msra.mxu1 %v11864_v3  ;;  %7895 = vmatprep.subr.mxu0 %v8296_v19  ;;  %v11890_v39 = vld [vmem:[#allocation222_spill] sm:$0xff] }
 0x2d2   :  { %v7422_v8 = vpop.f32.mrf.mxu1  ;;  %7804 = vmatprep.subr.mxu1 %v8296_v19  ;;  %7896 = vmatpush3.msra.mxu0 %v11865_v26  ;;  %v11899_v26 = vld [vmem:[#allocation207_spill] sm:$0xff] }
 0x2d3   :  { %7805 = vmatpush3.msra.mxu1 %v11866_v27  ;;  %7897 = vmatprep.subr.mxu0 %v8296_v19  ;;  %v11898_v8 = vld [vmem:[#allocation234_spill] sm:$0xff]  ;;  %v11900_v27 = vld [vmem:[#allocation233_spill] sm:$0xff] }
 0x2d4   :  { %7806 = vmatprep.subr.mxu1 %v8296_v19  ;;  %7898 = vmatpush3.msra.mxu0 %v11867_v21  ;;  %v11901_v21 = vld [vmem:[#allocation206_spill] sm:$0xff] }
 0x2d5   :  { %7807 = vmatpush3.msra.mxu1 %v11868_v37  ;;  %7899 = vmatprep.subr.mxu0 %v8296_v19  ;;  %v11902_v37 = vld [vmem:[#allocation232_spill] sm:$0xff] }
 0x2d6   :  { %7808 = vmatprep.subr.mxu1 %v8296_v19  ;;  %7900 = vmatpush3.msra.mxu0 %v11869_v45  ;;  %v11903_v45 = vld [vmem:[#allocation205_spill] sm:$0xff] }
 0x2d7   :  { %7809 = vmatpush3.msra.mxu1 %v11870_v52  ;;  %7901 = vmatprep.mubr.msk.f32.mxu0 %vm8297_vm3, %v8296_v19  ;;  %v10901_v57 = vpop.f32.mrf.mxu0  ;;  %v11904_v52 = vld [vmem:[#allocation219_spill] sm:$0xff] }
 0x2d8   :  { %7811 = vmatmul.mubr.msk.f32.vlgmr.msra.gmra.mxu1 %vm1458_vm2, %v10372_v20  ;;  %7826 = vmatprep.subr.mxu1 %v8296_v19 }
 0x2d9   :  { %7827 = vmatpush3.msra.mxu1 %v11871_v58  ;;  %7836 = vmatprep.mubr.msk.f32.mxu1 %vm8297_vm3, %v8296_v19  ;;  %v7565_v24 = vpop.f32.mrf.mxu0  ;;  %v11905_v58 = vld [vmem:[#allocation231_spill] sm:$0xff] }
 0x2da   :  { %v1758_v61 = vpop.f32.mrf.mxu1  ;;  %7828 = vmatprep.subr.mxu1 %v8296_v19  ;;  %7917 = vmatprep.subr.mxu0 %v8296_v19 }
 0x2db   :  { %v1762_v62 = vadd.f32 %v1758_v61, %v1682_v9  ;;  %7829 = vmatpush3.msra.mxu1 %v11872_v63  ;;  %7902 = vmatmul.mubr.msk.f32.vlgmr.msra.gmra.mxu0 %vm1458_vm2, %v4569_v55  ;;  %v11897_v9 = vld [vmem:[#allocation208_spill] sm:$0xff]  ;;  %v11906_v61 = vld [vmem:[#allocation218_spill] sm:$0xff] }
 0x2dc   :  { %v7435_v15 = vpop.f32.mrf.mxu1  ;;  %7830 = vmatprep.subr.mxu1 %v8296_v19  ;;  %7918 = vmatpush3.msra.mxu0 %v11873_v59  ;;  %v11908_v59 = vld [vmem:[#allocation217_spill] sm:$0xff] }
 0x2dd   :  { %7831 = vmatpush3.msra.mxu1 %v11874_v44  ;;  %7919 = vmatprep.subr.mxu0 %v8296_v19  ;;  %v11907_v15 = vld [vmem:[#allocation230_spill] sm:$0xff] }
 0x2de   :  { %7832 = vmatprep.subr.mxu1 %v8296_v19  ;;  %7920 = vmatpush3.msra.mxu0 %v11875_v48  ;;  %v11909_v48 = vld [vmem:[#allocation216_spill] sm:$0xff] }
 0x2df   :  { %7833 = vmatpush3.msra.mxu1 %v11876_v43  ;;  %7921 = vmatprep.subr.mxu0 %v8296_v19 }
 0x2e0   :  { %7834 = vmatprep.subr.mxu1 %v8296_v19  ;;  %7922 = vmatpush3.msra.mxu0 %v11877_v36  ;;  %v11910_v36 = vld [vmem:[#allocation244_spill] sm:$0xff] }
 0x2e1   :  { %7835 = vmatpush3.msra.mxu1 %v11878_v53  ;;  %7923 = vmatprep.subr.mxu0 %v8296_v19  ;;  %v11911_v53 = vld [vmem:[#allocation215_spill] sm:$0xff] }
 0x2e2   :  { %7837 = vmatmul.mubr.msk.f32.vlgmr.msra.gmra.mxu1 %vm1458_vm2, %v4169_v32  ;;  %7852 = vmatprep.subr.mxu1 %v8296_v19  ;;  %v4809_v32 = vrot.slane %v10376_v34, 4 }
 0x2e3   :  { %7853 = vmatpush3.msra.mxu1 %v11879_v38  ;;  %7862 = vmatprep.mubr.msk.f32.mxu1 %vm8297_vm3, %v8296_v19 }
 0x2e4   :  { %v1838_v20 = vpop.f32.mrf.mxu1  ;;  %7854 = vmatprep.subr.mxu1 %v8296_v19  ;;  %7924 = vmatpush3.msra.mxu0 %v11880_v46 }
 0x2e5   :  { %v1842_v50 = vadd.f32 %v1838_v20, %v1762_v62  ;;  %7855 = vmatpush3.msra.mxu1 %v11881_v47  ;;  %7925 = vmatprep.subr.mxu0 %v8296_v19  ;;  %v5049_v62 = vrot.slane %v10374_v40, 2  ;;  %v11913_v20 = vld [vmem:[#allocation243_spill] sm:$0xff] }
 0x2e6   :  { %v7448_v0 = vpop.f32.mrf.mxu1  ;;  %7856 = vmatprep.subr.mxu1 %v8296_v19  ;;  %7926 = vmatpush3.msra.mxu0 %v11882_v18  ;;  %v11917_v18 = vld [vmem:[#allocation241_spill] sm:$0xff] }
 0x2e7   :  { %7857 = vmatpush3.msra.mxu1 %v11883_v10  ;;  %7927 = vmatprep.mubr.msk.f32.mxu0 %vm8297_vm3, %v8296_v19  ;;  %v10941_v41 = vpop.f32.mrf.mxu0  ;;  %v11916_v0 = vld [vmem:[#allocation227_spill] sm:$0xff]  ;;  %v11918_v10 = vld [vmem:[#allocation226_spill] sm:$0xff] }
 0x2e8   :  { %7858 = vmatprep.subr.mxu1 %v8296_v19  ;;  %7943 = vmatprep.subr.mxu0 %v8296_v19 }
 0x2e9   :  { %7859 = vmatpush3.msra.mxu1 %v11884_v16  ;;  %7928 = vmatmul.mubr.msk.f32.vlgmr.msra.gmra.mxu0 %vm1458_vm2, %v4729_v35  ;;  %v7591_v54 = vpop.f32.mrf.mxu0  ;;  %v11915_v35 = vld [vmem:[#allocation242_spill] sm:$0xff]  ;;  %v11919_v16 = vld [vmem:[#allocation240_spill] sm:$0xff] }
 0x2ea   :  { %7860 = vmatprep.subr.mxu1 %v8296_v19  ;;  %7944 = vmatpush3.msra.mxu0 %v11885_v51  ;;  %v11920_v54 = vld [vmem:[#allocation225_spill] sm:$0xff]  ;;  %v5209_v51 = vrot.slane %v10374_v40, 6 }
 0x2eb   :  { %7861 = vmatpush3.msra.mxu1 %v11886_v11  ;;  %7945 = vmatprep.subr.mxu0 %v8296_v19 }
 0x2ec   :  { %7863 = vmatmul.mubr.msk.f32.vlgmr.msra.gmra.mxu1 %vm1458_vm2, %v10370_v25  ;;  %7878 = vmatprep.subr.mxu1 %v8296_v19  ;;  %v11896_v25 = vld [vmem:[#allocation209_spill] sm:$0xff] }
 0x2ed   :  { %7879 = vmatpush3.msra.mxu1 %v11887_v49  ;;  %7888 = vmatprep.mubr.msk.f32.mxu1 %vm8297_vm3, %v8296_v19  ;;  %v11921_v49 = vld [vmem:[#allocation239_spill] sm:$0xff] }
 0x2ee   :  { %v1918_v17 = vpop.f32.mrf.mxu1  ;;  %7880 = vmatprep.subr.mxu1 %v8296_v19  ;;  %7946 = vmatpush3.msra.mxu0 %v11888_v33 }
 0x2ef   :  { %v1922_v12 = vadd.f32 %v1918_v17, %v1842_v50  ;;  %7881 = vmatpush3.msra.mxu1 %v11889_v14  ;;  %7947 = vmatprep.subr.mxu0 %v8296_v19  ;;  %v11914_v50 = vld [vmem:[#allocation228_spill] sm:$0xff]  ;;  %v11922_v14 = vld [vmem:[#allocation238_spill] sm:$0xff] }
 0x2f0   :  { %v7461_v28 = vpop.f32.mrf.mxu1  ;;  %7882 = vmatprep.subr.mxu1 %v8296_v19  ;;  %7948 = vmatpush3.msra.mxu0 %v11890_v39  ;;  %v11923_v39 = vld [vmem:[#allocation254_spill] sm:$0xff] }
 0x2f1   :  { %7883 = vmatpush3.msra.mxu1 %v11891_v42  ;;  %7949 = vmatprep.subr.mxu0 %v8296_v19  ;;  %v11924_v42 = vld [vmem:[#allocation237_spill] sm:$0xff] }
 0x2f2   :  { %7884 = vmatprep.subr.mxu1 %v8296_v19  ;;  %7950 = vmatpush3.msra.mxu0 %v11892_v22  ;;  %v11925_v22 = vld [vmem:[#allocation253_spill] sm:$0xff] }
 0x2f3   :  { %7885 = vmatpush3.msra.mxu1 %v11893_v29  ;;  %7951 = vmatprep.subr.mxu0 %v8296_v19  ;;  %v11926_v29 = vld [vmem:[#allocation236_spill] sm:$0xff] }
 0x2f4   :  { %7886 = vmatprep.subr.mxu1 %v8296_v19  ;;  %7952 = vmatpush3.msra.mxu0 %v11894_v30  ;;  %v11927_v30 = vld [vmem:[#allocation252_spill] sm:$0xff] }
 0x2f5   :  { %7887 = vmatpush3.msra.mxu1 %v11895_v60  ;;  %7953 = vmatprep.mubr.msk.f32.mxu0 %vm8297_vm3, %v8296_v19  ;;  %v10976_v2 = vpop.f32.mrf.mxu0  ;;  %v11928_v60 = vld [vmem:[#allocation235_spill] sm:$0xff] }
 0x2f6   :  { %7889 = vmatmul.mubr.msk.f32.vlgmr.msra.gmra.mxu1 %vm1458_vm2, %v4489_v13  ;;  %7904 = vmatprep.subr.mxu1 %v8296_v19  ;;  %v5129_v13 = vrot.slane %v10374_v40, 4 }
 0x2f7   :  { %7905 = vmatpush3.msra.mxu1 %v11896_v25  ;;  %7914 = vmatprep.mubr.msk.f32.mxu1 %vm8297_vm3, %v8296_v19  ;;  %v7617_v23 = vpop.f32.mrf.mxu0 }
 0x2f8   :  { %v1998_v5 = vpop.f32.mrf.mxu1  ;;  %7906 = vmatprep.subr.mxu1 %v8296_v19  ;;  %7969 = vmatprep.subr.mxu0 %v8296_v19 }
 0x2f9   :  { %v2002_v4 = vadd.f32 %v1998_v5, %v1922_v12  ;;  %7907 = vmatpush3.msra.mxu1 %v11897_v9  ;;  %7954 = vmatmul.mubr.msk.f32.vlgmr.msra.gmra.mxu0 %vm1458_vm2, %v4889_v6  ;;  %v11929_v6 = vld [vmem:[#allocation249_spill] sm:$0xff]  ;;  %v11931_v5 = vld [vmem:[#allocation248_spill] sm:$0xff] }
 0x2fa   :  { %v7474_v3 = vpop.f32.mrf.mxu1  ;;  %7908 = vmatprep.subr.mxu1 %v8296_v19  ;;  %7970 = vmatpush3.msra.mxu0 %v11898_v8  ;;  %v11933_v8 = vld [vmem:[#allocation247_spill] sm:$0xff] }
 0x2fb   :  { %7909 = vmatpush3.msra.mxu1 %v11899_v26  ;;  %7971 = vmatprep.subr.mxu0 %v8296_v19  ;;  %v11932_v3 = vld [vmem:[#allocation250_spill] sm:$0xff] }
 0x2fc   :  { %7910 = vmatprep.subr.mxu1 %v8296_v19  ;;  %7972 = vmatpush3.msra.mxu0 %v11900_v27  ;;  %v11934_v27 = vld [vmem:[#allocation246_spill] sm:$0xff] }
 0x2fd   :  { %7911 = vmatpush3.msra.mxu1 %v11901_v21  ;;  %7973 = vmatprep.subr.mxu0 %v8296_v19 }
 0x2fe   :  { %7912 = vmatprep.subr.mxu1 %v8296_v19  ;;  %7974 = vmatpush3.msra.mxu0 %v11902_v37  ;;  %v11935_v37 = vld [vmem:[#allocation264_spill] sm:$0xff] }
 0x2ff   :  { %7913 = vmatpush3.msra.mxu1 %v11903_v45  ;;  %7975 = vmatprep.subr.mxu0 %v8296_v19  ;;  %v11936_v45 = vld [vmem:[#allocation245_spill] sm:$0xff] }
 0x300   :  { %7915 = vmatmul.mubr.msk.f32.vlgmr.msra.gmra.mxu1 %vm1458_vm2, %v10376_v34  ;;  %7930 = vmatprep.subr.mxu1 %v8296_v19  ;;  %v11912_v34 = vld [vmem:[#allocation229_spill] sm:$0xff] }
 0x301   :  { %7931 = vmatpush3.msra.mxu1 %v11904_v52  ;;  %7940 = vmatprep.mubr.msk.f32.mxu1 %vm8297_vm3, %v8296_v19  ;;  %v11937_v52 = vld [vmem:[#allocation259_spill] sm:$0xff] }
 0x302   :  { %v2078_v55 = vpop.f32.mrf.mxu1  ;;  %7932 = vmatprep.subr.mxu1 %v8296_v19  ;;  %7976 = vmatpush3.msra.mxu0 %v11905_v58 }
 0x303   :  { %v2082_v24 = vadd.f32 %v2078_v55, %v2002_v4  ;;  %7933 = vmatpush3.msra.mxu1 %v11906_v61  ;;  %7977 = vmatprep.subr.mxu0 %v8296_v19  ;;  %v5369_v4 = vrot.slane %v10380_v7, 2  ;;  %v11938_v55 = vld [vmem:[#allocation263_spill] sm:$0xff]  ;;  %v11939_v61 = vld [vmem:[#allocation258_spill] sm:$0xff] }
 0x304   :  { %v7487_v63 = vpop.f32.mrf.mxu1  ;;  %7934 = vmatprep.subr.mxu1 %v8296_v19  ;;  %7978 = vmatpush3.msra.mxu0 %v11907_v15  ;;  %v11941_v15 = vld [vmem:[#allocation257_spill] sm:$0xff] }
 0x305   :  { %7935 = vmatpush3.msra.mxu1 %v11908_v59  ;;  %7979 = vmatprep.mubr.msk.f32.mxu0 %vm8297_vm3, %v8296_v19  ;;  %v11015_v44 = vpop.f32.mrf.mxu0  ;;  %v11942_v59 = vld [vmem:[#allocation261_spill] sm:$0xff] }
 0x306   :  { %7936 = vmatprep.subr.mxu1 %v8296_v19  ;;  %7995 = vmatprep.subr.mxu0 %v8296_v19 }
 0x307   :  { %7937 = vmatpush3.msra.mxu1 %v11909_v48  ;;  %7980 = vmatmul.mubr.msk.f32.vlgmr.msra.gmra.mxu0 %vm1458_vm2, %v5049_v62  ;;  %v7643_v43 = vpop.f32.mrf.mxu0  ;;  %v11940_v62 = vld [vmem:[#allocation262_spill] sm:$0xff]  ;;  %v11943_v48 = vld [vmem:[#allocation256_spill] sm:$0xff] }
 0x308   :  { %7938 = vmatprep.subr.mxu1 %v8296_v19  ;;  %7996 = vmatpush3.msra.mxu0 %v11910_v36  ;;  %v5529_v43 = vrot.slane %v10380_v7, 6  ;;  %v11944_v36 = vld [vmem:[#allocation260_spill] sm:$0xff] }
 0x309   :  { %7939 = vmatpush3.msra.mxu1 %v11911_v53  ;;  %7997 = vmatprep.subr.mxu0 %v8296_v19  ;;  %v11945_v53 = vld [vmem:[#allocation255_spill] sm:$0xff] }
 0x30a   :  { %7941 = vmatmul.mubr.msk.f32.vlgmr.msra.gmra.mxu1 %vm1458_vm2, %v4809_v32  ;;  %7956 = vmatprep.subr.mxu1 %v8296_v19  ;;  %v5449_v32 = vrot.slane %v10380_v7, 4 }
 0x30b   :  { %7957 = vmatpush3.msra.mxu1 %v11912_v34  ;;  %7966 = vmatprep.mubr.msk.f32.mxu1 %vm8297_vm3, %v8296_v19 }
 0x30c   :  { %v2158_v38 = vpop.f32.mrf.mxu1  ;;  %7958 = vmatprep.subr.mxu1 %v8296_v19  ;;  %7998 = vmatpush3.msra.mxu0 %v11913_v20  ;;  %v11947_v20 = vld [vmem:[#allocation274_spill] sm:$0xff] }
 0x30d   :  { %v2162_v46 = vadd.f32 %v2158_v38, %v2082_v24  ;;  %7959 = vmatpush3.msra.mxu1 %v11914_v50  ;;  %7999 = vmatprep.subr.mxu0 %v8296_v19  ;;  %v11946_v38 = vld [vmem:[#allocation269_spill] sm:$0xff] }
 0x30e   :  { %v7500_v47 = vpop.f32.mrf.mxu1  ;;  %7960 = vmatprep.subr.mxu1 %v8296_v19  ;;  %8000 = vmatpush3.msra.mxu0 %v11915_v35  ;;  %v11949_v35 = vld [vmem:[#allocation273_spill] sm:$0xff] }
 0x30f   :  { %7961 = vmatpush3.msra.mxu1 %v11916_v0  ;;  %8001 = vmatprep.subr.mxu0 %v8296_v19  ;;  %v11948_v47 = vld [vmem:[#allocation268_spill] sm:$0xff] }
 0x310   :  { %7962 = vmatprep.subr.mxu1 %v8296_v19  ;;  %8002 = vmatpush3.msra.mxu0 %v11917_v18  ;;  %v11950_v18 = vld [vmem:[#allocation267_spill] sm:$0xff] }
 0x311   :  { %7963 = vmatpush3.msra.mxu1 %v11918_v10  ;;  %8003 = vmatprep.subr.mxu0 %v8296_v19  ;;  %v11951_v10 = vld [vmem:[#allocation272_spill] sm:$0xff] }
 0x312   :  { %7964 = vmatprep.subr.mxu1 %v8296_v19  ;;  %8004 = vmatpush3.msra.mxu0 %v11919_v16  ;;  %v11952_v16 = vld [vmem:[#allocation266_spill] sm:$0xff] }
 0x313   :  { %7965 = vmatpush3.msra.mxu1 %v11920_v54  ;;  %8005 = vmatprep.mubr.msk.f32.mxu0 %vm8297_vm3, %v8296_v19  ;;  %v11049_v11 = vpop.f32.mrf.mxu0  ;;  %v11953_v54 = vld [vmem:[#allocation271_spill] sm:$0xff] }
 0x314   :  { %7967 = vmatmul.mubr.msk.f32.vlgmr.msra.gmra.mxu1 %vm1458_vm2, %v10374_v40  ;;  %7982 = vmatprep.subr.mxu1 %v8296_v19  ;;  %v11930_v40 = vld [vmem:[#allocation251_spill] sm:$0xff] }
 0x315   :  { %7983 = vmatpush3.msra.mxu1 %v11921_v49  ;;  %7992 = vmatprep.mubr.msk.f32.mxu1 %vm8297_vm3, %v8296_v19  ;;  %v7669_v17 = vpop.f32.mrf.mxu0  ;;  %v11954_v49 = vld [vmem:[#allocation265_spill] sm:$0xff] }
 0x316   :  { %v2238_v33 = vpop.f32.mrf.mxu1  ;;  %7984 = vmatprep.subr.mxu1 %v8296_v19  ;;  %8021 = vmatprep.subr.mxu0 %v8296_v19 }
 0x317   :  { %v2242_v12 = vadd.f32 %v2238_v33, %v2162_v46  ;;  %7985 = vmatpush3.msra.mxu1 %v11922_v14  ;;  %8006 = vmatmul.mubr.msk.f32.vlgmr.msra.gmra.mxu0 %vm1458_vm2, %v5209_v51  ;;  %v5689_v51 = vrot.slane %v10378_v1, 2  ;;  %v11955_v33 = vld [vmem:[#allocation270_spill] sm:$0xff] }
 0x318   :  { %v7513_v28 = vpop.f32.mrf.mxu1  ;;  %7986 = vmatprep.subr.mxu1 %v8296_v19  ;;  %8022 = vmatpush3.msra.mxu0 %v11923_v39  ;;  %v11957_v39 = vld [vmem:[#allocation284_spill] sm:$0xff] }
 0x319   :  { %7987 = vmatpush3.msra.mxu1 %v11924_v42  ;;  %8023 = vmatprep.subr.mxu0 %v8296_v19  ;;  %v11956_v28 = vld [vmem:[#allocation279_spill] sm:$0xff] }
 0x31a   :  { %7988 = vmatprep.subr.mxu1 %v8296_v19  ;;  %8024 = vmatpush3.msra.mxu0 %v11925_v22  ;;  %v11959_v22 = vld [vmem:[#allocation283_spill] sm:$0xff] }
 0x31b   :  { %7989 = vmatpush3.msra.mxu1 %v11926_v29  ;;  %8025 = vmatprep.subr.mxu0 %v8296_v19 }
 0x31c   :  { %7990 = vmatprep.subr.mxu1 %v8296_v19  ;;  %8026 = vmatpush3.msra.mxu0 %v11927_v30  ;;  %v11960_v30 = vld [vmem:[#allocation277_spill] sm:$0xff] }
 0x31d   :  { %7991 = vmatpush3.msra.mxu1 %v11928_v60  ;;  %8027 = vmatprep.subr.mxu0 %v8296_v19  ;;  %v11961_v60 = vld [vmem:[#allocation282_spill] sm:$0xff] }
 0x31e   :  { %7993 = vmatmul.mubr.msk.f32.vlgmr.msra.gmra.mxu1 %vm1458_vm2, %v5129_v13  ;;  %8008 = vmatprep.subr.mxu1 %v8296_v19  ;;  %v11958_v13 = vld [vmem:[#allocation278_spill] sm:$0xff] }
 0x31f   :  { %8009 = vmatpush3.msra.mxu1 %v11929_v6  ;;  %8028 = vmatpush3.msra.mxu0 %v11930_v40  ;;  %v5769_v6 = vrot.slane %v10378_v1, 4  ;;  %v11962_v40 = vld [vmem:[#allocation276_spill] sm:$0xff] }
 0x320   :  { %v2318_v25 = vpop.f32.mrf.mxu1  ;;  %8010 = vmatprep.subr.mxu1 %v8296_v19  ;;  %8029 = vmatprep.subr.mxu0 %v8296_v19 }
 0x321   :  { %v2322_v23 = vadd.f32 %v2318_v25, %v2242_v12  ;;  %8011 = vmatpush3.msra.mxu1 %v11931_v5  ;;  %8018 = vmatprep.mubr.msk.f32.mxu1 %vm8297_vm3, %v8296_v19  ;;  %v11963_v25 = vld [vmem:[#allocation281_spill] sm:$0xff]  ;;  %v5849_v5 = vrot.slane %v10378_v1, 6 }
 0x322   :  { %v7526_v9 = vpop.f32.mrf.mxu1  ;;  %8012 = vmatprep.subr.mxu1 %v8296_v19  ;;  %8030 = vmatpush3.msra.mxu0 %v11932_v3  ;;  %v11965_v3 = vld [vmem:[#allocation280_spill] sm:$0xff] }
 0x323   :  { %8013 = vmatpush3.msra.mxu1 %v11933_v8  ;;  %8031 = vmatprep.mubr.msk.f32.mxu0 %vm8297_vm3, %v8296_v19  ;;  %v11089_v26 = vpop.f32.mrf.mxu0 }
 0x324   :  { %8014 = vmatprep.subr.mxu1 %v8296_v19  ;;  %8047 = vmatprep.subr.mxu0 %v8296_v19 }
 0x325   :  { %8015 = vmatpush3.msra.mxu1 %v11934_v27  ;;  %8032 = vmatmul.mubr.msk.f32.vlgmr.msra.gmra.mxu0 %vm1458_vm2, %v5369_v4  ;;  %v7695_v21 = vpop.f32.mrf.mxu0  ;;  %v11964_v4 = vld [vmem:[#allocation275_spill] sm:$0xff]  ;;  %v11967_v27 = vld [vmem:[#allocation294_spill] sm:$0xff] }
 0x326   :  { %8016 = vmatprep.subr.mxu1 %v8296_v19  ;;  %8048 = vmatpush3.msra.mxu0 %v11935_v37  ;;  %v11968_v21 = vld [vmem:[#allocation288_spill] sm:$0xff]  ;;  %v11969_v37 = vld [vmem:[#allocation293_spill] sm:$0xff] }
 0x327   :  { %8017 = vmatpush3.msra.mxu1 %v11936_v45  ;;  %8049 = vmatprep.subr.mxu0 %v8296_v19 }
 0x328   :  { %8019 = vmatmul.mubr.msk.f32.vlgmr.msra.gmra.mxu1 %vm1458_vm2, %v10380_v7  ;;  %8034 = vmatprep.subr.mxu1 %v8296_v19 }
 0x329   :  { %8035 = vmatpush3.msra.mxu1 %v11937_v52  ;;  %8050 = vmatpush3.msra.mxu0 %v11938_v55  ;;  %v11970_v52 = vld [vmem:[#allocation287_spill] sm:$0xff]  ;;  %v11971_v55 = vld [vmem:[#allocation292_spill] sm:$0xff] }
 0x32a   :  { %v2398_v58 = vpop.f32.mrf.mxu1  ;;  %8036 = vmatprep.subr.mxu1 %v8296_v19  ;;  %8051 = vmatprep.subr.mxu0 %v8296_v19 }
 0x32b   :  { %v2402_v24 = vadd.f32 %v2398_v58, %v2322_v23  ;;  %8037 = vmatpush3.msra.mxu1 %v11939_v61  ;;  %8052 = vmatpush3.msra.mxu0 %v11940_v62  ;;  %v11972_v61 = vld [vmem:[#allocation286_spill] sm:$0xff]  ;;  %v11973_v62 = vld [vmem:[#allocation291_spill] sm:$0xff] }
 0x32c   :  { %v7539_v63 = vpop.f32.mrf.mxu1  ;;  %8038 = vmatprep.subr.mxu1 %v8296_v19  ;;  %8053 = vmatprep.subr.mxu0 %v8296_v19 }
 0x32d   :  { %8039 = vmatpush3.msra.mxu1 %v11941_v15  ;;  %8054 = vmatpush3.msra.mxu0 %v11942_v59  ;;  %v6009_v15 = vrot.slane %v10384_v56, 2 }
 0x32e   :  { %8040 = vmatprep.subr.mxu1 %v8296_v19  ;;  %8055 = vmatprep.subr.mxu0 %v8296_v19 }
 0x32f   :  { %8041 = vmatpush3.msra.mxu1 %v11943_v48  ;;  %8044 = vmatprep.mubr.msk.f32.mxu1 %vm8297_vm3, %v8296_v19  ;;  %v11975_v48 = vld [vmem:[#allocation290_spill] sm:$0xff] }
 0x330   :  { %8042 = vmatprep.subr.mxu1 %v8296_v19  ;;  %8056 = vmatpush3.msra.mxu0 %v11944_v36  ;;  %v11977_v36 = vld [vmem:[#allocation304_spill] sm:$0xff] }
 0x331   :  { %8043 = vmatpush3.msra.mxu1 %v11945_v53  ;;  %8057 = vmatprep.mubr.msk.f32.mxu0 %vm8297_vm3, %v8296_v19  ;;  %v11124_v34 = vpop.f32.mrf.mxu0  ;;  %v11978_v53 = vld [vmem:[#allocation298_spill] sm:$0xff] }
 0x332   :  { %8045 = vmatmul.mubr.msk.f32.vlgmr.msra.gmra.mxu1 %vm1458_vm2, %v5449_v32  ;;  %8060 = vmatprep.subr.mxu1 %v8296_v19  ;;  %v11974_v32 = vld [vmem:[#allocation285_spill] sm:$0xff] }
 0x333   :  { %8073 = vmatprep.subr.mxu0 %v8296_v19  ;;  %8058 = vmatmul.mubr.msk.f32.vlgmr.msra.gmra.mxu0 %vm1458_vm2, %v5529_v43  ;;  %v7721_v7 = vpop.f32.mrf.mxu0  ;;  %v11976_v43 = vld [vmem:[#allocation299_spill] sm:$0xff] }
 0x334   :  { %8061 = vmatpush3.msra.mxu1 %v11946_v38  ;;  %8074 = vmatpush3.msra.mxu0 %v11947_v20  ;;  %v2478_v46 = vpop.f32.mrf.mxu1  ;;  %v11979_v7 = vld [vmem:[#allocation303_spill] sm:$0xff]  ;;  %v11980_v20 = vld [vmem:[#allocation297_spill] sm:$0xff] }
 0x335   :  { %v2482_v50 = vadd.f32 %v2478_v46, %v2402_v24  ;;  %8062 = vmatprep.subr.mxu1 %v8296_v19  ;;  %8075 = vmatprep.subr.mxu0 %v8296_v19  ;;  %v11981_v46 = vld [vmem:[#allocation302_spill] sm:$0xff] }
 0x336   :  { %8063 = vmatpush3.msra.mxu1 %v11948_v47  ;;  %8076 = vmatpush3.msra.mxu0 %v11949_v35  ;;  %v7552_v0 = vpop.f32.mrf.mxu1  ;;  %v6089_v47 = vrot.slane %v10384_v56, 4 }
 0x337   :  { %8064 = vmatprep.subr.mxu1 %v8296_v19  ;;  %8077 = vmatprep.subr.mxu0 %v8296_v19  ;;  %v2562_v17 = vadd.f32 %v10901_v57, %v2482_v50  ;;  %v11982_v0 = vld [vmem:[#allocation296_spill] sm:$0xff] }
 0x338   :  { %8065 = vmatpush3.msra.mxu1 %v11950_v18  ;;  %8078 = vmatpush3.msra.mxu0 %v11951_v10  ;;  %v11983_v18 = vld [vmem:[#allocation301_spill] sm:$0xff]  ;;  %v6169_v10 = vrot.slane %v10384_v56, 6 }
 0x339   :  { %8066 = vmatprep.subr.mxu1 %v8296_v19  ;;  %8079 = vmatprep.subr.mxu0 %v8296_v19 }
 0x33a   :  { %8067 = vmatpush3.msra.mxu1 %v11952_v16  ;;  %8080 = vmatpush3.msra.mxu0 %v11953_v54  ;;  %v11984_v54 = vld [vmem:[#allocation295_spill] sm:$0xff] }
 0x33b   :  { %8068 = vmatprep.subr.mxu1 %v8296_v19  ;;  %8081 = vmatprep.subr.mxu0 %v8296_v19 }
 0x33c   :  { %8069 = vmatpush3.msra.mxu1 %v11954_v49  ;;  %8070 = vmatprep.mubr.msk.f32.mxu1 %vm8297_vm3, %v8296_v19 }
 0x33d   :  { %8082 = vmatpush3.msra.mxu0 %v11955_v33  ;;  %8071 = vmatmul.mubr.msk.f32.vlgmr.msra.gmra.mxu1 %vm1458_vm2, %v10378_v1  ;;  %v11966_v1 = vld [vmem:[#allocation289_spill] sm:$0xff] }
 0x33e   :  { %8083 = vmatprep.mubr.msk.f32.mxu0 %vm8297_vm3, %v8296_v19  ;;  %8086 = vmatprep.subr.mxu1 %v8296_v19  ;;  %v2638_v12 = vpop.f32.mrf.mxu1 }
 0x33f   :  { %8099 = vmatprep.subr.mxu0 %v8296_v19  ;;  %8084 = vmatmul.mubr.msk.f32.vlgmr.msra.gmra.mxu0 %vm1458_vm2, %v5689_v51  ;;  %v2642_v14 = vadd.f32 %v2638_v12, %v2562_v17  ;;  %v11985_v51 = vld [vmem:[#allocation300_spill] sm:$0xff]  ;;  %v11987_v17 = vld [vmem:[#allocation314_spill] sm:$0xff] }
 0x340   :  { %8087 = vmatpush3.msra.mxu1 %v11956_v28  ;;  %8100 = vmatpush3.msra.mxu0 %v11957_v39  ;;  %v7578_v57 = vpop.f32.mrf.mxu1  ;;  %v11988_v12 = vld [vmem:[#allocation308_spill] sm:$0xff] }
 0x341   :  { %8088 = vmatprep.subr.mxu1 %v8296_v19  ;;  %8101 = vmatprep.subr.mxu0 %v8296_v19  ;;  %v11163_v42 = vpop.f32.mrf.mxu0  ;;  %v2722_v23 = vadd.f32 %v10941_v41, %v2642_v14  ;;  %v11989_v14 = vld [vmem:[#allocation313_spill] sm:$0xff]  ;;  %v11990_v57 = vld [vmem:[#allocation307_spill] sm:$0xff] }
 0x342   :  { %8089 = vmatpush3.msra.mxu1 %v11958_v13  ;;  %8102 = vmatpush3.msra.mxu0 %v11959_v22  ;;  %v11991_v13 = vld [vmem:[#allocation312_spill] sm:$0xff] }
 0x343   :  { %8090 = vmatprep.subr.mxu1 %v8296_v19  ;;  %8103 = vmatprep.subr.mxu0 %v8296_v19  ;;  %v7747_v29 = vpop.f32.mrf.mxu0 }
 0x344   :  { %8091 = vmatpush3.msra.mxu1 %v11960_v30  ;;  %8104 = vmatpush3.msra.mxu0 %v11961_v60  ;;  %v11993_v29 = vld [vmem:[#allocation311_spill] sm:$0xff]  ;;  %v6329_v30 = vrot.slane %v10382_v31, 2  ;;  %v11994_v60 = vld [vmem:[#allocation305_spill] sm:$0xff] }
 0x345   :  { %8092 = vmatprep.subr.mxu1 %v8296_v19  ;;  %8105 = vmatprep.subr.mxu0 %v8296_v19 }
 0x346   :  { %8093 = vmatpush3.msra.mxu1 %v11962_v40  ;;  %8106 = vmatpush3.msra.mxu0 %v11963_v25 }
 0x347   :  { %8094 = vmatprep.subr.mxu1 %v8296_v19  ;;  %8107 = vmatprep.subr.mxu0 %v8296_v19 }
 0x348   :  { %8095 = vmatpush3.msra.mxu1 %v11964_v4  ;;  %8096 = vmatprep.mubr.msk.f32.mxu1 %vm8297_vm3, %v8296_v19  ;;  %v2798_v9 = vpop.f32.mrf.mxu1  ;;  %v11997_v4 = vld [vmem:[#allocation324_spill] sm:$0xff] }
 0x349   :  { %8108 = vmatpush3.msra.mxu0 %v11965_v3  ;;  %8097 = vmatmul.mubr.msk.f32.vlgmr.msra.gmra.mxu1 %vm1458_vm2, %v5769_v6  ;;  %v2802_v8 = vadd.f32 %v2798_v9, %v2722_v23  ;;  %v11995_v6 = vld [vmem:[#allocation310_spill] sm:$0xff] }
 0x34a   :  { %8109 = vmatprep.mubr.msk.f32.mxu0 %vm8297_vm3, %v8296_v19  ;;  %8112 = vmatprep.subr.mxu1 %v8296_v19  ;;  %v7604_v41 = vpop.f32.mrf.mxu1 }
 0x34b   :  { %8125 = vmatprep.subr.mxu0 %v8296_v19  ;;  %8110 = vmatmul.mubr.msk.f32.vlgmr.msra.gmra.mxu0 %vm1458_vm2, %v5849_v5  ;;  %v2882_v58 = vadd.f32 %v10976_v2, %v2802_v8  ;;  %v11996_v5 = vld [vmem:[#allocation319_spill] sm:$0xff]  ;;  %v11998_v8 = vld [vmem:[#allocation318_spill] sm:$0xff] }
 0x34c   :  { %8113 = vmatpush3.msra.mxu1 %v11966_v1  ;;  %8126 = vmatpush3.msra.mxu0 %v11967_v27  ;;  %v11999_v41 = vld [vmem:[#allocation323_spill] sm:$0xff]  ;;  %v12000_v27 = vld [vmem:[#allocation317_spill] sm:$0xff] }
 0x34d   :  { %8114 = vmatprep.subr.mxu1 %v8296_v19  ;;  %8127 = vmatprep.subr.mxu0 %v8296_v19 }
 0x34e   :  { %8115 = vmatpush3.msra.mxu1 %v11968_v21  ;;  %8128 = vmatpush3.msra.mxu0 %v11969_v37  ;;  %v12001_v21 = vld [vmem:[#allocation322_spill] sm:$0xff]  ;;  %v12002_v37 = vld [vmem:[#allocation316_spill] sm:$0xff] }
 0x34f   :  { %8116 = vmatprep.subr.mxu1 %v8296_v19  ;;  %8129 = vmatprep.subr.mxu0 %v8296_v19  ;;  %v11198_v45 = vpop.f32.mrf.mxu0 }
 0x350   :  { %8117 = vmatpush3.msra.mxu1 %v11970_v52  ;;  %8130 = vmatpush3.msra.mxu0 %v11971_v55  ;;  %v12003_v52 = vld [vmem:[#allocation321_spill] sm:$0xff]  ;;  %v6409_v55 = vrot.slane %v10382_v31, 4 }
 0x351   :  { %8118 = vmatprep.subr.mxu1 %v8296_v19  ;;  %8131 = vmatprep.subr.mxu0 %v8296_v19  ;;  %v7773_v24 = vpop.f32.mrf.mxu0 }
 0x352   :  { %8119 = vmatpush3.msra.mxu1 %v11972_v61  ;;  %8132 = vmatpush3.msra.mxu0 %v11973_v62  ;;  %v2958_v63 = vpop.f32.mrf.mxu1  ;;  %v12005_v24 = vld [vmem:[#allocation320_spill] sm:$0xff] }
 0x353   :  { %8120 = vmatprep.subr.mxu1 %v8296_v19  ;;  %8133 = vmatprep.subr.mxu0 %v8296_v19  ;;  %v2962_v59 = vadd.f32 %v2958_v63, %v2882_v58  ;;  %v6489_v58 = vrot.slane %v10382_v31, 6 }
 0x354   :  { %8121 = vmatpush3.msra.mxu1 %v11974_v32  ;;  %8122 = vmatprep.mubr.msk.f32.mxu1 %vm8297_vm3, %v8296_v19  ;;  %v7630_v2 = vpop.f32.mrf.mxu1 }
 0x355   :  { %8134 = vmatpush3.msra.mxu0 %v11975_v48  ;;  %8123 = vmatmul.mubr.msk.f32.vlgmr.msra.gmra.mxu1 %vm1458_vm2, %v10384_v56  ;;  %v3042_v38 = vadd.f32 %v11015_v44, %v2962_v59  ;;  %v11986_v56 = vld [vmem:[#allocation309_spill] sm:$0xff] }
 0x356   :  { %8135 = vmatprep.mubr.msk.f32.mxu0 %vm8297_vm3, %v8296_v19  ;;  %8138 = vmatprep.subr.mxu1 %v8296_v19 }
 0x357   :  { %8151 = vmatprep.subr.mxu0 %v8296_v19  ;;  %8136 = vmatmul.mubr.msk.f32.vlgmr.msra.gmra.mxu0 %vm1458_vm2, %v6009_v15 }
 0x358   :  { %8139 = vmatpush3.msra.mxu1 %v11976_v43  ;;  %8152 = vmatpush3.msra.mxu0 %v11977_v36 }
 0x359   :  { %8140 = vmatprep.subr.mxu1 %v8296_v19  ;;  %8153 = vmatprep.subr.mxu0 %v8296_v19 }
 0x35a   :  { %8141 = vmatpush3.msra.mxu1 %v11978_v53  ;;  %8154 = vmatpush3.msra.mxu0 %v11979_v7 }
 0x35b   :  { %8142 = vmatprep.subr.mxu1 %v8296_v19  ;;  %8155 = vmatprep.subr.mxu0 %v8296_v19 }
 0x35c   :  { %8143 = vmatpush3.msra.mxu1 %v11980_v20  ;;  %8156 = vmatpush3.msra.mxu0 %v11981_v46  ;;  %v3118_v50 = vpop.f32.mrf.mxu1 }
 0x35d   :  { %8144 = vmatprep.subr.mxu1 %v8296_v19  ;;  %8157 = vmatprep.subr.mxu0 %v8296_v19  ;;  %v3122_v35 = vadd.f32 %v3118_v50, %v3042_v38 }
 0x35e   :  { %8145 = vmatpush3.msra.mxu1 %v11982_v0  ;;  %8158 = vmatpush3.msra.mxu0 %v11983_v18  ;;  %v7656_v44 = vpop.f32.mrf.mxu1 }
 0x35f   :  { %8146 = vmatprep.subr.mxu1 %v8296_v19  ;;  %8159 = vmatprep.subr.mxu0 %v8296_v19  ;;  %v11240_v16 = vpop.f32.mrf.mxu0  ;;  %v3202_v33 = vadd.f32 %v11049_v11, %v3122_v35  ;;  %v11992_v11 = vld [vmem:[#allocation306_spill] sm:$0xff] }
 0x360   :  { %8147 = vmatpush3.msra.mxu1 %v11984_v54  ;;  %8148 = vmatprep.mubr.msk.f32.mxu1 %vm8297_vm3, %v8296_v19 }
 0x361   :  { %8160 = vmatpush3.msra.mxu0 %v11985_v51  ;;  %8149 = vmatmul.mubr.msk.f32.vlgmr.msra.gmra.mxu1 %vm1458_vm2, %v6089_v47  ;;  %v7799_v49 = vpop.f32.mrf.mxu0 }
 0x362   :  { %8161 = vmatprep.mubr.msk.f32.mxu0 %vm8297_vm3, %v8296_v19  ;;  %8164 = vmatprep.subr.mxu1 %v8296_v19 }
 0x363   :  { %8177 = vmatprep.subr.mxu0 %v8296_v19  ;;  %8162 = vmatmul.mubr.msk.f32.vlgmr.msra.gmra.mxu0 %vm1458_vm2, %v6169_v10 }
 0x364   :  { %8165 = vmatpush3.msra.mxu1 %v11986_v56  ;;  %8178 = vmatpush3.msra.mxu0 %v11987_v17 }
 0x365   :  { %8166 = vmatprep.subr.mxu1 %v8296_v19  ;;  %8179 = vmatprep.subr.mxu0 %v8296_v19 }
 0x366   :  { %8167 = vmatpush3.msra.mxu1 %v11988_v12  ;;  %8180 = vmatpush3.msra.mxu0 %v11989_v14  ;;  %v3278_v28 = vpop.f32.mrf.mxu1 }
 0x367   :  { %8168 = vmatprep.subr.mxu1 %v8296_v19  ;;  %8181 = vmatprep.subr.mxu0 %v8296_v19  ;;  %v3282_v39 = vadd.f32 %v3278_v28, %v3202_v33 }
 0x368   :  { %8169 = vmatpush3.msra.mxu1 %v11990_v57  ;;  %8182 = vmatpush3.msra.mxu0 %v11991_v13  ;;  %v7682_v22 = vpop.f32.mrf.mxu1 }
 0x369   :  { %8170 = vmatprep.subr.mxu1 %v8296_v19  ;;  %8183 = vmatprep.subr.mxu0 %v8296_v19  ;;  %v3362_v25 = vadd.f32 %v11089_v26, %v3282_v39  ;;  %v6579_v22 = vld [vmem:[%s11360_s5 + $0x38] sm:$0xff] }
 0x36a   :  { %8171 = vmatpush3.msra.mxu1 %v11992_v11  ;;  %8184 = vmatpush3.msra.mxu0 %v11993_v29 }
 0x36b   :  { %8172 = vmatprep.subr.mxu1 %v8296_v19  ;;  %8185 = vmatprep.subr.mxu0 %v8296_v19 }
 0x36c   :  { %8173 = vmatpush3.msra.mxu1 %v11994_v60  ;;  %8174 = vmatprep.mubr.msk.f32.mxu1 %vm8297_vm3, %v8296_v19  ;;  %v6577_v60 = vld [vmem:[%s11360_s5 + $0x28] sm:$0xff] }
 0x36d   :  { %8186 = vmatpush3.msra.mxu0 %v11995_v6  ;;  %8175 = vmatmul.mubr.msk.f32.vlgmr.msra.gmra.mxu1 %vm1458_vm2, %v10382_v31  ;;  %v4158_v40 = vpop.f32.mrf.mxu0 }
 0x36e   :  { %8187 = vmatprep.mubr.msk.f32.mxu0 %vm8297_vm3, %v8296_v19  ;;  %8190 = vmatprep.subr.mxu1 %v8296_v19 }
 0x36f   :  { %8203 = vmatprep.subr.mxu0 %v8296_v19  ;;  %8188 = vmatmul.mubr.msk.f32.vlgmr.msra.gmra.mxu0 %vm1458_vm2, %v6329_v30  ;;  %v7825_v23 = vpop.f32.mrf.mxu0  ;;  %v6578_v30 = vld [vmem:[%s11360_s5 + $0x30] sm:$0xff] }
 0x370   :  { %8191 = vmatpush3.msra.mxu1 %v11996_v5  ;;  %8204 = vmatpush3.msra.mxu0 %v11997_v4  ;;  %v3438_v9 = vpop.f32.mrf.mxu1  ;;  %v6575_v23 = vld [vmem:[%s11360_s5 + $0x18] sm:$0xff]  ;;  %v6574_v4 = vld [vmem:[%s11360_s5 + $0x10] sm:$0xff] }
 0x371   :  { %8192 = vmatprep.subr.mxu1 %v8296_v19  ;;  %8205 = vmatprep.subr.mxu0 %v8296_v19  ;;  %v3442_v3 = vadd.f32 %v3438_v9, %v3362_v25  ;;  %v6576_v25 = vld [vmem:[%s11360_s5 + $0x20] sm:$0xff] }
 0x372   :  { %8193 = vmatpush3.msra.mxu1 %v11998_v8  ;;  %8206 = vmatpush3.msra.mxu0 %v11999_v41  ;;  %v7708_v1 = vpop.f32.mrf.mxu1 }
 0x373   :  { %8194 = vmatprep.subr.mxu1 %v8296_v19  ;;  %8207 = vmatprep.subr.mxu0 %v8296_v19  ;;  %v3522_v26 = vadd.f32 %v11124_v34, %v3442_v3  ;;  %v12004_v34 = vld [vmem:[#allocation315_spill] sm:$0xff]  ;;  %v6573_v3 = vld [vmem:[%s11360_s5 + $0x8] sm:$0xff]  ;;  %v6572_v1 = vld [vmem:[%s11360_s5] sm:$0xff] }
 0x374   :  { %8195 = vmatpush3.msra.mxu1 %v12000_v27  ;;  %8208 = vmatpush3.msra.mxu0 %v12001_v21 }
 0x375   :  { %8196 = vmatprep.subr.mxu1 %v8296_v19  ;;  %8209 = vmatprep.subr.mxu0 %v8296_v19 }
 0x376   :  { %8197 = vmatpush3.msra.mxu1 %v12002_v37  ;;  %8210 = vmatpush3.msra.mxu0 %v12003_v52 }
 0x377   :  { %8198 = vmatprep.subr.mxu1 %v8296_v19  ;;  %8211 = vmatprep.subr.mxu0 %v8296_v19 }
 0x378   :  { %8199 = vmatpush3.msra.mxu1 %v12004_v34  ;;  %8200 = vmatprep.mubr.msk.f32.mxu1 %vm8297_vm3, %v8296_v19 }
 0x379   :  { %8212 = vmatpush3.msra.mxu0 %v12005_v24  ;;  %8213 = vmatprep.mubr.msk.f32.mxu0 %vm8297_vm3, %v8296_v19 }
 0x37a   :  { %8201 = vmatmul.mubr.msk.f32.vlgmr.msra.gmra.mxu1 %vm1458_vm2, %v6409_v55  ;;  %8214 = vmatmul.mubr.msk.f32.vlgmr.msra.gmra.mxu0 %vm1458_vm2, %v6489_v58  ;;  %v3598_v61 = vpop.f32.mrf.mxu1 }
 0x37b   :  { %v3602_v31 = vadd.f32 %v3598_v61, %v3522_v26  ;;  %8216 = vmatprep.subr.mxu1 %v8296_v19  ;;  %8232 = vmatprep.mubr.msk.f32.mxu1 %vm8297_vm3, %v8296_v19 }
 0x37c   :  { %v7734_v62 = vpop.f32.mrf.mxu1  ;;  %8217 = vmatpush3.msra.mxu1 %v6579_v22 }
 0x37d   :  { %v3682_v63 = vadd.f32 %v11163_v42, %v3602_v31  ;;  %v4318_v15 = vpop.f32.mrf.mxu0  ;;  %8218 = vmatprep.subr.mxu1 %v8296_v19 }
 0x37e   :  { %8219 = vmatpush3.msra.mxu1 %v6578_v30 }
 0x37f   :  { %v7851_v59 = vpop.f32.mrf.mxu0  ;;  %8220 = vmatprep.subr.mxu1 %v8296_v19 }
 0x380   :  { %8221 = vmatpush3.msra.mxu1 %v6577_v60 }
 0x381   :  { %8222 = vmatprep.subr.mxu1 %v8296_v19 }
 0x382   :  { %8223 = vmatpush3.msra.mxu1 %v6576_v25 }
 0x383   :  { %8224 = vmatprep.subr.mxu1 %v8296_v19 }
 0x384   :  { %v3758_v32 = vpop.f32.mrf.mxu1  ;;  %8225 = vmatpush3.msra.mxu1 %v6575_v23 }
 0x385   :  { %v3762_v2 = vadd.f32 %v3758_v32, %v3682_v63  ;;  %8226 = vmatprep.subr.mxu1 %v8296_v19 }
 0x386   :  { %v7760_v48 = vpop.f32.mrf.mxu1  ;;  %8227 = vmatpush3.msra.mxu1 %v6574_v4 }
 0x387   :  { %v3842_v43 = vadd.f32 %v11198_v45, %v3762_v2  ;;  %8228 = vmatprep.subr.mxu1 %v8296_v19 }
 0x388   :  { %8229 = vmatpush3.msra.mxu1 %v6573_v3 }
 0x389   :  { %8230 = vmatprep.subr.mxu1 %v8296_v19 }
 0x38a   :  { %8231 = vmatpush3.msra.mxu1 %v6572_v1  ;;  %v6822_v1 = vld [vmem:[%s11361_s6] ss:$0 sm:$0xff] }
 0x38b   :  { %v4478_v36 = vpop.f32.mrf.mxu0 }
 0x38d   :  { %v7877_v53 = vpop.f32.mrf.mxu0 }
 0x38e   :  { %v3918_v7 = vpop.f32.mrf.mxu1 }
 0x38f   :  { %v3922_v38 = vadd.f32 %v3918_v7, %v3842_v43 }
 0x390   :  { %v7786_v20 = vpop.f32.mrf.mxu1 }
 0x391   :  { %v4002_v46 = vadd.f32 %v11240_v16, %v3922_v38 }
 0x398   :  { %v4078_v50 = vpop.f32.mrf.mxu1 }
 0x399   :  { %v4082_v47 = vadd.f32 %v4078_v50, %v4002_v46 }
 0x39a   :  { %v7812_v35 = vpop.f32.mrf.mxu1 }
 0x39b   :  { %v4162_v0 = vadd.f32 %v4158_v40, %v4082_v47  ;;  %v4638_v18 = vpop.f32.mrf.mxu0 }
 0x39d   :  { %v7903_v42 = vpop.f32.mrf.mxu0 }
 0x3a2   :  { %v4238_v44 = vpop.f32.mrf.mxu1 }
 0x3a3   :  { %v4242_v10 = vadd.f32 %v4238_v44, %v4162_v0 }
 0x3a4   :  { %v7838_v54 = vpop.f32.mrf.mxu1 }
 0x3a5   :  { %v4322_v51 = vadd.f32 %v4318_v15, %v4242_v10 }
 0x3a9   :  { %v4798_v49 = vpop.f32.mrf.mxu0 }
 0x3ab   :  { %v7929_v56 = vpop.f32.mrf.mxu0 }
 0x3ac   :  { %v4398_v45 = vpop.f32.mrf.mxu1 }
 0x3ad   :  { %v4402_v17 = vadd.f32 %v4398_v45, %v4322_v51 }
 0x3ae   :  { %v7864_v33 = vpop.f32.mrf.mxu1 }
 0x3af   :  { %v4482_v12 = vadd.f32 %v4478_v36, %v4402_v17 }
 0x3b6   :  { %v4558_v14 = vpop.f32.mrf.mxu1 }
 0x3b7   :  { %v4562_v28 = vadd.f32 %v4558_v14, %v4482_v12 }
 0x3b8   :  { %v7890_v39 = vpop.f32.mrf.mxu1 }
 0x3b9   :  { %v4642_v16 = vadd.f32 %v4638_v18, %v4562_v28  ;;  %v4958_v57 = vpop.f32.mrf.mxu0 }
 0x3bb   :  { %v7955_v13 = vpop.f32.mrf.mxu0 }
 0x3c0   :  { %v4718_v11 = vpop.f32.mrf.mxu1 }
 0x3c1   :  { %v4722_v29 = vadd.f32 %v4718_v11, %v4642_v16 }
 0x3c2   :  { %v7916_v6 = vpop.f32.mrf.mxu1 }
 0x3c3   :  { %v4802_v40 = vadd.f32 %v4798_v49, %v4722_v29 }
 0x3c7   :  { %v5118_v5 = vpop.f32.mrf.mxu0 }
 0x3c9   :  { %v7981_v9 = vpop.f32.mrf.mxu0 }
 0x3ca   :  { %v4878_v8 = vpop.f32.mrf.mxu1 }
 0x3cb   :  { %v4882_v41 = vadd.f32 %v4878_v8, %v4802_v40 }
 0x3cc   :  { %v7942_v26 = vpop.f32.mrf.mxu1 }
 0x3cd   :  { %v4962_v27 = vadd.f32 %v4958_v57, %v4882_v41 }
 0x3d4   :  { %v5038_v21 = vpop.f32.mrf.mxu1 }
 0x3d5   :  { %v5042_v37 = vadd.f32 %v5038_v21, %v4962_v27 }
 0x3d6   :  { %v7968_v52 = vpop.f32.mrf.mxu1 }
 0x3d7   :  { %v5122_v55 = vadd.f32 %v5118_v5, %v5042_v37  ;;  %v5278_v58 = vpop.f32.mrf.mxu0  ;;  %v6821_v5 = vld [vmem:[%s11359_s4] ss:$0 sm:$0xff]  ;;  %s8272_s4 = scalar_lea.vmem %s6670_s22, 32 }
 0x3d8   :  { %p8273_p0 = scmp.ne.s32.totalorder %s6670_s22, %s8272_s4  ;;  %p8278_p2 = scmp.lt.s32.totalorder %s8272_s4, %s8272_s4 }
 0x3d9   :  { %v8007_v34 = vpop.f32.mrf.mxu0 }
 0x3da   :  { %p8279_p3 = por %p8278_p2, %p8277_p1 }
 0x3dc   :  { %p8280_p4 = pnand %p8279_p3, %p8273_p0 }
 0x3de   :  { %v5198_v24 = vpop.f32.mrf.mxu1 }
 0x3df   :  { %v5202_v61 = vadd.f32 %v5198_v24, %v5122_v55 }
 0x3e0   :  { %v7994_v31 = vpop.f32.mrf.mxu1 }
 0x3e1   :  { %v5282_v62 = vadd.f32 %v5278_v58, %v5202_v61 }
 0x3e5   :  { %v5438_v63 = vpop.f32.mrf.mxu0 }
 0x3e7   :  { %v8033_v15 = vpop.f32.mrf.mxu0 }
 0x3e8   :  { %v5358_v59 = vpop.f32.mrf.mxu1 }
 0x3e9   :  { %v5362_v35 = vadd.f32 %v5358_v59, %v5282_v62 }
 0x3ea   :  { %v8020_v32 = vpop.f32.mrf.mxu1 }
 0x3eb   :  { %v5442_v0 = vadd.f32 %v5438_v63, %v5362_v35 }
 0x3f2   :  { %v5518_v2 = vpop.f32.mrf.mxu1 }
 0x3f3   :  { %v5598_v48 = vpop.f32.mrf.mxu0  ;;  %v5522_v42 = vadd.f32 %v5518_v2, %v5442_v0 }
 0x3f4   :  { %v8046_v43 = vpop.f32.mrf.mxu1 }
 0x3f5   :  { %v8059_v36 = vpop.f32.mrf.mxu0  ;;  %v5602_v51 = vadd.f32 %v5598_v48, %v5522_v42 }
 0x3fd   :  { %v5678_v19 = vpop.f32.mrf.mxu1 }
 0x3fe   :  { %v5682_v49 = vadd.f32 %v5678_v19, %v5602_v51 }
 0x3ff   :  { %v5758_v53 = vpop.f32.mrf.mxu0  ;;  %v8072_v7 = vpop.f32.mrf.mxu1 }
 0x400   :  { %v5762_v56 = vadd.f32 %v5758_v53, %v5682_v49 }
 0x401   :  { %v8085_v38 = vpop.f32.mrf.mxu0 }
 0x409   :  { %v5838_v20 = vpop.f32.mrf.mxu1 }
 0x40a   :  { %v5842_v17 = vadd.f32 %v5838_v20, %v5762_v56 }
 0x40b   :  { %v5918_v46 = vpop.f32.mrf.mxu0  ;;  %v8098_v50 = vpop.f32.mrf.mxu1 }
 0x40c   :  { %v5922_v28 = vadd.f32 %v5918_v46, %v5842_v17 }
 0x40d   :  { %v8111_v47 = vpop.f32.mrf.mxu0 }
 0x415   :  { %v5998_v18 = vpop.f32.mrf.mxu1 }
 0x416   :  { %v6002_v39 = vadd.f32 %v5998_v18, %v5922_v28 }
 0x417   :  { %v6078_v44 = vpop.f32.mrf.mxu0  ;;  %v8124_v10 = vpop.f32.mrf.mxu1 }
 0x418   :  { %v6082_v16 = vadd.f32 %v6078_v44, %v6002_v39 }
 0x419   :  { %v8137_v54 = vpop.f32.mrf.mxu0 }
 0x421   :  { %v6158_v45 = vpop.f32.mrf.mxu1 }
 0x422   :  { %v6162_v13 = vadd.f32 %v6158_v45, %v6082_v16 }
 0x423   :  { %v6238_v33 = vpop.f32.mrf.mxu0  ;;  %v8150_v12 = vpop.f32.mrf.mxu1 }
 0x424   :  { %v6242_v30 = vadd.f32 %v6238_v33, %v6162_v13 }
 0x425   :  { %v8163_v14 = vpop.f32.mrf.mxu0 }
 0x42d   :  { %v6318_v57 = vpop.f32.mrf.mxu1 }
 0x42e   :  { %v6322_v60 = vadd.f32 %v6318_v57, %v6242_v30 }
 0x42f   :  { %v6398_v22 = vpop.f32.mrf.mxu0  ;;  %v8176_v11 = vpop.f32.mrf.mxu1 }
 0x430   :  { %v6402_v6 = vadd.f32 %v6398_v22, %v6322_v60 }
 0x431   :  { %v8189_v29 = vpop.f32.mrf.mxu0 }
 0x43a   :  { %v6478_v40 = vpop.f32.mrf.mxu1  ;;  %v6558_v25 = vpop.f32.mrf.mxu0 }
 0x43b   :  { %v6482_v23 = vadd.f32 %v6478_v40, %v6402_v6 }
 0x43c   :  { %v8202_v4 = vpop.f32.mrf.mxu1  ;;  %v8215_v9 = vpop.f32.mrf.mxu0 }
 0x43d   :  { %v6562_v3 = vadd.f32 %v6558_v25, %v6482_v23 }
 0x43f   :  { %v6570_v8 = vadd.f32 %v6821_v5, %v6562_v3 }
 0x441   :  { %8270 = vtanh.f32 %v6570_v8 }
 0x44e   :  { %v8271_v41 = vpop.eup %8270 }
 0x44f   :  { %8233 = vmatmul.mubr.msk.f32.vlgmr.msra.gmra.mxu1 %vm6587_vm4, %v8271_v41 }
 0x50f   :  { %v6657_v26 = vpop.f32.mrf.mxu1 }
 0x510   :  { %v6658_v27 = vadd.f32 %v6822_v1, %v6657_v26 }
 0x511   :  { %v8234_v21 = vpop.f32.mrf.mxu1 }
 0x512   :  { %6662 = vst.msk [vmem:[#allocation4] sm:$0x3] %vm6661_vm5, %v6658_v27 }
 0x513   :  { %8283 = shalt.err (!%p8280_p4)
}
 0x514   :  { %6672 = dma.vmem_to_hbm [thread:$0]  %s6670_s22, 32, %s11362_s7, [#allocation5]  }
 0x515   :  { %8294 = dma.done.wait [#allocation5], 32  }
 0x516   :  { %8295 = vsyncadd [#allocation5], 4294967264 }
 0x517   :  { %6676 = vsyncpa [#allocation5], 1 }
 0x518   :  { %6677 = vsyncmov [#allocation3] }
 0x51b   :  { %s6678_s6 = vpop.sfrf %6677 }
 0x51c   :  { %p6824_p5 = scmp.ne.s32.totalorder %s6678_s6, 0 }
 0x51e   :  { %6682 = shalt.err (%p6824_p5)  }

</bundles_post_ra>
